<compile_context>
chip_gen: v7x
topology: tpu7x:2x2x1
jax: 0.10.0
libtpu: 0.0.40
codegen_flags: <defaults>
</compile_context>

<pallas_src>
import functools

import jax
import jax.numpy as jnp
from jax.experimental import pallas as pl
from jax.experimental.pallas import tpu as pltpu

EPS = 1e-5


# ----------------------------------------------------------------------------
# Kernels
# ----------------------------------------------------------------------------
def _conv3x3_bn_stats_kernel(x_ref, w_ref, scale_ref, shift_ref,
                             y_ref, stats_ref, xpad_ref,
                             *, H, W, Cin, Cout, pre_bn_relu):
    """(optional fused prev-layer BN affine + ReLU) -> 3x3 "same" conv.

    x_ref     : (1, Cin, H*W)   input activation, channel-major, lane-dense
    w_ref     : (9*Cin, Cout)   conv weight in im2col layout
    scale_ref : (Cin, 1)        prev-layer BN scale  (unused if !pre_bn_relu)
    shift_ref : (Cin, 1)        prev-layer BN shift  (unused if !pre_bn_relu)
    y_ref     : (1, Cout, H*W)  conv output, channel-major, lane-dense
    stats_ref : (1, 2, Cout)    per-step partial [sum, sum_sq] over H*W
    xpad_ref  : (H+2, W+2, Cin) VMEM scratch holding the zero-padded NHWC tile
    """
    x = x_ref[0].astype(jnp.float32)                       # (Cin, H*W)
    if pre_bn_relu:
        # Fused BatchNorm affine + ReLU of the previous layer, applied to the
        # loaded tile (per-channel = per-sublane broadcast) before the conv.
        x = jnp.maximum(x * scale_ref[...] + shift_ref[...], 0.0)

    # Channel-minor (NHWC) view for the spatial windowing.
    x_hwc = jnp.transpose(x).reshape(H, W, Cin)            # (H, W, Cin)

    # Zero-padded copy in VMEM scratch (replaces wrapper-side jnp.pad, so the
    # padded activation never makes an extra HBM round trip).  The border is
    # re-zeroed every step so the kernel is safe with a "parallel" batch axis.
    xpad_ref[...] = jnp.zeros_like(xpad_ref)
    xpad_ref[1:H + 1, 1:W + 1, :] = x_hwc
    xp = xpad_ref[...]                                     # (H+2, W+2, Cin)

    # im2col: one fat matmul with K = 9*Cin instead of 9 skinny K = Cin ones.
    cols = [xp[dy:dy + H, dx:dx + W, :] for dy in range(3) for dx in range(3)]
    patches = jnp.concatenate(cols, axis=-1).reshape(H * W, 9 * Cin)
    # TODO(synk): cast patches / w to bf16 (keep f32 accumulate) for v6e/v7x
    # MXU throughput at real channel counts.
    acc = jnp.dot(patches, w_ref[...],
                  preferred_element_type=jnp.float32)      # (H*W, Cout)

    # Per-step BatchNorm partial statistics.  No cross-step accumulation, so
    # the batch axis stays "parallel" (shardable across v7x's 2 TensorCores);
    # the reduction over N is a tiny wrapper-side sum.
    s = jnp.sum(acc, axis=0, keepdims=True)                # (1, Cout)
    sq = jnp.sum(acc * acc, axis=0, keepdims=True)         # (1, Cout)
    stats_ref[0] = jnp.concatenate([s, sq], axis=0)        # (2, Cout)

    # Lane-dense store: (Cout, H*W) keeps H*W on the lane axis instead of a
    # masked last-dim-=Cout store.
    y_ref[0] = jnp.transpose(acc).astype(y_ref.dtype)


def _bn_relu_kernel(y_ref, scale_ref, shift_ref, o_ref):
    """Final fused BatchNorm affine + ReLU, channel-major (NCHW-flat) layout."""
    y = y_ref[0].astype(jnp.float32)                       # (C, H*W)
    o_ref[0] = jnp.maximum(y * scale_ref[...] + shift_ref[...], 0.0
                           ).astype(o_ref.dtype)


# ----------------------------------------------------------------------------
# Pallas wrappers
# ----------------------------------------------------------------------------
def conv3x3_bn_stats(x_flat, w2d, scale, shift, *, H, W, pre_bn_relu):
    """x_flat: (N, Cin, H*W); w2d: (9*Cin, Cout); scale/shift: (Cin, 1)."""
    N, Cin, HW = x_flat.shape
    Cout = w2d.shape[-1]
    kernel = functools.partial(
        _conv3x3_bn_stats_kernel, H=H, W=W, Cin=Cin, Cout=Cout,
        pre_bn_relu=pre_bn_relu)
    # TODO(synk): for large H*W, tile the grid over H row-blocks with a 1-row
    # halo and raise vmem_limit_bytes via pltpu.CompilerParams.
    return pl.pallas_call(
        kernel,
        out_shape=(
            jax.ShapeDtypeStruct((N, Cout, HW), jnp.float32),
            jax.ShapeDtypeStruct((N, 2, Cout), jnp.float32),
        ),
        grid=(N,),
        in_specs=[
            pl.BlockSpec((1, Cin, HW), lambda n: (n, 0, 0)),
            pl.BlockSpec((9 * Cin, Cout), lambda n: (0, 0)),
            pl.BlockSpec((Cin, 1), lambda n: (0, 0)),
            pl.BlockSpec((Cin, 1), lambda n: (0, 0)),
        ],
        out_specs=(
            pl.BlockSpec((1, Cout, HW), lambda n: (n, 0, 0)),
            pl.BlockSpec((1, 2, Cout), lambda n: (n, 0, 0)),
        ),
        scratch_shapes=[pltpu.VMEM((H + 2, W + 2, Cin), jnp.float32)],
        compiler_params=pltpu.CompilerParams(
            dimension_semantics=("parallel",)),
    )(x_flat, w2d, scale, shift)


def bn_relu(y_flat, scale, shift):
    """y_flat: (N, C, H*W); scale/shift: (C, 1)."""
    N, C, HW = y_flat.shape
    return pl.pallas_call(
        _bn_relu_kernel,
        out_shape=jax.ShapeDtypeStruct((N, C, HW), jnp.float32),
        grid=(N,),
        in_specs=[
            pl.BlockSpec((1, C, HW), lambda n: (n, 0, 0)),
            pl.BlockSpec((C, 1), lambda n: (0, 0)),
            pl.BlockSpec((C, 1), lambda n: (0, 0)),
        ],
        out_specs=pl.BlockSpec((1, C, HW), lambda n: (n, 0, 0)),
        compiler_params=pltpu.CompilerParams(
            dimension_semantics=("parallel",)),
    )(y_flat, scale, shift)


# ----------------------------------------------------------------------------
# Block forward (matches the PyTorch module)
# ----------------------------------------------------------------------------
def _bn_affine(stats, gamma, beta, count):
    """Fold per-batch BN stats into a per-channel (scale, shift) pair."""
    tot = jnp.sum(stats, axis=0)                 # (2, C) — tiny reduction
    mean = tot[0] / count
    # TODO(synk): E[x^2]-E[x]^2 is cancellation-prone on ill-conditioned data;
    # switch to a shifted / Welford-style accumulation if that ever matters.
    var = tot[1] / count - mean * mean           # biased var (training-mode BN)
    scale = gamma * jax.lax.rsqrt(var + EPS)
    shift = beta - mean * scale
    return scale.reshape(-1, 1), shift.reshape(-1, 1)


def block_forward(x_nchw, params):
    N, Cin, H, W = x_nchw.shape
    HW = H * W
    cnt = jnp.float32(N * HW)
    C1 = params["w1"].shape[-1]
    C2 = params["w2"].shape[-1]

    # Channel-major "NCHW-flat" activations: these reshapes are contiguous
    # (free) — no HBM transpose passes at the kernel boundary.
    x_flat = x_nchw.reshape(N, Cin, HW).astype(jnp.float32)
    w1 = params["w1"].astype(jnp.float32).reshape(9 * Cin, C1)
    w2 = params["w2"].astype(jnp.float32).reshape(9 * C1, C2)

    # conv1 (+ BN1 partial stats)
    one = jnp.ones((Cin, 1), jnp.float32)
    zero = jnp.zeros((Cin, 1), jnp.float32)
    y1, st1 = conv3x3_bn_stats(x_flat, w1, one, zero, H=H, W=W,
                               pre_bn_relu=False)
    sc1, sh1 = _bn_affine(st1, params["gamma1"], params["beta1"], cnt)

    # BN1 + ReLU fused into conv2's input load; conv2 (+ BN2 partial stats)
    y2, st2 = conv3x3_bn_stats(y1, w2, sc1, sh1, H=H, W=W, pre_bn_relu=True)
    sc2, sh2 = _bn_affine(st2, params["gamma2"], params["beta2"], cnt)

    # Final BN2 + ReLU; output is already channel-major so the NCHW result is
    # just a free reshape.
    out_flat = bn_relu(y2, sc2, sh2)
    return out_flat.reshape(N, C2, H, W)


# ----------------------------------------------------------------------------
# Pure-JAX reference (for correctness check)
# ----------------------------------------------------------------------------
def _ref_block(x_nchw, params):
    def conv(x, w_hwio):
        w_oihw = jnp.transpose(w_hwio, (3, 2, 0, 1))
        return jax.lax.conv_general_dilated(
            x, w_oihw, window_strides=(1, 1), padding=((1, 1), (1, 1)),
            dimension_numbers=("NCHW", "OIHW", "NCHW"))

    def bnr(y, gamma, beta):
        mean = y.mean(axis=(0, 2, 3), keepdims=True)
        var = y.var(axis=(0, 2, 3), keepdims=True)    # biased
        yn = (y - mean) * jax.lax.rsqrt(var + EPS)
        yn = yn * gamma[None, :, None, None] + beta[None, :, None, None]
        return jnp.maximum(yn, 0.0)

    y = bnr(conv(x_nchw, params["w1"]), params["gamma1"], params["beta1"])
    y = bnr(conv(y, params["w2"]), params["gamma2"], params["beta2"])
    return y


# ----------------------------------------------------------------------------
# Main
# ----------------------------------------------------------------------------
if __name__ == "__main__":
    N, Cin, H, W = 2, 4, 16, 16
    Cout = 8

    key = jax.random.PRNGKey(0)
    kx, kw1, kw2 = jax.random.split(key, 3)

    # Conv weights in HWIO layout (3, 3, Cin, Cout); deterministic init
    # ~ U(-1/sqrt(fan_in), 1/sqrt(fan_in)) like PyTorch's default.
    b1 = 1.0 / jnp.sqrt(jnp.float32(Cin * 9))
    b2 = 1.0 / jnp.sqrt(jnp.float32(Cout * 9))
    params = {
        "w1": jax.random.uniform(kw1, (3, 3, Cin, Cout), jnp.float32, -b1, b1),
        "w2": jax.random.uniform(kw2, (3, 3, Cout, Cout), jnp.float32, -b2, b2),
        "gamma1": jnp.ones((Cout,), jnp.float32),   # BatchNorm default init
        "beta1": jnp.zeros((Cout,), jnp.float32),
        "gamma2": jnp.ones((Cout,), jnp.float32),
        "beta2": jnp.zeros((Cout,), jnp.float32),
    }

    x = jax.random.normal(kx, (N, Cin, H, W), jnp.float32)

    out = jax.block_until_ready(block_forward(x, params))
    ref = jax.block_until_ready(_ref_block(x, params))

    assert out.shape == (N, Cout, H, W), out.shape
    assert jnp.allclose(out, ref, atol=1e-4, rtol=1e-4), (
        float(jnp.max(jnp.abs(out - ref))))

    print("KERNEL_OK")
</pallas_src>

<mosaic_0001>
module attributes {stable_mosaic.version = 11 : i64} {
  func.func @_conv3x3_bn_stats_kernel(%arg0: i32, %arg1: memref<1x4x256xf32, #tpu.memory_space<vmem>>, %arg2: memref<36x8xf32, #tpu.memory_space<vmem>>, %arg3: memref<4x1xf32, #tpu.memory_space<vmem>>, %arg4: memref<4x1xf32, #tpu.memory_space<vmem>>, %arg5: memref<1x8x256xf32, #tpu.memory_space<vmem>>, %arg6: memref<1x2x8xf32, #tpu.memory_space<vmem>>, %arg7: memref<18x18x4xf32, #tpu.memory_space<vmem>>) attributes {dimension_semantics = [#tpu.dimension_semantics<parallel>], iteration_bounds = array<i64: 2>, scalar_prefetch = 0 : i64, scratch_operands = 1 : i64, tpu.core_type = #tpu.core_type<tc>, window_params = [{transform_indices = @transform_0, window_bounds = array<i64: 1, 4, 256>}, {pipeline_mode = #tpu.pipeline_mode<synchronous>, transform_indices = @transform_1, window_bounds = array<i64: 36, 8>}, {pipeline_mode = #tpu.pipeline_mode<synchronous>, transform_indices = @transform_2, window_bounds = array<i64: 4, 1>}, {pipeline_mode = #tpu.pipeline_mode<synchronous>, transform_indices = @transform_3, window_bounds = array<i64: 4, 1>}, {transform_indices = @transform_4, window_bounds = array<i64: 1, 8, 256>}, {transform_indices = @transform_5, window_bounds = array<i64: 1, 2, 8>}]} {
    %c0 = arith.constant 0 : index
    %c0_0 = arith.constant 0 : index
    %c0_1 = arith.constant 0 : index
    %0 = vector.load %arg1[%c0, %c0_0, %c0_1] : memref<1x4x256xf32, #tpu.memory_space<vmem>>, vector<1x4x256xf32>
    %1 = vector.shape_cast %0 : vector<1x4x256xf32> to vector<4x256xf32>
    %2 = tpu.transpose %1, [1, 0] : vector<4x256xf32> -> vector<256x4xf32>
    %3 = vector.shape_cast %2 : vector<256x4xf32> to vector<16x16x4xf32>
    %cst = arith.constant 0.000000e+00 : f32
    %4 = vector.broadcast %cst : f32 to vector<18x18x4xf32>
    %c0_2 = arith.constant 0 : index
    %c0_3 = arith.constant 0 : index
    %c0_4 = arith.constant 0 : index
    %5 = vector.load %arg7[%c0_2, %c0_3, %c0_4] : memref<18x18x4xf32, #tpu.memory_space<vmem>>, vector<18x18x4xf32>
    tpu.vector_store %arg7[%c0_2, %c0_3, %c0_4], %4 {strides = array<i32>} : memref<18x18x4xf32, #tpu.memory_space<vmem>>, vector<18x18x4xf32>,
    %c1 = arith.constant 1 : index
    %c1_5 = arith.constant 1 : index
    %c0_6 = arith.constant 0 : index
    %6 = vector.load %arg7[%c1, %c1_5, %c0_6] : memref<18x18x4xf32, #tpu.memory_space<vmem>>, vector<16x16x4xf32>
    tpu.vector_store %arg7[%c1, %c1_5, %c0_6], %3 {strides = array<i32>} : memref<18x18x4xf32, #tpu.memory_space<vmem>>, vector<16x16x4xf32>,
    %c0_7 = arith.constant 0 : index
    %c0_8 = arith.constant 0 : index
    %c0_9 = arith.constant 0 : index
    %7 = vector.load %arg7[%c0_7, %c0_8, %c0_9] : memref<18x18x4xf32, #tpu.memory_space<vmem>>, vector<18x18x4xf32>
    %8 = vector.extract_strided_slice %7 {offsets = [0, 0, 0], sizes = [16, 16, 4], strides = [1, 1, 1]} : vector<18x18x4xf32> to vector<16x16x4xf32>
    %9 = vector.extract_strided_slice %7 {offsets = [0, 1, 0], sizes = [16, 16, 4], strides = [1, 1, 1]} : vector<18x18x4xf32> to vector<16x16x4xf32>
    %10 = vector.extract_strided_slice %7 {offsets = [0, 2, 0], sizes = [16, 16, 4], strides = [1, 1, 1]} : vector<18x18x4xf32> to vector<16x16x4xf32>
    %11 = vector.extract_strided_slice %7 {offsets = [1, 0, 0], sizes = [16, 16, 4], strides = [1, 1, 1]} : vector<18x18x4xf32> to vector<16x16x4xf32>
    %12 = vector.extract_strided_slice %7 {offsets = [1, 1, 0], sizes = [16, 16, 4], strides = [1, 1, 1]} : vector<18x18x4xf32> to vector<16x16x4xf32>
    %13 = vector.extract_strided_slice %7 {offsets = [1, 2, 0], sizes = [16, 16, 4], strides = [1, 1, 1]} : vector<18x18x4xf32> to vector<16x16x4xf32>
    %14 = vector.extract_strided_slice %7 {offsets = [2, 0, 0], sizes = [16, 16, 4], strides = [1, 1, 1]} : vector<18x18x4xf32> to vector<16x16x4xf32>
    %15 = vector.extract_strided_slice %7 {offsets = [2, 1, 0], sizes = [16, 16, 4], strides = [1, 1, 1]} : vector<18x18x4xf32> to vector<16x16x4xf32>
    %16 = vector.extract_strided_slice %7 {offsets = [2, 2, 0], sizes = [16, 16, 4], strides = [1, 1, 1]} : vector<18x18x4xf32> to vector<16x16x4xf32>
    %17 = tpu.concatenate %8, %9, %10, %11, %12, %13, %14, %15, %16 in 2 : vector<16x16x4xf32>, vector<16x16x4xf32>, vector<16x16x4xf32>, vector<16x16x4xf32>, vector<16x16x4xf32>, vector<16x16x4xf32>, vector<16x16x4xf32>, vector<16x16x4xf32>, vector<16x16x4xf32> -> vector<16x16x36xf32>
    %18 = vector.shape_cast %17 : vector<16x16x36xf32> to vector<256x36xf32>
    %c0_10 = arith.constant 0 : index
    %c0_11 = arith.constant 0 : index
    %19 = vector.load %arg2[%c0_10, %c0_11] : memref<36x8xf32, #tpu.memory_space<vmem>>, vector<36x8xf32>
    %cst_12 = arith.constant dense<0.000000e+00> : vector<256x8xf32>
    %20 = tpu.matmul %18, %19, %cst_12 {dimension_numbers = #tpu.dot_dimension_numbers<[1], [0], [0], [1], [0, 0, 1, 1], [], []>} : vector<256x36xf32>, vector<36x8xf32>, vector<256x8xf32> -> vector<256x8xf32>
    %cst_13 = arith.constant dense<0.000000e+00> : vector<8xf32>
    %21 = vector.multi_reduction <add>, %20, %cst_13 [0] : vector<256x8xf32> to vector<8xf32>
    %22 = vector.shape_cast %21 : vector<8xf32> to vector<1x8xf32>
    %23 = arith.mulf %20, %20 : vector<256x8xf32>
    %cst_14 = arith.constant dense<0.000000e+00> : vector<8xf32>
    %24 = vector.multi_reduction <add>, %23, %cst_14 [0] : vector<256x8xf32> to vector<8xf32>
    %25 = vector.shape_cast %24 : vector<8xf32> to vector<1x8xf32>
    %26 = tpu.concatenate %22, %25 in 0 : vector<1x8xf32>, vector<1x8xf32> -> vector<2x8xf32>
    %c0_15 = arith.constant 0 : index
    %c0_16 = arith.constant 0 : index
    %c0_17 = arith.constant 0 : index
    %27 = vector.load %arg6[%c0_15, %c0_16, %c0_17] : memref<1x2x8xf32, #tpu.memory_space<vmem>>, vector<1x2x8xf32>
    %28 = vector.shape_cast %27 : vector<1x2x8xf32> to vector<2x8xf32>
    %29 = vector.shape_cast %26 : vector<2x8xf32> to vector<1x2x8xf32>
    tpu.vector_store %arg6[%c0_15, %c0_16, %c0_17], %29 {strides = array<i32>} : memref<1x2x8xf32, #tpu.memory_space<vmem>>, vector<1x2x8xf32>,
    %30 = tpu.transpose %20, [1, 0] : vector<256x8xf32> -> vector<8x256xf32>
    %c0_18 = arith.constant 0 : index
    %c0_19 = arith.constant 0 : index
    %c0_20 = arith.constant 0 : index
    %31 = vector.load %arg5[%c0_18, %c0_19, %c0_20] : memref<1x8x256xf32, #tpu.memory_space<vmem>>, vector<1x8x256xf32>
    %32 = vector.shape_cast %31 : vector<1x8x256xf32> to vector<8x256xf32>
    %33 = vector.shape_cast %30 : vector<8x256xf32> to vector<1x8x256xf32>
    tpu.vector_store %arg5[%c0_18, %c0_19, %c0_20], %33 {strides = array<i32>} : memref<1x8x256xf32, #tpu.memory_space<vmem>>, vector<1x8x256xf32>,
    return
  }
  func.func @transform_0(%arg0: i32) -> (i32, i32, i32) {
    %c0_i32 = arith.constant 0 : i32
    %c0_i32_0 = arith.constant 0 : i32
    %c0_i32_1 = arith.constant 0 : i32
    return %arg0, %c0_i32, %c0_i32_0 : i32, i32, i32
  }
  func.func @transform_1(%arg0: i32) -> (i32, i32) {
    %c0_i32 = arith.constant 0 : i32
    %c0_i32_0 = arith.constant 0 : i32
    %c0_i32_1 = arith.constant 0 : i32
    return %c0_i32, %c0_i32_0 : i32, i32
  }
  func.func @transform_2(%arg0: i32) -> (i32, i32) {
    %c0_i32 = arith.constant 0 : i32
    %c0_i32_0 = arith.constant 0 : i32
    %c0_i32_1 = arith.constant 0 : i32
    return %c0_i32, %c0_i32_0 : i32, i32
  }
  func.func @transform_3(%arg0: i32) -> (i32, i32) {
    %c0_i32 = arith.constant 0 : i32
    %c0_i32_0 = arith.constant 0 : i32
    %c0_i32_1 = arith.constant 0 : i32
    return %c0_i32, %c0_i32_0 : i32, i32
  }
  func.func @transform_4(%arg0: i32) -> (i32, i32, i32) {
    %c0_i32 = arith.constant 0 : i32
    %c0_i32_0 = arith.constant 0 : i32
    %c0_i32_1 = arith.constant 0 : i32
    return %arg0, %c0_i32, %c0_i32_0 : i32, i32, i32
  }
  func.func @transform_5(%arg0: i32) -> (i32, i32, i32) {
    %c0_i32 = arith.constant 0 : i32
    %c0_i32_0 = arith.constant 0 : i32
    %c0_i32_1 = arith.constant 0 : i32
    return %arg0, %c0_i32, %c0_i32_0 : i32, i32, i32
  }
}

</mosaic_0001>

<bundles_post_ra>
// kernel: tpu_custom_call.1
= control target key start
LH: loop header
LB: loop body
LE: loop exit
PB: predicated region body
PF: predicated region fallthrough
CT: control target
= control target key end

     0   :  { %11 = vsyncpa [#allocation4], 0  ;;  %s4873_s0 = inlined_call_operand.vmem [shape: f32[2,4,256], index: 0, kind: input, shape index: {}]   ;;  %s4874_s1 = inlined_call_operand.vmem [shape: f32[36,8], index: 1, kind: input, shape index: {}]   ;;  %s4875_s2 = inlined_call_operand.vmem [shape: f32[4,1], index: 2, kind: input, shape index: {}]   ;;  %s4876_s3 = inlined_call_operand.vmem [shape: f32[4,1], index: 3, kind: input, shape index: {}]   ;;  %s4877_s4 = inlined_call_operand.hbm [shape: f32[2,8,256], index: 4, kind: output, shape index: {0}]   ;;  %s4878_s5 = inlined_call_operand.hbm [shape: f32[2,2,8], index: 5, kind: output, shape index: {1}]  }
   0x1   :  { %13 = vsyncpa [#allocation4 + $0x1], 0 }
   0x2   :  { %14 = vsyncpa [#allocation6], 0 }
   0x3   :  { %16 = vsyncpa [#allocation6 + $0x1], 0  ;;  %s2789_s18 = smov 0   ;;  %s2791_s19 = smov 0  }
   0x4   :  { %s2793_s20 = smov 0   ;;  %s2795_s2 = smov 0  }
   0x5 LB: > { %s2810_s3 = sadd.s32 4294967295, %s2746_s2   ;;  %s2407_s21 = sadd.s32 4294967294, %s2746_s2   ;;  %s2746_s2 = sphi %s2795_s2, %s5247_s2   ;;  %s2742_s20 = sphi %s2793_s20, %s5246_s20   ;;  %s2738_s19 = sphi %s2791_s19, %s5245_s19   ;;  %s2734_s18 = sphi %s2789_s18, %s5244_s18  }
   0x6   : > { %s2814_s22 = sadd.s32 1, %s2746_s2   ;;  %s118_s23 = sadd.s32 1, %s2742_s20 }
   0x7   : > { %s115_s24 = ssub.s32 %s2746_s2, %s2814_s22  ;;  %p128_p0 = scmp.ne.s32.totalorder %s2742_s20, %s2738_s19 }
   0x8   : > { %p116_p1 = scmp.eq.s32.totalorder %s115_s24, 0  ;;  %p129_p2 = scmp.eq.s32.totalorder %s2810_s3, 1 }
   0x9   : > { %p134_p3 = scmp.ne.s32.totalorder %s2738_s19, %s2734_s18  ;;  %p135_p4 = scmp.eq.s32.totalorder %s2407_s21, 1 }
   0xa   : > { %s2825_s25 = scalar_select %p116_p1, %s2742_s20, %s118_s23  }
   0xb   : > { %p2827_p5 = por %p129_p2, %p128_p0  ;;  %p2831_p6 = por %p135_p4, %p134_p3 }
   0xc   : > { %p2410_p7 = scmp.ge.s32.totalorder %s2746_s2, 1  ;;  %p196_p8 = scmp.lt.s32.totalorder %s2746_s2, 3 }
   0xe   : > { %p197_p9 = pnand %p2410_p7, %p196_p8 }
  0x10   : > { %200 = sbr.rel (%p197_p9) target bundleno = 1175 (0x497), region = 36 }
  0x17   : > { %p229_p10 = scmp.lt.s32.totalorder %s2810_s3, 1  ;;  %vm302_vm0 = vcmask 31744   ;;  %v2748_v0 = vmov 0.0   ;;  %vm305_vm1 = vcmask 25600   ;;  %vm493_vm2 = vcmask 1046528   ;;  %s2749_s8 = smov 4  }
  0x18   : > { %307 = vst.msk [vmem:[#allocation2 + $0x18] sm:$0xff] %vm302_vm0, %v2748_v0  ;;  %308 = vst.msk [vmem:[#allocation2 + $0x20] sm:$0xff] %vm302_vm0, %v2748_v0  ;;  %vm670_vm3 = vcmask 1045504   ;;  %s2750_s9 = smov 8   ;;  %s2751_s10 = smov 12   ;;  %vm1814_vm4 = vcmask 1043456  }
  0x19   : > { %303 = vst.msk [vmem:[#allocation2] sm:$0xff] %vm302_vm0, %v2748_v0  ;;  %304 = vst.msk [vmem:[#allocation2 + $0x8] sm:$0xff] %vm302_vm0, %v2748_v0  ;;  %s230_s28 = scalar_select %p229_p10, %s2810_s3, 1  ;;  %vm1481_vm5 = vcmask 64512   ;;  %vm1514_vm6 = vcmask 97280   ;;  %vm1547_vm7 = vcmask 130048  }
  0x1a   : > { %310 = vst.msk [vmem:[#allocation2 + $0x30] sm:$0xff] %vm302_vm0, %v2748_v0  ;;  %311 = vst.msk [vmem:[#allocation2 + $0x38] sm:$0xff] %vm302_vm0, %v2748_v0  ;;  %s2752_s11 = smov 16   ;;  %s2753_s12 = smov 20   ;;  %vm1580_vm8 = vcmask 162816   ;;  %vm1613_vm9 = vcmask 195584  }
  0x1b   : > { %313 = vst.msk [vmem:[#allocation2 + $0x48] sm:$0xff] %vm302_vm0, %v2748_v0  ;;  %314 = vst.msk [vmem:[#allocation2 + $0x50] sm:$0xff] %vm302_vm0, %v2748_v0  ;;  %s2455_s29 = sshll.u32 %s230_s28, 3  ;;  %s2754_s13 = smov 24   ;;  %vm1679_vm10 = vcmask 261120   ;;  %vm1646_vm11 = vcmask 228352  }
  0x1c   : > { %316 = vst.msk [vmem:[#allocation2 + $0x60] sm:$0xff] %vm302_vm0, %v2748_v0  ;;  %317 = vst.msk [vmem:[#allocation2 + $0x68] sm:$0xff] %vm302_vm0, %v2748_v0  ;;  %s233_s7 = scalar_lea.vmem %s4873_s0, %s2455_s29  ;;  %s2755_s14 = smov 28   ;;  %vm1717_vm12 = vcmask 293888   ;;  %vm2213_vm13 = vcmask 1040384   ;;  %vm2215_vm14 = vcmask 58368  }
  0x1d   : > { %319 = vst.msk [vmem:[#allocation2 + $0x78] sm:$0xff] %vm302_vm0, %v2748_v0  ;;  %320 = vst.msk [vmem:[#allocation2 + $0x80] sm:$0xff] %vm302_vm0, %v2748_v0  ;;  %v234_v1 = vld [vmem:[%s233_s7] sm:$0xff]  ;;  %s2756_s15 = smov 32   ;;  %s2757_s24 = smov [#allocation5]  }
  0x1e   : > { %322 = vst.msk [vmem:[#allocation2 + $0x90] sm:$0xff] %vm302_vm0, %v2748_v0  ;;  %323 = vst.msk [vmem:[#allocation2 + $0x98] sm:$0xff] %vm302_vm0, %v2748_v0  ;;  %238 = vxpose.xlu0.b32.start.end [1/1] (short) %v234_v1, 128  ;;  %v236_v10 = vcombine.high %v234_v1, %v234_v1  ;;  %s2656_s28 = sshll.u32 %s2757_s24, 4  ;;  %s2657_s28 = int_to_ptr.vmem [resolvable:$false] %s2656_s28 }
  0x1f   : > { %325 = vst.msk [vmem:[#allocation2 + $0xa8] sm:$0xff] %vm302_vm0, %v2748_v0  ;;  %326 = vst.msk [vmem:[#allocation2 + $0xb0] sm:$0xff] %vm302_vm0, %v2748_v0  ;;  %s2658_s29 = scalar_lea.vmem %s2657_s28, 64 }
  0x20   : > { %328 = vst.msk [vmem:[#allocation2 + $0xc0] sm:$0xff] %vm302_vm0, %v2748_v0  ;;  %329 = vst.msk [vmem:[#allocation2 + $0xc8] sm:$0xff] %vm302_vm0, %v2748_v0  ;;  %v2898_v2 = vld [vmem:[#allocation2] sm:$0xff]  ;;  %v2900_v3 = vld [vmem:[#allocation2 + $0x8] sm:$0xff] }
  0x21   : > { %331 = vst.msk [vmem:[#allocation2 + $0xd8] sm:$0xff] %vm302_vm0, %v2748_v0  ;;  %332 = vst.msk [vmem:[#allocation2 + $0xe0] sm:$0xff] %vm302_vm0, %v2748_v0  ;;  %v494_v4 = vrot.slane %v2898_v2, 1  ;;  %v495_v5 = vrot.slane %v2900_v3, 1 }
  0x22   : > { %334 = vst.msk [vmem:[#allocation2 + $0xf0] sm:$0xff] %vm302_vm0, %v2748_v0  ;;  %335 = vst.msk [vmem:[#allocation2 + $0xf8] sm:$0xff] %vm302_vm0, %v2748_v0 }
  0x23   : > { %337 = vst.msk [vmem:[#allocation2 + $0x108] sm:$0xff] %vm302_vm0, %v2748_v0  ;;  %338 = vst.msk [vmem:[#allocation2 + $0x110] sm:$0xff] %vm302_vm0, %v2748_v0  ;;  %v496_v6 = vsel %vm493_vm2, %v494_v4, %v495_v5 }
  0x24   : > { %340 = vst.msk [vmem:[#allocation2 + $0x120] sm:$0xff] %vm302_vm0, %v2748_v0  ;;  %341 = vst.msk [vmem:[#allocation2 + $0x128] sm:$0xff] %vm302_vm0, %v2748_v0  ;;  %574 = vrot.lane.b32.xlu1 %v496_v6, %s2749_s8 }
  0x25   : > { %343 = vst.msk [vmem:[#allocation2 + $0x138] sm:$0xff] %vm302_vm0, %v2748_v0  ;;  %344 = vst.msk [vmem:[#allocation2 + $0x140] sm:$0xff] %vm302_vm0, %v2748_v0 }
  0x26   : > { %346 = vst.msk [vmem:[#allocation2 + $0x150] sm:$0xff] %vm302_vm0, %v2748_v0  ;;  %347 = vst.msk [vmem:[#allocation2 + $0x158] sm:$0xff] %vm302_vm0, %v2748_v0 }
  0x27   : > { %349 = vst.msk [vmem:[#allocation2 + $0x168] sm:$0xff] %vm302_vm0, %v2748_v0  ;;  %350 = vst.msk [vmem:[#allocation2 + $0x170] sm:$0xff] %vm302_vm0, %v2748_v0 }
  0x28   : > { %352 = vst.msk [vmem:[#allocation2 + $0x180] sm:$0xff] %vm302_vm0, %v2748_v0  ;;  %353 = vst.msk [vmem:[#allocation2 + $0x188] sm:$0xff] %vm302_vm0, %v2748_v0 }
  0x29   : > { %355 = vst.msk [vmem:[#allocation2 + $0x198] sm:$0xff] %vm302_vm0, %v2748_v0  ;;  %356 = vst.msk [vmem:[#allocation2 + $0x1a0] sm:$0xff] %vm302_vm0, %v2748_v0 }
  0x2a   : > { %309 = vst.msk [vmem:[#allocation2 + $0x28] sm:$0x3] %vm305_vm1, %v2748_v0  ;;  %306 = vst.msk [vmem:[#allocation2 + $0x10] sm:$0x3] %vm305_vm1, %v2748_v0 }
  0x2b   : > { %312 = vst.msk [vmem:[#allocation2 + $0x40] sm:$0x3] %vm305_vm1, %v2748_v0  ;;  %315 = vst.msk [vmem:[#allocation2 + $0x58] sm:$0x3] %vm305_vm1, %v2748_v0 }
  0x2c   : > { %318 = vst.msk [vmem:[#allocation2 + $0x70] sm:$0x3] %vm305_vm1, %v2748_v0  ;;  %321 = vst.msk [vmem:[#allocation2 + $0x88] sm:$0x3] %vm305_vm1, %v2748_v0 }
  0x2d   : > { %324 = vst.msk [vmem:[#allocation2 + $0xa0] sm:$0x3] %vm305_vm1, %v2748_v0  ;;  %327 = vst.msk [vmem:[#allocation2 + $0xb8] sm:$0x3] %vm305_vm1, %v2748_v0 }
  0x2e   : > { %330 = vst.msk [vmem:[#allocation2 + $0xd0] sm:$0x3] %vm305_vm1, %v2748_v0  ;;  %333 = vst.msk [vmem:[#allocation2 + $0xe8] sm:$0x3] %vm305_vm1, %v2748_v0 }
  0x2f   : > { %336 = vst.msk [vmem:[#allocation2 + $0x100] sm:$0x3] %vm305_vm1, %v2748_v0  ;;  %339 = vst.msk [vmem:[#allocation2 + $0x118] sm:$0x3] %vm305_vm1, %v2748_v0 }
  0x30   : > { %342 = vst.msk [vmem:[#allocation2 + $0x130] sm:$0x3] %vm305_vm1, %v2748_v0  ;;  %345 = vst.msk [vmem:[#allocation2 + $0x148] sm:$0x3] %vm305_vm1, %v2748_v0 }
  0x31   : > { %348 = vst.msk [vmem:[#allocation2 + $0x160] sm:$0x3] %vm305_vm1, %v2748_v0  ;;  %351 = vst.msk [vmem:[#allocation2 + $0x178] sm:$0x3] %vm305_vm1, %v2748_v0  ;;  %v2906_v7 = vld [vmem:[#allocation2 + $0x10] sm:$0x3] }
  0x32   : > { %354 = vst.msk [vmem:[#allocation2 + $0x190] sm:$0x3] %vm305_vm1, %v2748_v0  ;;  %357 = vst.msk [vmem:[#allocation2 + $0x1a8] sm:$0x3] %vm305_vm1, %v2748_v0  ;;  %v497_v8 = vrot.slane %v2906_v7, 1 }
  0x34   : > { %v498_v9 = vsel %vm493_vm2, %v495_v5, %v497_v8 }
  0x35   : > { %576 = vrot.lane.b32.xlu1 %v498_v9, %s2749_s8 }
  0x5b   : > { %270 = vxpose.xlu0.b32.start.end [1/1] (short) %v236_v10, 128 }
  0x9e   : > { %v254_v11 = vpop.trf.xlu0 }
  0x9f   : > { %359 = vst.msk [vmem:[#allocation2 + $0x19] sm:$0xff] %vm302_vm0, %v254_v11 }
  0xa2   : > { %v255_v12 = vpop.trf.xlu0 }
  0xa3   : > { %360 = vst.msk [vmem:[#allocation2 + $0x21] sm:$0xff] %vm302_vm0, %v255_v12 }
  0xa6   : > { %v256_v13 = vpop.trf.xlu0  ;;  %v2914_v14 = vld [vmem:[#allocation2 + $0x18] sm:$0xff] }
  0xa7   : > { %361 = vst.msk [vmem:[#allocation2 + $0x31] sm:$0xff] %vm302_vm0, %v256_v13  ;;  %v499_v18 = vrot.slane %v2914_v14, 1 }
  0xaa   : > { %v257_v15 = vpop.trf.xlu0  ;;  %v2916_v16 = vld [vmem:[#allocation2 + $0x20] sm:$0xff]  ;;  %v2918_v17 = vld [vmem:[#allocation2 + $0x28] sm:$0x3] }
  0xab   : > { %362 = vst.msk [vmem:[#allocation2 + $0x39] sm:$0xff] %vm302_vm0, %v257_v15  ;;  %v500_v19 = vrot.slane %v2916_v16, 1  ;;  %v502_v21 = vrot.slane %v2918_v17, 1 }
  0xad   : > { %v2924_v20 = vsel %vm493_vm2, %v499_v18, %v500_v19  ;;  %v2933_v24 = vsel %vm493_vm2, %v500_v19, %v502_v21 }
  0xae   : > { %578 = vrot.lane.b32.xlu1 %v2924_v20, %s2749_s8  ;;  %v258_v22 = vpop.trf.xlu0  ;;  %v2930_v23 = vld [vmem:[#allocation2 + $0x30] sm:$0xff] }
  0xaf   : > { %363 = vst.msk [vmem:[#allocation2 + $0x49] sm:$0xff] %vm302_vm0, %v258_v22  ;;  %v504_v28 = vrot.slane %v2930_v23, 1 }
  0xb2   : > { %580 = vrot.lane.b32.xlu1 %v2933_v24, %s2749_s8  ;;  %v259_v25 = vpop.trf.xlu0  ;;  %v2937_v26 = vld [vmem:[#allocation2 + $0x38] sm:$0xff]  ;;  %v2939_v27 = vld [vmem:[#allocation2 + $0x40] sm:$0x3] }
  0xb3   : > { %364 = vst.msk [vmem:[#allocation2 + $0x51] sm:$0xff] %vm302_vm0, %v259_v25  ;;  %v505_v29 = vrot.slane %v2937_v26, 1  ;;  %v507_v31 = vrot.slane %v2939_v27, 1 }
  0xb5   : > { %v2945_v30 = vsel %vm493_vm2, %v504_v28, %v505_v29  ;;  %v2954_v34 = vsel %vm493_vm2, %v505_v29, %v507_v31 }
  0xb6   : > { %582 = vrot.lane.b32.xlu1 %v2945_v30, %s2749_s8  ;;  %v260_v32 = vpop.trf.xlu0  ;;  %v2951_v33 = vld [vmem:[#allocation2 + $0x48] sm:$0xff] }
  0xb7   : > { %365 = vst.msk [vmem:[#allocation2 + $0x61] sm:$0xff] %vm302_vm0, %v260_v32  ;;  %v509_v38 = vrot.slane %v2951_v33, 1 }
  0xba   : > { %584 = vrot.lane.b32.xlu1 %v2954_v34, %s2749_s8  ;;  %v261_v35 = vpop.trf.xlu0  ;;  %v2958_v36 = vld [vmem:[#allocation2 + $0x50] sm:$0xff]  ;;  %v2960_v37 = vld [vmem:[#allocation2 + $0x58] sm:$0x3] }
  0xbb   : > { %366 = vst.msk [vmem:[#allocation2 + $0x69] sm:$0xff] %vm302_vm0, %v261_v35  ;;  %v510_v39 = vrot.slane %v2958_v36, 1  ;;  %v512_v41 = vrot.slane %v2960_v37, 1 }
  0xbd   : > { %v2966_v40 = vsel %vm493_vm2, %v509_v38, %v510_v39  ;;  %v2975_v44 = vsel %vm493_vm2, %v510_v39, %v512_v41 }
  0xbe   : > { %586 = vrot.lane.b32.xlu1 %v2966_v40, %s2749_s8  ;;  %v262_v42 = vpop.trf.xlu0  ;;  %v2972_v43 = vld [vmem:[#allocation2 + $0x60] sm:$0xff] }
  0xbf   : > { %367 = vst.msk [vmem:[#allocation2 + $0x79] sm:$0xff] %vm302_vm0, %v262_v42  ;;  %v514_v48 = vrot.slane %v2972_v43, 1 }
  0xc2   : > { %588 = vrot.lane.b32.xlu1 %v2975_v44, %s2749_s8  ;;  %v263_v45 = vpop.trf.xlu0  ;;  %v2979_v46 = vld [vmem:[#allocation2 + $0x68] sm:$0xff]  ;;  %v2981_v47 = vld [vmem:[#allocation2 + $0x70] sm:$0x3] }
  0xc3   : > { %368 = vst.msk [vmem:[#allocation2 + $0x81] sm:$0xff] %vm302_vm0, %v263_v45  ;;  %v515_v49 = vrot.slane %v2979_v46, 1  ;;  %v517_v51 = vrot.slane %v2981_v47, 1 }
  0xc5   : > { %v2987_v50 = vsel %vm493_vm2, %v514_v48, %v515_v49  ;;  %v2996_v54 = vsel %vm493_vm2, %v515_v49, %v517_v51 }
  0xc6   : > { %590 = vrot.lane.b32.xlu1 %v2987_v50, %s2749_s8  ;;  %v264_v52 = vpop.trf.xlu0  ;;  %v2993_v53 = vld [vmem:[#allocation2 + $0x78] sm:$0xff] }
  0xc7   : > { %369 = vst.msk [vmem:[#allocation2 + $0x91] sm:$0xff] %vm302_vm0, %v264_v52  ;;  %v519_v58 = vrot.slane %v2993_v53, 1 }
  0xca   : > { %592 = vrot.lane.b32.xlu1 %v2996_v54, %s2749_s8  ;;  %v265_v55 = vpop.trf.xlu0  ;;  %v3000_v56 = vld [vmem:[#allocation2 + $0x80] sm:$0xff]  ;;  %v408_v57 = vld [vmem:[#allocation2 + $0x88] sm:$0x3] }
  0xcb   : > { %370 = vst.msk [vmem:[#allocation2 + $0x99] sm:$0xff] %vm302_vm0, %v265_v55  ;;  %v520_v59 = vrot.slane %v3000_v56, 1  ;;  %v522_v61 = vrot.slane %v408_v57, 1  ;;  %v4883_v51 = vrot.slane %v3000_v56, 2  ;;  %v699_v52 = vrot.slane %v408_v57, 2 }
  0xcd   : > { %v3006_v60 = vsel %vm493_vm2, %v519_v58, %v520_v59  ;;  %v3014_v0 = vsel %vm493_vm2, %v520_v59, %v522_v61 }
  0xce   : > { %594 = vrot.lane.b32.xlu1 %v3006_v60, %s2749_s8  ;;  %v266_v62 = vpop.trf.xlu0  ;;  %v3011_v63 = vld [vmem:[#allocation2 + $0x90] sm:$0xff] }
  0xcf   : > { %371 = vst.msk [vmem:[#allocation2 + $0xa9] sm:$0xff] %vm302_vm0, %v266_v62  ;;  %v524_v6 = vrot.slane %v3011_v63, 1  ;;  %v3077_v62 = vsel %vm670_vm3, %v4883_v51, %v699_v52 }
  0xd0   : > { %4962 = vst [vmem:[#allocation12_spill] sm:$0xff] %v3077_v62 }
  0xd2   : > { %596 = vrot.lane.b32.xlu1 %v3014_v0, %s2749_s8  ;;  %v267_v1 = vpop.trf.xlu0  ;;  %v3018_v4 = vld [vmem:[#allocation2 + $0x98] sm:$0xff]  ;;  %v411_v5 = vld [vmem:[#allocation2 + $0xa0] sm:$0x3] }
  0xd3   : > { %372 = vst.msk [vmem:[#allocation2 + $0xb1] sm:$0xff] %vm302_vm0, %v267_v1  ;;  %v525_v8 = vrot.slane %v3018_v4, 1  ;;  %v527_v10 = vrot.slane %v411_v5, 1  ;;  %v4881_v58 = vrot.slane %v3018_v4, 2  ;;  %v704_v59 = vrot.slane %v411_v5, 2 }
  0xd5   : > { %v3024_v9 = vsel %vm493_vm2, %v524_v6, %v525_v8  ;;  %v3032_v13 = vsel %vm493_vm2, %v525_v8, %v527_v10  ;;  %v3089_v10 = vsel %vm670_vm3, %v4881_v58, %v704_v59 }
  0xd6   : > { %4959 = vst [vmem:[#allocation9_spill] sm:$0xff] %v3024_v9  ;;  %598 = vrot.lane.b32.xlu1 %v3024_v9, %s2749_s8  ;;  %v268_v11 = vpop.trf.xlu0  ;;  %v3029_v12 = vld [vmem:[#allocation2 + $0xa8] sm:$0xff]  ;;  %4963 = vst [vmem:[#allocation13_spill] sm:$0xff] %v3089_v10  ;;  %v672_v9 = vrot.slane %v2900_v3, 2 }
  0xd7   : > { %373 = vst.msk [vmem:[#allocation2 + $0xc1] sm:$0xff] %vm302_vm0, %v268_v11  ;;  %v529_v21 = vrot.slane %v3029_v12, 1 }
  0xda   : > { %600 = vrot.lane.b32.xlu1 %v3032_v13, %s2749_s8  ;;  %v269_v15 = vpop.trf.xlu0  ;;  %v3036_v18 = vld [vmem:[#allocation2 + $0xb0] sm:$0xff]  ;;  %v414_v19 = vld [vmem:[#allocation2 + $0xb8] sm:$0x3] }
  0xdb   : > { %374 = vst.msk [vmem:[#allocation2 + $0xc9] sm:$0xff] %vm302_vm0, %v269_v15  ;;  %v530_v22 = vrot.slane %v3036_v18, 1  ;;  %v532_v28 = vrot.slane %v414_v19, 1  ;;  %v4880_v15 = vrot.slane %v3036_v18, 2 }
  0xdd   : > { %v3042_v25 = vsel %vm493_vm2, %v529_v21, %v530_v22  ;;  %v3050_v32 = vsel %vm493_vm2, %v530_v22, %v532_v28  ;;  %v709_v21 = vrot.slane %v414_v19, 2 }
  0xde   : > { %4960 = vst [vmem:[#allocation10_spill] sm:$0xff] %v3042_v25  ;;  %602 = vrot.lane.b32.xlu1 %v3042_v25, %s2749_s8  ;;  %v286_v29 = vpop.trf.xlu0  ;;  %v3047_v31 = vld [vmem:[#allocation2 + $0xc0] sm:$0xff] }
  0xdf   : > { %375 = vst.msk [vmem:[#allocation2 + $0xd9] sm:$0xff] %vm302_vm0, %v286_v29  ;;  %v534_v41 = vrot.slane %v3047_v31, 1 }
  0xe2   : > { %604 = vrot.lane.b32.xlu1 %v3050_v32, %s2749_s8  ;;  %v287_v35 = vpop.trf.xlu0  ;;  %v3054_v38 = vld [vmem:[#allocation2 + $0xc8] sm:$0xff]  ;;  %v417_v39 = vld [vmem:[#allocation2 + $0xd0] sm:$0x3] }
  0xe3   : > { %376 = vst.msk [vmem:[#allocation2 + $0xe1] sm:$0xff] %vm302_vm0, %v287_v35  ;;  %v535_v42 = vrot.slane %v3054_v38, 1  ;;  %v537_v45 = vrot.slane %v417_v39, 1  ;;  %v4879_v29 = vrot.slane %v3054_v38, 2  ;;  %v714_v35 = vrot.slane %v417_v39, 2 }
  0xe5   : > { %v3060_v48 = vsel %vm493_vm2, %v534_v41, %v535_v42  ;;  %v3063_v49 = vsel %vm493_vm2, %v535_v42, %v537_v45  ;;  %v3106_v42 = vsel %vm670_vm3, %v4880_v15, %v709_v21 }
  0xe6   : > { %4961 = vst [vmem:[#allocation11_spill] sm:$0xff] %v3060_v48  ;;  %606 = vrot.lane.b32.xlu1 %v3060_v48, %s2749_s8  ;;  %608 = vrot.lane.b32.xlu0 %v3063_v49, %s2749_s8  ;;  %v288_v55 = vpop.trf.xlu0  ;;  %v3072_v61 = vld [vmem:[#allocation2 + $0xd8] sm:$0xff]  ;;  %4965 = vst [vmem:[#allocation15_spill] sm:$0xff] %v3106_v42  ;;  %v3240_v48 = vpop.permute.xlu1 %574 }
  0xe7   : > { %377 = vst.msk [vmem:[#allocation2 + $0xf1] sm:$0xff] %vm302_vm0, %v288_v55  ;;  %v539_v8 = vrot.slane %v3072_v61, 1  ;;  %4979 = vst [vmem:[#allocation29_spill] sm:$0xff] %v3240_v48 }
  0xea   : > { %773 = vrot.lane.b32.xlu0 %v3077_v62, %s2750_s9  ;;  %v289_v57 = vpop.trf.xlu0  ;;  %v3081_v1 = vld [vmem:[#allocation2 + $0xe0] sm:$0xff]  ;;  %v420_v6 = vld [vmem:[#allocation2 + $0xe8] sm:$0x3] }
  0xeb   : > { %378 = vst.msk [vmem:[#allocation2 + $0xf9] sm:$0xff] %vm302_vm0, %v289_v57  ;;  %v540_v5 = vrot.slane %v3081_v1, 1  ;;  %v542_v22 = vrot.slane %v420_v6, 1  ;;  %v3123_v57 = vsel %vm670_vm3, %v4879_v29, %v714_v35  ;;  %v719_v21 = vrot.slane %v420_v6, 2 }
  0xec   : > { %4966 = vst [vmem:[#allocation16_spill] sm:$0xff] %v3123_v57 }
  0xed   : > { %v3092_v11 = vsel %vm493_vm2, %v539_v8, %v540_v5  ;;  %v3109_v19 = vsel %vm493_vm2, %v540_v5, %v542_v22  ;;  %v4882_v5 = vrot.slane %v3081_v1, 2 }
  0xee   : > { %4964 = vst [vmem:[#allocation14_spill] sm:$0xff] %v3092_v11  ;;  %777 = vrot.lane.b32.xlu0 %v3089_v10, %s2750_s9  ;;  %610 = vrot.lane.b32.xlu1 %v3092_v11, %s2749_s8  ;;  %v290_v28 = vpop.trf.xlu0  ;;  %v3101_v41 = vld [vmem:[#allocation2 + $0xf0] sm:$0xff] }
  0xef   : > { %379 = vst.msk [vmem:[#allocation2 + $0x109] sm:$0xff] %vm302_vm0, %v290_v28  ;;  %v544_v55 = vrot.slane %v3101_v41, 1 }
  0xf2   : > { %781 = vrot.lane.b32.xlu0 %v3106_v42, %s2750_s9  ;;  %612 = vrot.lane.b32.xlu1 %v3109_v19, %s2749_s8  ;;  %v291_v45 = vpop.trf.xlu0  ;;  %v3115_v52 = vld [vmem:[#allocation2 + $0xf8] sm:$0xff]  ;;  %v423_v39 = vld [vmem:[#allocation2 + $0x100] sm:$0x3] }
  0xf3   : > { %380 = vst.msk [vmem:[#allocation2 + $0x111] sm:$0xff] %vm302_vm0, %v291_v45  ;;  %v545_v59 = vrot.slane %v3115_v52, 1  ;;  %v547_v22 = vrot.slane %v423_v39, 1  ;;  %v4888_v45 = vrot.slane %v3115_v52, 2  ;;  %v724_v35 = vrot.slane %v423_v39, 2 }
  0xf5   : > { %v3126_v8 = vsel %vm493_vm2, %v544_v55, %v545_v59  ;;  %v3140_v55 = vsel %vm670_vm3, %v4882_v5, %v719_v21  ;;  %v3143_v6 = vsel %vm493_vm2, %v545_v59, %v547_v22  ;;  %v3157_v59 = vsel %vm670_vm3, %v4888_v45, %v724_v35 }
  0xf6   : > { %4967 = vst [vmem:[#allocation17_spill] sm:$0xff] %v3126_v8  ;;  %785 = vrot.lane.b32.xlu0 %v3123_v57, %s2750_s9  ;;  %614 = vrot.lane.b32.xlu1 %v3126_v8, %s2749_s8  ;;  %v292_v28 = vpop.trf.xlu0  ;;  %v3135_v29 = vld [vmem:[#allocation2 + $0x108] sm:$0xff]  ;;  %4968 = vst [vmem:[#allocation18_spill] sm:$0xff] %v3140_v55 }
  0xf7   : > { %381 = vst.msk [vmem:[#allocation2 + $0x121] sm:$0xff] %vm302_vm0, %v292_v28  ;;  %v549_v58 = vrot.slane %v3135_v29, 1  ;;  %4969 = vst [vmem:[#allocation19_spill] sm:$0xff] %v3157_v59 }
  0xfa   : > { %789 = vrot.lane.b32.xlu0 %v3140_v55, %s2750_s9  ;;  %616 = vrot.lane.b32.xlu1 %v3143_v6, %s2749_s8  ;;  %v293_v28 = vpop.trf.xlu0  ;;  %v3149_v15 = vld [vmem:[#allocation2 + $0x110] sm:$0xff]  ;;  %v426_v39 = vld [vmem:[#allocation2 + $0x118] sm:$0x3] }
  0xfb   : > { %382 = vst.msk [vmem:[#allocation2 + $0x129] sm:$0xff] %vm302_vm0, %v293_v28  ;;  %v550_v21 = vrot.slane %v3149_v15, 1  ;;  %v4893_v5 = vrot.slane %v3149_v15, 2  ;;  %v729_v51 = vrot.slane %v426_v39, 2  ;;  %v552_v57 = vrot.slane %v426_v39, 1 }
  0xfd   : > { %v3160_v22 = vsel %vm493_vm2, %v549_v58, %v550_v21  ;;  %v3173_v58 = vsel %vm670_vm3, %v4893_v5, %v729_v51  ;;  %v3176_v35 = vsel %vm493_vm2, %v550_v21, %v552_v57 }
  0xfe   : > { %4970 = vst [vmem:[#allocation20_spill] sm:$0xff] %v3160_v22  ;;  %793 = vrot.lane.b32.xlu0 %v3157_v59, %s2750_s9  ;;  %618 = vrot.lane.b32.xlu1 %v3160_v22, %s2749_s8  ;;  %v294_v28 = vpop.trf.xlu0  ;;  %v3168_v42 = vld [vmem:[#allocation2 + $0x120] sm:$0xff]  ;;  %4971 = vst [vmem:[#allocation21_spill] sm:$0xff] %v3173_v58 }
  0xff   : > { %383 = vst.msk [vmem:[#allocation2 + $0x139] sm:$0xff] %vm302_vm0, %v294_v28  ;;  %4972 = vst [vmem:[#allocation22_spill] sm:$0xff] %v3176_v35  ;;  %v554_v51 = vrot.slane %v3168_v42, 1 }
 0x102   : > { %797 = vrot.lane.b32.xlu0 %v3173_v58, %s2750_s9  ;;  %620 = vrot.lane.b32.xlu1 %v3176_v35, %s2749_s8  ;;  %v295_v39 = vpop.trf.xlu0  ;;  %v3182_v45 = vld [vmem:[#allocation2 + $0x128] sm:$0xff]  ;;  %v429_v28 = vld [vmem:[#allocation2 + $0x130] sm:$0x3] }
 0x103   : > { %384 = vst.msk [vmem:[#allocation2 + $0x141] sm:$0xff] %vm302_vm0, %v295_v39  ;;  %v4900_v22 = vrot.slane %v3182_v45, 2  ;;  %v734_v10 = vrot.slane %v429_v28, 2  ;;  %v555_v57 = vrot.slane %v3182_v45, 1  ;;  %v557_v58 = vrot.slane %v429_v28, 1 }
 0x105   : > { %v3191_v21 = vsel %vm670_vm3, %v4900_v22, %v734_v10  ;;  %v3194_v5 = vsel %vm493_vm2, %v554_v51, %v555_v57  ;;  %v3204_v59 = vsel %vm493_vm2, %v555_v57, %v557_v58 }
 0x106   : > { %4973 = vst [vmem:[#allocation23_spill] sm:$0xff] %v3191_v21  ;;  %4974 = vst [vmem:[#allocation24_spill] sm:$0xff] %v3194_v5  ;;  %801 = vrot.lane.b32.xlu0 %v3191_v21, %s2750_s9  ;;  %622 = vrot.lane.b32.xlu1 %v3194_v5, %s2749_s8  ;;  %v296_v39 = vpop.trf.xlu0  ;;  %v3201_v35 = vld [vmem:[#allocation2 + $0x138] sm:$0xff] }
 0x107   : > { %385 = vst.msk [vmem:[#allocation2 + $0x151] sm:$0xff] %vm302_vm0, %v296_v39  ;;  %4975 = vst [vmem:[#allocation25_spill] sm:$0xff] %v3204_v59  ;;  %v559_v5 = vrot.slane %v3201_v35, 1 }
 0x10a   : > { %624 = vrot.lane.b32.xlu1 %v3204_v59, %s2749_s8  ;;  %v297_v10 = vpop.trf.xlu0  ;;  %v3208_v51 = vld [vmem:[#allocation2 + $0x140] sm:$0xff]  ;;  %v432_v28 = vld [vmem:[#allocation2 + $0x148] sm:$0x3] }
 0x10b   : > { %386 = vst.msk [vmem:[#allocation2 + $0x159] sm:$0xff] %vm302_vm0, %v297_v10  ;;  %v4911_v22 = vrot.slane %v3208_v51, 2  ;;  %v739_v21 = vrot.slane %v432_v28, 2  ;;  %v560_v39 = vrot.slane %v3208_v51, 1  ;;  %v562_v59 = vrot.slane %v432_v28, 1 }
 0x10d   : > { %v3217_v58 = vsel %vm670_vm3, %v4911_v22, %v739_v21  ;;  %v3220_v57 = vsel %vm493_vm2, %v559_v5, %v560_v39  ;;  %v3230_v8 = vsel %vm493_vm2, %v560_v39, %v562_v59 }
 0x10e   : > { %4976 = vst [vmem:[#allocation26_spill] sm:$0xff] %v3217_v58  ;;  %4977 = vst [vmem:[#allocation27_spill] sm:$0xff] %v3220_v57  ;;  %805 = vrot.lane.b32.xlu0 %v3217_v58, %s2750_s9  ;;  %626 = vrot.lane.b32.xlu1 %v3220_v57, %s2749_s8  ;;  %v298_v10 = vpop.trf.xlu0  ;;  %v3227_v11 = vld [vmem:[#allocation2 + $0x150] sm:$0xff] }
 0x10f   : > { %387 = vst.msk [vmem:[#allocation2 + $0x169] sm:$0xff] %vm302_vm0, %v298_v10  ;;  %4978 = vst [vmem:[#allocation28_spill] sm:$0xff] %v3230_v8  ;;  %v564_v57 = vrot.slane %v3227_v11, 1 }
 0x112   : > { %628 = vrot.lane.b32.xlu1 %v3230_v8, %s2749_s8  ;;  %v299_v5 = vpop.trf.xlu0  ;;  %v3234_v21 = vld [vmem:[#allocation2 + $0x158] sm:$0xff]  ;;  %v435_v28 = vld [vmem:[#allocation2 + $0x160] sm:$0x3] }
 0x113   : > { %388 = vst.msk [vmem:[#allocation2 + $0x171] sm:$0xff] %vm302_vm0, %v299_v5  ;;  %v4922_v22 = vrot.slane %v3234_v21, 2  ;;  %v744_v58 = vrot.slane %v435_v28, 2  ;;  %v565_v10 = vrot.slane %v3234_v21, 1  ;;  %v567_v8 = vrot.slane %v435_v28, 1 }
 0x115   : > { %v3245_v59 = vsel %vm670_vm3, %v4922_v22, %v744_v58  ;;  %v3248_v39 = vsel %vm493_vm2, %v564_v57, %v565_v10  ;;  %v3258_v48 = vsel %vm493_vm2, %v565_v10, %v567_v8  ;;  %v3262_v58 = vpop.permute.xlu1 %576 }
 0x116   : > { %4980 = vst [vmem:[#allocation30_spill] sm:$0xff] %v3245_v59  ;;  %4981 = vst [vmem:[#allocation31_spill] sm:$0xff] %v3248_v39  ;;  %809 = vrot.lane.b32.xlu0 %v3245_v59, %s2750_s9  ;;  %630 = vrot.lane.b32.xlu1 %v3248_v39, %s2749_s8  ;;  %v300_v5 = vpop.trf.xlu0  ;;  %v3255_v25 = vld [vmem:[#allocation2 + $0x168] sm:$0xff] }
 0x117   : > { %389 = vst.msk [vmem:[#allocation2 + $0x181] sm:$0xff] %vm302_vm0, %v300_v5  ;;  %4982 = vst [vmem:[#allocation32_spill] sm:$0xff] %v3258_v48  ;;  %v569_v62 = vrot.slane %v3255_v25, 1 }
 0x118   : > { %4983 = vst [vmem:[#allocation33_spill] sm:$0xff] %v3262_v58  ;;  %v671_v58 = vrot.slane %v2898_v2, 2 }
 0x11a   : > { %632 = vrot.lane.b32.xlu1 %v3258_v48, %s2749_s8  ;;  %v3264_v57 = vld [vmem:[#allocation2 + $0x170] sm:$0xff]  ;;  %v438_v28 = vld [vmem:[#allocation2 + $0x178] sm:$0x3]  ;;  %v301_v22 = vpop.trf.xlu0 }
 0x11b   : > { %v4935_v59 = vrot.slane %v3264_v57, 2  ;;  %v749_v39 = vrot.slane %v438_v28, 2  ;;  %v570_v5 = vrot.slane %v3264_v57, 1  ;;  %390 = vst.msk [vmem:[#allocation2 + $0x189] sm:$0xff] %vm302_vm0, %v301_v22  ;;  %v572_v48 = vrot.slane %v438_v28, 1 }
 0x11d   : > { %v3273_v8 = vsel %vm670_vm3, %v4935_v59, %v749_v39  ;;  %v3276_v10 = vsel %vm493_vm2, %v569_v62, %v570_v5  ;;  %v3287_v55 = vsel %vm493_vm2, %v570_v5, %v572_v48  ;;  %v673_v62 = vsel %vm670_vm3, %v671_v58, %v672_v9 }
 0x11e   : > { %4984 = vst [vmem:[#allocation34_spill] sm:$0xff] %v3273_v8  ;;  %4985 = vst [vmem:[#allocation35_spill] sm:$0xff] %v3276_v10  ;;  %813 = vrot.lane.b32.xlu0 %v3273_v8, %s2750_s9  ;;  %634 = vrot.lane.b32.xlu1 %v3276_v10, %s2749_s8  ;;  %v674_v39 = vrot.slane %v2906_v7, 2  ;;  %v677_v48 = vrot.slane %v2916_v16, 2  ;;  %v676_v7 = vrot.slane %v2914_v14, 2 }
 0x11f   : > { %4987 = vst [vmem:[#allocation37_spill] sm:$0xff] %v3287_v55 }
 0x120   : > { %v3284_v22 = vpop.permute.xlu1 %578  ;;  %v675_v2 = vsel %vm670_vm3, %v672_v9, %v674_v39  ;;  %v3311_v5 = vsel %vm670_vm3, %v676_v7, %v677_v48  ;;  %v682_v39 = vrot.slane %v2937_v26, 2 }
 0x121   : > { %4986 = vst [vmem:[#allocation36_spill] sm:$0xff] %v3284_v22  ;;  %v5025_v22 = vrot.slane %v3208_v51, 2 }
 0x122   : > { %851 = vrot.lane.b32.xlu0 %v2916_v16, %s2751_s10  ;;  %636 = vrot.lane.b32.xlu1 %v3287_v55, %s2749_s8  ;;  %v3332_v59 = vld [vmem:[#allocation2 + $0x190] sm:$0x3]  ;;  %s4783_s8 = sand.u32 1, %s2738_s19  }
 0x123   : > { %4993 = vst [vmem:[#allocation43_spill] sm:$0xff] %v3332_v59  ;;  %s2289_s21 = scalar_lea.sflag [#allocation6], %s4783_s8 }
 0x124   : > { %v3295_v28 = vpop.permute.xlu1 %580 }
 0x125   : > { %4988 = vst [vmem:[#allocation38_spill] sm:$0xff] %v3295_v28  ;;  %v5012_v28 = vrot.slane %v3081_v1, 2 }
 0x126   : > { %855 = vrot.lane.b32.xlu0 %v2937_v26, %s2751_s10  ;;  %751 = vrot.lane.b32.xlu1 %v673_v62, %s2750_s9  ;;  %v679_v62 = vrot.slane %v2918_v17, 2  ;;  %v3328_v17 = vld [vmem:[#allocation2 + $0x188] sm:$0xff] }
 0x127   : > { %4992 = vst [vmem:[#allocation42_spill] sm:$0xff] %v3328_v17  ;;  %v4941_v7 = vrot.slane %v3328_v17, 1 }
 0x128   : > { %v3301_v3 = vpop.permute.xlu1 %582  ;;  %v3321_v9 = vsel %vm670_vm3, %v677_v48, %v679_v62  ;;  %v949_v48 = vrot.slane %v3332_v59, 1 }
 0x129   : > { %4989 = vst [vmem:[#allocation39_spill] sm:$0xff] %v3301_v3 }
 0x12a   : > { %859 = vrot.lane.b32.xlu0 %v2958_v36, %s2751_s10  ;;  %753 = vrot.lane.b32.xlu1 %v675_v2, %s2750_s9  ;;  %v681_v2 = vrot.slane %v2930_v23, 2  ;;  %v3348_v8 = vsel %vm493_vm2, %v4941_v7, %v949_v48  ;;  %v689_v7 = vrot.slane %v2960_v37, 2  ;;  %v691_v37 = vrot.slane %v2972_v43, 2 }
 0x12b   : > { %4995 = vst [vmem:[#allocation45_spill] sm:$0xff] %v3348_v8  ;;  %v692_v8 = vrot.slane %v2979_v46, 2 }
 0x12c   : > { %v3308_v58 = vpop.permute.xlu1 %584  ;;  %v3338_v62 = vsel %vm670_vm3, %v681_v2, %v682_v39  ;;  %v687_v2 = vrot.slane %v2958_v36, 2 }
 0x12d   : > { %4990 = vst [vmem:[#allocation40_spill] sm:$0xff] %v3308_v58 }
 0x12e   : > { %863 = vrot.lane.b32.xlu0 %v2979_v46, %s2751_s10  ;;  %755 = vrot.lane.b32.xlu1 %v3311_v5, %s2750_s9 }
 0x130   : > { %v3318_v16 = vpop.permute.xlu1 %586 }
 0x131   : > { %4991 = vst [vmem:[#allocation41_spill] sm:$0xff] %v3318_v16  ;;  %v684_v16 = vrot.slane %v2939_v27, 2  ;;  %v686_v27 = vrot.slane %v2951_v33, 2 }
 0x132   : > { %867 = vrot.lane.b32.xlu0 %v3000_v56, %s2751_s10  ;;  %757 = vrot.lane.b32.xlu1 %v3321_v9, %s2750_s9 }
 0x133   : > { %v3353_v59 = vsel %vm670_vm3, %v682_v39, %v684_v16  ;;  %v3364_v48 = vsel %vm670_vm3, %v686_v27, %v687_v2  ;;  %v3374_v39 = vsel %vm670_vm3, %v687_v2, %v689_v7 }
 0x134   : > { %v3334_v55 = vpop.permute.xlu1 %588 }
 0x135   : > { %4994 = vst [vmem:[#allocation44_spill] sm:$0xff] %v3334_v55 }
 0x136   : > { %871 = vrot.lane.b32.xlu0 %v3018_v4, %s2751_s10  ;;  %759 = vrot.lane.b32.xlu1 %v3338_v62, %s2750_s9 }
 0x138   : > { %v3350_v58 = vpop.permute.xlu1 %590 }
 0x139   : > { %4996 = vst [vmem:[#allocation46_spill] sm:$0xff] %v3350_v58  ;;  %v3385_v58 = vsel %vm670_vm3, %v691_v37, %v692_v8  ;;  %v696_v37 = vrot.slane %v2993_v53, 2 }
 0x13a   : > { %875 = vrot.lane.b32.xlu0 %v3036_v18, %s2751_s10  ;;  %761 = vrot.lane.b32.xlu1 %v3353_v59, %s2750_s9 }
 0x13c   : > { %v3361_v55 = vpop.permute.xlu1 %592 }
 0x13d   : > { %4997 = vst [vmem:[#allocation47_spill] sm:$0xff] %v3361_v55 }
 0x13e   : > { %879 = vrot.lane.b32.xlu0 %v3054_v38, %s2751_s10  ;;  %763 = vrot.lane.b32.xlu1 %v3364_v48, %s2750_s9 }
 0x140   : > { %v3371_v16 = vpop.permute.xlu1 %594 }
 0x141   : > { %4998 = vst [vmem:[#allocation48_spill] sm:$0xff] %v3371_v16  ;;  %v694_v16 = vrot.slane %v2981_v47, 2 }
 0x142   : > { %883 = vrot.lane.b32.xlu0 %v3081_v1, %s2751_s10  ;;  %765 = vrot.lane.b32.xlu1 %v3374_v39, %s2750_s9 }
 0x143   : > { %v3395_v2 = vsel %vm670_vm3, %v692_v8, %v694_v16  ;;  %v701_v8 = vrot.slane %v3011_v63, 2 }
 0x144   : > { %v3382_v27 = vpop.permute.xlu1 %596 }
 0x145   : > { %4999 = vst [vmem:[#allocation49_spill] sm:$0xff] %v3382_v27  ;;  %v5002_v27 = vrot.slane %v3000_v56, 2 }
 0x146   : > { %887 = vrot.lane.b32.xlu0 %v3115_v52, %s2751_s10  ;;  %767 = vrot.lane.b32.xlu1 %v3385_v58, %s2750_s9 }
 0x147   : > { %v3407_v55 = vsel %vm670_vm3, %v696_v37, %v5002_v27  ;;  %v706_v27 = vrot.slane %v3029_v12, 2  ;;  %v5005_v37 = vrot.slane %v3036_v18, 2 }
 0x148   : > { %v3392_v7 = vpop.permute.xlu1 %598 }
 0x149   : > { %5000 = vst [vmem:[#allocation50_spill] sm:$0xff] %v3392_v7  ;;  %v5004_v7 = vrot.slane %v3018_v4, 2  ;;  %v711_v4 = vrot.slane %v3047_v31, 2 }
 0x14a   : > { %891 = vrot.lane.b32.xlu0 %v3149_v15, %s2751_s10  ;;  %769 = vrot.lane.b32.xlu1 %v3395_v2, %s2750_s9 }
 0x14b   : > { %v3419_v3 = vsel %vm670_vm3, %v701_v8, %v5004_v7  ;;  %v5008_v8 = vrot.slane %v3054_v38, 2 }
 0x14c   : > { %v3402_v47 = vpop.permute.xlu1 %600 }
 0x14d   : > { %5001 = vst [vmem:[#allocation51_spill] sm:$0xff] %v3402_v47  ;;  %v3429_v47 = vsel %vm670_vm3, %v706_v27, %v5005_v37  ;;  %v716_v27 = vrot.slane %v3072_v61, 2 }
 0x14e   : > { %895 = vrot.lane.b32.xlu0 %v3182_v45, %s2751_s10  ;;  %771 = vrot.lane.b32.xlu1 %v3407_v55, %s2750_s9 }
 0x150   : > { %v3414_v16 = vpop.permute.xlu1 %602 }
 0x151   : > { %5003 = vst [vmem:[#allocation52_spill] sm:$0xff] %v3414_v16  ;;  %v3443_v16 = vsel %vm670_vm3, %v711_v4, %v5008_v8  ;;  %v721_v4 = vrot.slane %v3101_v41, 2 }
 0x152   : > { %899 = vrot.lane.b32.xlu0 %v3208_v51, %s2751_s10  ;;  %775 = vrot.lane.b32.xlu1 %v3419_v3, %s2750_s9  ;;  %5009 = vst [vmem:[#allocation55_spill] sm:$0xff] %v3443_v16  ;;  %v746_v51 = vrot.slane %v3255_v25, 2 }
 0x154   : > { %v3431_v10 = vpop.permute.xlu1 %604 }
 0x155   : > { %5006 = vst [vmem:[#allocation53_spill] sm:$0xff] %v3431_v10 }
 0x156   : > { %903 = vrot.lane.b32.xlu0 %v3234_v21, %s2751_s10  ;;  %779 = vrot.lane.b32.xlu1 %v3429_v47, %s2750_s9 }
 0x158   : > { %v3438_v7 = vpop.permute.xlu0 %608  ;;  %v3450_v37 = vpop.permute.xlu1 %606 }
 0x159   : > { %5007 = vst [vmem:[#allocation54_spill] sm:$0xff] %v3438_v7  ;;  %5010 = vst [vmem:[#allocation56_spill] sm:$0xff] %v3450_v37  ;;  %v3457_v7 = vsel %vm670_vm3, %v716_v27, %v5012_v28  ;;  %v5016_v37 = vrot.slane %v3115_v52, 2  ;;  %v726_v28 = vrot.slane %v3135_v29, 2 }
 0x15a   : > { %907 = vrot.lane.b32.xlu0 %v3264_v57, %s2751_s10  ;;  %783 = vrot.lane.b32.xlu1 %v3443_v16, %s2750_s9  ;;  %5013 = vst [vmem:[#allocation58_spill] sm:$0xff] %v3457_v7 }
 0x15c   : > { %v3452_v10 = vpop.permute.xlu0 %773 }
 0x15d   : > { %5011 = vst [vmem:[#allocation57_spill] sm:$0xff] %v3452_v10  ;;  %v3471_v10 = vsel %vm670_vm3, %v721_v4, %v5016_v37  ;;  %v731_v37 = vrot.slane %v3168_v42, 2  ;;  %v5021_v4 = vrot.slane %v3182_v45, 2 }
 0x15e   : > { %787 = vrot.lane.b32.xlu1 %v3457_v7, %s2750_s9  ;;  %911 = vrot.lane.b32.xlu0 %v3328_v17, %s2751_s10 }
 0x160   : > { %v3464_v8 = vpop.permute.xlu1 %610  ;;  %v3466_v16 = vpop.permute.xlu0 %777 }
 0x161   : > { %5014 = vst [vmem:[#allocation59_spill] sm:$0xff] %v3464_v8  ;;  %5015 = vst [vmem:[#allocation60_spill] sm:$0xff] %v3466_v16  ;;  %v5018_v8 = vrot.slane %v3149_v15, 2 }
 0x162   : > { %791 = vrot.lane.b32.xlu1 %v3471_v10, %s2750_s9  ;;  %953 = vrot.lane.b32.xlu0 %v2933_v24, %s2752_s11 }
 0x163   : > { %v3483_v16 = vsel %vm670_vm3, %v726_v28, %v5018_v8  ;;  %v736_v8 = vrot.slane %v3201_v35, 2 }
 0x164   : > { %v3478_v27 = vpop.permute.xlu1 %612  ;;  %v3485_v17 = vpop.permute.xlu0 %781 }
 0x165   : > { %5017 = vst [vmem:[#allocation61_spill] sm:$0xff] %v3478_v27  ;;  %5019 = vst [vmem:[#allocation62_spill] sm:$0xff] %v3485_v17  ;;  %v3497_v27 = vsel %vm670_vm3, %v731_v37, %v5021_v4  ;;  %v741_v37 = vrot.slane %v3227_v11, 2 }
 0x166   : > { %795 = vrot.lane.b32.xlu1 %v3483_v16, %s2750_s9  ;;  %957 = vrot.lane.b32.xlu0 %v2954_v34, %s2752_s11  ;;  %5022 = vst [vmem:[#allocation64_spill] sm:$0xff] %v3497_v27 }
 0x168   : > { %v3492_v24 = vpop.permute.xlu1 %614  ;;  %v3504_v28 = vpop.permute.xlu0 %785 }
 0x169   : > { %5020 = vst [vmem:[#allocation63_spill] sm:$0xff] %v3492_v24  ;;  %5023 = vst [vmem:[#allocation65_spill] sm:$0xff] %v3504_v28  ;;  %v3511_v24 = vsel %vm670_vm3, %v736_v8, %v5025_v22  ;;  %v5031_v8 = vrot.slane %v3264_v57, 2 }
 0x16a   : > { %799 = vrot.lane.b32.xlu1 %v3497_v27, %s2750_s9  ;;  %961 = vrot.lane.b32.xlu0 %v2975_v44, %s2752_s11  ;;  %5026 = vst [vmem:[#allocation67_spill] sm:$0xff] %v3511_v24  ;;  %v5028_v27 = vrot.slane %v3234_v21, 2 }
 0x16c   : > { %v3506_v17 = vpop.permute.xlu1 %616  ;;  %v3523_v28 = vsel %vm670_vm3, %v741_v37, %v5028_v27 }
 0x16d   : > { %5024 = vst [vmem:[#allocation66_spill] sm:$0xff] %v3506_v17  ;;  %v3525_v17 = vpop.permute.xlu0 %789 }
 0x16e   : > { %803 = vrot.lane.b32.xlu1 %v3511_v24, %s2750_s9  ;;  %965 = vrot.lane.b32.xlu0 %v2996_v54, %s2752_s11  ;;  %5029 = vst [vmem:[#allocation69_spill] sm:$0xff] %v3525_v17 }
 0x170   : > { %v3518_v4 = vpop.permute.xlu1 %618 }
 0x171   : > { %5027 = vst [vmem:[#allocation68_spill] sm:$0xff] %v3518_v4  ;;  %v3537_v4 = vsel %vm670_vm3, %v746_v51, %v5031_v8  ;;  %v3543_v27 = vpop.permute.xlu0 %793 }
 0x172   : > { %807 = vrot.lane.b32.xlu1 %v3523_v28, %s2750_s9  ;;  %969 = vrot.lane.b32.xlu0 %v3014_v0, %s2752_s11  ;;  %5032 = vst [vmem:[#allocation71_spill] sm:$0xff] %v3543_v27 }
 0x174   : > { %v3532_v22 = vpop.permute.xlu1 %620 }
 0x175   : > { %5030 = vst [vmem:[#allocation70_spill] sm:$0xff] %v3532_v22  ;;  %v3553_v51 = vpop.permute.xlu0 %797 }
 0x176   : > { %811 = vrot.lane.b32.xlu1 %v3537_v4, %s2750_s9  ;;  %973 = vrot.lane.b32.xlu0 %v3032_v13, %s2752_s11  ;;  %5035 = vst [vmem:[#allocation74_spill] sm:$0xff] %v3553_v51  ;;  %s2411_s9 = sshll.u32 %s4783_s8, 4 }
 0x178   : > { %v3545_v37 = vpop.permute.xlu1 %622 }
 0x179   : > { %5033 = vst [vmem:[#allocation72_spill] sm:$0xff] %v3545_v37 }
 0x17a   : > { %849 = vrot.lane.b32.xlu1 %v2914_v14, %s2751_s10  ;;  %977 = vrot.lane.b32.xlu0 %v3050_v32, %s2752_s11  ;;  %v3565_v14 = vpop.permute.xlu0 %801 }
 0x17b   : > { %5037 = vst [vmem:[#allocation76_spill] sm:$0xff] %v3565_v14 }
 0x17c   : > { %v3551_v22 = vpop.permute.xlu1 %624 }
 0x17d   : > { %5034 = vst [vmem:[#allocation73_spill] sm:$0xff] %v3551_v22 }
 0x17e   : > { %853 = vrot.lane.b32.xlu1 %v2930_v23, %s2751_s10  ;;  %981 = vrot.lane.b32.xlu0 %v3063_v49, %s2752_s11 }
 0x180   : > { %v3559_v8 = vpop.permute.xlu1 %626  ;;  %v3573_v22 = vpop.permute.xlu0 %805 }
 0x181   : > { %5036 = vst [vmem:[#allocation75_spill] sm:$0xff] %v3559_v8  ;;  %5039 = vst [vmem:[#allocation78_spill] sm:$0xff] %v3573_v22 }
 0x182   : > { %857 = vrot.lane.b32.xlu1 %v2951_v33, %s2751_s10  ;;  %985 = vrot.lane.b32.xlu0 %v3109_v19, %s2752_s11 }
 0x184   : > { %v3567_v37 = vpop.permute.xlu1 %628 }
 0x185   : > { %5038 = vst [vmem:[#allocation77_spill] sm:$0xff] %v3567_v37 }
 0x186   : > { %861 = vrot.lane.b32.xlu1 %v2972_v43, %s2751_s10  ;;  %989 = vrot.lane.b32.xlu0 %v3143_v6, %s2752_s11 }
 0x188   : > { %v3575_v51 = vpop.permute.xlu1 %630  ;;  %v3581_v8 = vpop.permute.xlu0 %809 }
 0x189   : > { %5040 = vst [vmem:[#allocation79_spill] sm:$0xff] %v3575_v51  ;;  %5041 = vst [vmem:[#allocation80_spill] sm:$0xff] %v3581_v8 }
 0x18a   : > { %865 = vrot.lane.b32.xlu1 %v2993_v53, %s2751_s10  ;;  %1054 = vrot.lane.b32.xlu0 %v3321_v9, %s2753_s12 }
 0x18c   : > { %v3583_v37 = vpop.permute.xlu1 %632 }
 0x18d   : > { %5042 = vst [vmem:[#allocation81_spill] sm:$0xff] %v3583_v37 }
 0x18e   : > { %869 = vrot.lane.b32.xlu1 %v3011_v63, %s2751_s10  ;;  %1152 = vrot.lane.b32.xlu0 %v2937_v26, %s2754_s13 }
 0x190   : > { %v3589_v22 = vpop.permute.xlu1 %634  ;;  %v3591_v51 = vpop.permute.xlu0 %813 }
 0x191   : > { %5043 = vst [vmem:[#allocation82_spill] sm:$0xff] %v3589_v22  ;;  %5044 = vst [vmem:[#allocation83_spill] sm:$0xff] %v3591_v51 }
 0x192   : > { %873 = vrot.lane.b32.xlu1 %v3029_v12, %s2751_s10  ;;  %1254 = vrot.lane.b32.xlu0 %v2954_v34, %s2755_s14 }
 0x194   : > { %v3597_v9 = vpop.permute.xlu1 %636  ;;  %v3599_v8 = vpop.permute.xlu0 %851 }
 0x195   : > { %5045 = vst [vmem:[#allocation84_spill] sm:$0xff] %v3597_v9 }
 0x196   : > { %877 = vrot.lane.b32.xlu1 %v3047_v31, %s2751_s10  ;;  %1056 = vrot.lane.b32.xlu0 %v3338_v62, %s2753_s12 }
 0x198   : > { %v3605_v26 = vpop.permute.xlu1 %751  ;;  %v3607_v22 = vpop.permute.xlu0 %855 }
 0x19a   : > { %881 = vrot.lane.b32.xlu1 %v3072_v61, %s2751_s10  ;;  %1058 = vrot.lane.b32.xlu0 %v3353_v59, %s2753_s12 }
 0x19c   : > { %v3613_v34 = vpop.permute.xlu1 %753  ;;  %v3615_v51 = vpop.permute.xlu0 %859 }
 0x19d   : > { %5046 = vst [vmem:[#allocation85_spill] sm:$0xff] %v3615_v51 }
 0x19e   : > { %885 = vrot.lane.b32.xlu1 %v3101_v41, %s2751_s10  ;;  %1156 = vrot.lane.b32.xlu0 %v2958_v36, %s2754_s13 }
 0x1a0   : > { %v3621_v9 = vpop.permute.xlu1 %755  ;;  %v3623_v37 = vpop.permute.xlu0 %863 }
 0x1a1   : > { %5047 = vst [vmem:[#allocation86_spill] sm:$0xff] %v3623_v37 }
 0x1a2   : > { %889 = vrot.lane.b32.xlu1 %v3135_v29, %s2751_s10  ;;  %1258 = vrot.lane.b32.xlu0 %v2975_v44, %s2755_s14 }
 0x1a4   : > { %v3629_v14 = vpop.permute.xlu1 %757  ;;  %v3631_v27 = vpop.permute.xlu0 %867 }
 0x1a5   : > { %5048 = vst [vmem:[#allocation87_spill] sm:$0xff] %v3631_v27 }
 0x1a6   : > { %893 = vrot.lane.b32.xlu1 %v3168_v42, %s2751_s10  ;;  %1060 = vrot.lane.b32.xlu0 %v3364_v48, %s2753_s12 }
 0x1a8   : > { %v3637_v36 = vpop.permute.xlu1 %759  ;;  %v3639_v17 = vpop.permute.xlu0 %871 }
 0x1a9   : > { %5049 = vst [vmem:[#allocation88_spill] sm:$0xff] %v3639_v17 }
 0x1aa   : > { %897 = vrot.lane.b32.xlu1 %v3201_v35, %s2751_s10  ;;  %1062 = vrot.lane.b32.xlu0 %v3374_v39, %s2753_s12 }
 0x1ac   : > { %v3645_v44 = vpop.permute.xlu1 %761  ;;  %v3647_v24 = vpop.permute.xlu0 %875 }
 0x1ad   : > { %5050 = vst [vmem:[#allocation89_spill] sm:$0xff] %v3645_v44  ;;  %5051 = vst [vmem:[#allocation90_spill] sm:$0xff] %v3647_v24  ;;  %v3665_v24 = vld [vmem:[#allocation2 + $0x180] sm:$0xff]  ;;  %v1714_v44 = vld [vmem:[%s4874_s1 + $0x10] sm:$0xff] }
 0x1ae   : > { %901 = vrot.lane.b32.xlu1 %v3227_v11, %s2751_s10  ;;  %1160 = vrot.lane.b32.xlu0 %v2979_v46, %s2754_s13  ;;  %5056 = vst [vmem:[#allocation95_spill] sm:$0xff] %v3665_v24 }
 0x1b0   : > { %v3653_v27 = vpop.permute.xlu1 %763  ;;  %v3655_v37 = vpop.permute.xlu0 %879 }
 0x1b1   : > { %5052 = vst [vmem:[#allocation91_spill] sm:$0xff] %v3653_v27  ;;  %5053 = vst [vmem:[#allocation92_spill] sm:$0xff] %v3655_v37 }
 0x1b2   : > { %905 = vrot.lane.b32.xlu1 %v3255_v25, %s2751_s10  ;;  %1262 = vrot.lane.b32.xlu0 %v2996_v54, %s2755_s14 }
 0x1b4   : > { %v3661_v35 = vpop.permute.xlu1 %765  ;;  %v3663_v17 = vpop.permute.xlu0 %883 }
 0x1b5   : > { %5054 = vst [vmem:[#allocation93_spill] sm:$0xff] %v3661_v35  ;;  %5055 = vst [vmem:[#allocation94_spill] sm:$0xff] %v3663_v17  ;;  %v5077_v35 = vld [vmem:[#allocation17_spill] sm:$0xff] }
 0x1b6   : > { %909 = vrot.lane.b32.xlu1 %v3665_v24, %s2751_s10  ;;  %1064 = vrot.lane.b32.xlu0 %v3385_v58, %s2753_s12  ;;  %s4790_s10 = scalar_lea.vmem [#allocation3], %s2411_s9 }
 0x1b8   : > { %v3671_v46 = vpop.permute.xlu1 %767  ;;  %v3673_v37 = vpop.permute.xlu0 %887 }
 0x1b9   : > { %5057 = vst [vmem:[#allocation96_spill] sm:$0xff] %v3671_v46  ;;  %5058 = vst [vmem:[#allocation97_spill] sm:$0xff] %v3673_v37 }
 0x1ba   : > { %951 = vrot.lane.b32.xlu1 %v2924_v20, %s2752_s11  ;;  %1066 = vrot.lane.b32.xlu0 %v3395_v2, %s2753_s12 }
 0x1bc   : > { %v3679_v54 = vpop.permute.xlu1 %769  ;;  %v3681_v25 = vpop.permute.xlu0 %891 }
 0x1bd   : > { %5059 = vst [vmem:[#allocation98_spill] sm:$0xff] %v3679_v54  ;;  %5060 = vst [vmem:[#allocation99_spill] sm:$0xff] %v3681_v25  ;;  %v5067_v25 = vld [vmem:[#allocation18_spill] sm:$0xff] }
 0x1be   : > { %955 = vrot.lane.b32.xlu1 %v2945_v30, %s2752_s11  ;;  %1164 = vrot.lane.b32.xlu0 %v3000_v56, %s2754_s13 }
 0x1c0   : > { %v3687_v17 = vpop.permute.xlu1 %771  ;;  %v3689_v46 = vpop.permute.xlu0 %895 }
 0x1c1   : > { %5061 = vst [vmem:[#allocation100_spill] sm:$0xff] %v3687_v17  ;;  %5062 = vst [vmem:[#allocation101_spill] sm:$0xff] %v3689_v46  ;;  %v5070_v17 = vld [vmem:[#allocation9_spill] sm:$0xff] }
 0x1c2   : > { %959 = vrot.lane.b32.xlu1 %v2966_v40, %s2752_s11  ;;  %1084 = vrot.lane.b32.xlu0 %v3457_v7, %s2753_s12  ;;  %v5071_v7 = vld [vmem:[#allocation12_spill] sm:$0xff] }
 0x1c4   : > { %v3695_v20 = vpop.permute.xlu1 %775  ;;  %v3697_v37 = vpop.permute.xlu0 %899 }
 0x1c5   : > { %5063 = vst [vmem:[#allocation102_spill] sm:$0xff] %v3695_v20  ;;  %5064 = vst [vmem:[#allocation103_spill] sm:$0xff] %v3697_v37 }
 0x1c6   : > { %963 = vrot.lane.b32.xlu1 %v2987_v50, %s2752_s11  ;;  %1365 = vrot.lane.b32.xlu0 %v3407_v55, %s2756_s15 }
 0x1c8   : > { %v3703_v56 = vpop.permute.xlu1 %779  ;;  %v3705_v46 = vpop.permute.xlu0 %903 }
 0x1c9   : > { %5065 = vst [vmem:[#allocation104_spill] sm:$0xff] %v3703_v56  ;;  %5066 = vst [vmem:[#allocation105_spill] sm:$0xff] %v3705_v46  ;;  %v5074_v46 = vld [vmem:[#allocation10_spill] sm:$0xff] }
 0x1ca   : > { %967 = vrot.lane.b32.xlu1 %v3006_v60, %s2752_s11  ;;  %1086 = vrot.lane.b32.xlu0 %v5067_v25, %s2753_s12 }
 0x1cc   : > { %v3711_v20 = vpop.permute.xlu1 %783  ;;  %v3713_v37 = vpop.permute.xlu0 %907 }
 0x1cd   : > { %5068 = vst [vmem:[#allocation106_spill] sm:$0xff] %v3711_v20  ;;  %5069 = vst [vmem:[#allocation107_spill] sm:$0xff] %v3713_v37  ;;  %v5076_v37 = vld [vmem:[#allocation11_spill] sm:$0xff] }
 0x1ce   : > { %971 = vrot.lane.b32.xlu1 %v5070_v17, %s2752_s11  ;;  %1367 = vrot.lane.b32.xlu0 %v5071_v7, %s2756_s15 }
 0x1d0   : > { %v3719_v54 = vpop.permute.xlu1 %787  ;;  %v3721_v56 = vpop.permute.xlu0 %911 }
 0x1d1   : > { %5072 = vst [vmem:[#allocation9_spill] sm:$0xff] %v3719_v54  ;;  %5073 = vst [vmem:[#allocation12_spill] sm:$0xff] %v3721_v56  ;;  %v1712_v56 = vld [vmem:[%s4874_s1] sm:$0xff] }
 0x1d2   : > { %975 = vrot.lane.b32.xlu1 %v5074_v46, %s2752_s11  ;;  %1166 = vrot.lane.b32.xlu0 %v3011_v63, %s2754_s13  ;;  %v1713_v63 = vld [vmem:[%s4874_s1 + $0x8] sm:$0xff] }
 0x1d3   : > { %v2552_v24 = vpack.c.bf16 %v1713_v63, %v1712_v56 }
 0x1d4   : > { %v3727_v25 = vpop.permute.xlu1 %791  ;;  %v3729_v20 = vpop.permute.xlu0 %953 }
 0x1d5   : > { %5075 = vst [vmem:[#allocation10_spill] sm:$0xff] %v3727_v25  ;;  %v5079_v25 = vld [vmem:[#allocation14_spill] sm:$0xff]  ;;  %2553 = vmatprep.subr.bf16.mxu0 %v2552_v24  ;;  %2560 = vmatprep.subr.bf16.mxu1 %v2552_v24 }
 0x1d6   : > { %979 = vrot.lane.b32.xlu1 %v5076_v37, %s2752_s11  ;;  %1284 = vrot.lane.b32.xlu0 %v5077_v35, %s2755_s14  ;;  %v1715_v37 = vld [vmem:[%s4874_s1 + $0x18] sm:$0xff] }
 0x1d7   : > { %2555 = vmatpush3.bf16.msra.mxu0 %v2552_v24  ;;  %2563 = vmatpush3.bf16.msra.mxu1 %v2552_v24  ;;  %v1716_v24 = vld [vmem:[%s4874_s1 + $0x20] sm:$0xf] }
 0x1d8   : > { %v3735_v27 = vpop.permute.xlu1 %795  ;;  %v3737_v54 = vpop.permute.xlu0 %957 }
 0x1d9   : > { %5078 = vst [vmem:[#allocation17_spill] sm:$0xff] %v3735_v27 }
 0x1da   : > { %983 = vrot.lane.b32.xlu1 %v5079_v25, %s2752_s11  ;;  %1268 = vrot.lane.b32.xlu0 %v5070_v17, %s2755_s14  ;;  %v2556_v17 = vpack.c.bf16 %v1715_v37, %v1714_v44 }
 0x1dc   : > { %v3749_v51 = vpop.permute.xlu1 %799  ;;  %v3751_v27 = vpop.permute.xlu0 %961  ;;  %2557 = vmatprep.subr.bf16.mxu0 %v2556_v17  ;;  %2561 = vmatprep.subr.bf16.mxu1 %v2556_v17 }
 0x1dd   : > { %5080 = vst [vmem:[#allocation14_spill] sm:$0xff] %v3749_v51  ;;  %2559 = vmatpush3.bf16.msra.mxu0 %v2556_v17  ;;  %2564 = vmatpush3.bf16.msra.mxu1 %v2556_v17 }
 0x1de   : > { %987 = vrot.lane.b32.xlu1 %v5077_v35, %s2752_s11  ;;  %1385 = vrot.lane.b32.xlu0 %v3471_v10, %s2756_s15 }
 0x1df   : > { %2502 = vmatprep.subr.msk.mxu0 %vm1814_vm4, %v1716_v24  ;;  %2562 = vmatprep.subr.msk.mxu1 %vm1814_vm4, %v1716_v24 }
 0x1e0   : > { %v3763_v56 = vpop.permute.xlu1 %803  ;;  %v3765_v63 = vpop.permute.xlu0 %965 }
 0x1e1   : > { %5081 = vst [vmem:[#allocation108_spill] sm:$0xff] %v3763_v56  ;;  %2503 = vmatpush3.msk.msra.mxu0 %vm1814_vm4, %v1716_v24  ;;  %2565 = vmatpush3.msk.msra.mxu1 %vm1814_vm4, %v1716_v24 }
 0x1e2   : > { %1052 = vrot.lane.b32.xlu1 %v3311_v5, %s2753_s12  ;;  %1270 = vrot.lane.b32.xlu0 %v3032_v13, %s2755_s14  ;;  %v5084_v5 = vld [vmem:[#allocation19_spill] sm:$0xff] }
 0x1e4   : > { %v3774_v37 = vpop.permute.xlu1 %807  ;;  %v3776_v44 = vpop.permute.xlu0 %969 }
 0x1e5   : > { %5082 = vst [vmem:[#allocation109_spill] sm:$0xff] %v3774_v37  ;;  %5083 = vst [vmem:[#allocation110_spill] sm:$0xff] %v3776_v44 }
 0x1e6   : > { %1150 = vrot.lane.b32.xlu1 %v2930_v23, %s2754_s13  ;;  %1387 = vrot.lane.b32.xlu0 %v5084_v5, %s2756_s15  ;;  %v5088_v23 = vld [vmem:[#allocation13_spill] sm:$0xff] }
 0x1e8   : > { %v3782_v13 = vpop.permute.xlu1 %811  ;;  %v3784_v35 = vpop.permute.xlu0 %973 }
 0x1e9   : > { %5085 = vst [vmem:[#allocation19_spill] sm:$0xff] %v3782_v13  ;;  %5086 = vst [vmem:[#allocation111_spill] sm:$0xff] %v3784_v35 }
 0x1ea   : > { %1252 = vrot.lane.b32.xlu1 %v2945_v30, %s2755_s14  ;;  %1090 = vrot.lane.b32.xlu0 %v5084_v5, %s2753_s12 }
 0x1ec   : > { %v3790_v17 = vpop.permute.xlu1 %849  ;;  %v3792_v37 = vpop.permute.xlu0 %977 }
 0x1ed   : > { %5087 = vst [vmem:[#allocation112_spill] sm:$0xff] %v3792_v37 }
 0x1ee   : > { %1353 = vrot.lane.b32.xlu1 %v3338_v62, %s2756_s15  ;;  %1371 = vrot.lane.b32.xlu0 %v5088_v23, %s2756_s15  ;;  %v5091_v62 = vld [vmem:[#allocation20_spill] sm:$0xff] }
 0x1f0   : > { %v3798_v24 = vpop.permute.xlu1 %853  ;;  %v3800_v13 = vpop.permute.xlu0 %981 }
 0x1f1   : > { %5089 = vst [vmem:[#allocation13_spill] sm:$0xff] %v3800_v13 }
 0x1f2   : > { %1355 = vrot.lane.b32.xlu1 %v3353_v59, %s2756_s15  ;;  %1170 = vrot.lane.b32.xlu0 %v3029_v12, %s2754_s13 }
 0x1f4   : > { %v3806_v30 = vpop.permute.xlu1 %857  ;;  %v3808_v5 = vpop.permute.xlu0 %985 }
 0x1f5   : > { %5090 = vst [vmem:[#allocation113_spill] sm:$0xff] %v3808_v5 }
 0x1f6   : > { %1154 = vrot.lane.b32.xlu1 %v2951_v33, %s2754_s13  ;;  %1288 = vrot.lane.b32.xlu0 %v5091_v62, %s2755_s14  ;;  %v5094_v33 = vld [vmem:[#allocation22_spill] sm:$0xff] }
 0x1f8   : > { %v3814_v56 = vpop.permute.xlu1 %861  ;;  %v3816_v51 = vpop.permute.xlu0 %989 }
 0x1f9   : > { %5092 = vst [vmem:[#allocation20_spill] sm:$0xff] %v3816_v51 }
 0x1fa   : > { %1256 = vrot.lane.b32.xlu1 %v2966_v40, %s2755_s14  ;;  %1172 = vrot.lane.b32.xlu0 %v3036_v18, %s2754_s13 }
 0x1fc   : > { %v3822_v12 = vpop.permute.xlu1 %865  ;;  %v3824_v59 = vpop.permute.xlu0 %1054 }
 0x1fd   : > { %5093 = vst [vmem:[#allocation114_spill] sm:$0xff] %v3822_v12 }
 0x1fe   : > { %1357 = vrot.lane.b32.xlu1 %v3364_v48, %s2756_s15  ;;  %1290 = vrot.lane.b32.xlu0 %v5094_v33, %s2755_s14 }
 0x200   : > { %v3830_v13 = vpop.permute.xlu1 %869  ;;  %v3832_v37 = vpop.permute.xlu0 %1152 }
 0x201   : > { %5095 = vst [vmem:[#allocation22_spill] sm:$0xff] %v3830_v13 }
 0x202   : > { %1359 = vrot.lane.b32.xlu1 %v3374_v39, %s2756_s15  ;;  %993 = vrot.lane.b32.xlu0 %v5094_v33, %s2752_s11  ;;  %v5098_v39 = vld [vmem:[#allocation21_spill] sm:$0xff] }
 0x204   : > { %v3838_v40 = vpop.permute.xlu1 %873  ;;  %v3840_v18 = vpop.permute.xlu0 %1254 }
 0x205   : > { %5096 = vst [vmem:[#allocation115_spill] sm:$0xff] %v3838_v40 }
 0x206   : > { %1158 = vrot.lane.b32.xlu1 %v2972_v43, %s2754_s13  ;;  %1274 = vrot.lane.b32.xlu0 %v3050_v32, %s2755_s14 }
 0x208   : > { %v3846_v48 = vpop.permute.xlu1 %877  ;;  %v3848_v13 = vpop.permute.xlu0 %1056 }
 0x209   : > { %5097 = vst [vmem:[#allocation116_spill] sm:$0xff] %v3846_v48 }
 0x20a   : > { %1260 = vrot.lane.b32.xlu1 %v2987_v50, %s2755_s14  ;;  %1391 = vrot.lane.b32.xlu0 %v5098_v39, %s2756_s15  ;;  %v5100_v50 = vld [vmem:[#allocation15_spill] sm:$0xff] }
 0x20c   : > { %v3854_v33 = vpop.permute.xlu1 %881  ;;  %v3856_v40 = vpop.permute.xlu0 %1058 }
 0x20e   : > { %1361 = vrot.lane.b32.xlu1 %v3385_v58, %s2756_s15  ;;  %1094 = vrot.lane.b32.xlu0 %v5098_v39, %s2753_s12 }
 0x210   : > { %v3862_v43 = vpop.permute.xlu1 %885  ;;  %v3864_v32 = vpop.permute.xlu0 %1156 }
 0x211   : > { %5099 = vst [vmem:[#allocation21_spill] sm:$0xff] %v3862_v43 }
 0x212   : > { %1363 = vrot.lane.b32.xlu1 %v3395_v2, %s2756_s15  ;;  %1375 = vrot.lane.b32.xlu0 %v5100_v50, %s2756_s15  ;;  %v5103_v2 = vld [vmem:[#allocation24_spill] sm:$0xff] }
 0x214   : > { %v3870_v48 = vpop.permute.xlu1 %889  ;;  %v3872_v35 = vpop.permute.xlu0 %1258 }
 0x215   : > { %5101 = vst [vmem:[#allocation15_spill] sm:$0xff] %v3870_v48 }
 0x216   : > { %1162 = vrot.lane.b32.xlu1 %v2993_v53, %s2754_s13  ;;  %1174 = vrot.lane.b32.xlu0 %v3047_v31, %s2754_s13 }
 0x218   : > { %v3878_v58 = vpop.permute.xlu1 %893  ;;  %v3880_v39 = vpop.permute.xlu0 %1060 }
 0x219   : > { %5102 = vst [vmem:[#allocation117_spill] sm:$0xff] %v3878_v58 }
 0x21a   : > { %1264 = vrot.lane.b32.xlu1 %v3006_v60, %s2755_s14  ;;  %1292 = vrot.lane.b32.xlu0 %v5103_v2, %s2755_s14  ;;  %v5106_v60 = vld [vmem:[#allocation25_spill] sm:$0xff] }
 0x21c   : > { %v3886_v43 = vpop.permute.xlu1 %897  ;;  %v3888_v48 = vpop.permute.xlu0 %1062 }
 0x21d   : > { %5104 = vst [vmem:[#allocation24_spill] sm:$0xff] %v3886_v43 }
 0x21e   : > { %1266 = vrot.lane.b32.xlu1 %v3014_v0, %s2755_s14  ;;  %1176 = vrot.lane.b32.xlu0 %v3054_v38, %s2754_s13 }
 0x220   : > { %v3894_v53 = vpop.permute.xlu1 %901  ;;  %v3896_v31 = vpop.permute.xlu0 %1160 }
 0x221   : > { %5105 = vst [vmem:[#allocation118_spill] sm:$0xff] %v3894_v53  ;;  %v3930_v53 = vld [vmem:[#allocation2 + $0x98] sm:$0xff] }
 0x222   : > { %1068 = vrot.lane.b32.xlu1 %v3407_v55, %s2753_s12  ;;  %1294 = vrot.lane.b32.xlu0 %v5106_v60, %s2755_s14 }
 0x224   : > { %v3902_v58 = vpop.permute.xlu1 %905  ;;  %v3904_v43 = vpop.permute.xlu0 %1262 }
 0x225   : > { %5107 = vst [vmem:[#allocation25_spill] sm:$0xff] %v3902_v58 }
 0x226   : > { %1182 = vrot.lane.b32.xlu1 %v3101_v41, %s2754_s13  ;;  %997 = vrot.lane.b32.xlu0 %v5106_v60, %s2752_s11  ;;  %v5109_v41 = vld [vmem:[#allocation23_spill] sm:$0xff] }
 0x227   : > { %5110 = vst [vmem:[#allocation23_spill] sm:$0xff] %v3930_v53 }
 0x228   : > { %v3910_v0 = vpop.permute.xlu1 %909  ;;  %v3912_v38 = vpop.permute.xlu0 %1064 }
 0x229   : > { %5108 = vst [vmem:[#allocation119_spill] sm:$0xff] %v3910_v0 }
 0x22a   : > { %1070 = vrot.lane.b32.xlu1 %v5071_v7, %s2753_s12  ;;  %1278 = vrot.lane.b32.xlu0 %v3063_v49, %s2755_s14 }
 0x22c   : > { %v3918_v55 = vpop.permute.xlu1 %951  ;;  %v3920_v58 = vpop.permute.xlu0 %1066 }
 0x22e   : > { %1184 = vrot.lane.b32.xlu1 %v3115_v52, %s2754_s13  ;;  %1395 = vrot.lane.b32.xlu0 %v5109_v41, %s2756_s15  ;;  %v5111_v52 = vld [vmem:[#allocation16_spill] sm:$0xff] }
 0x230   : > { %v3926_v60 = vpop.permute.xlu1 %955  ;;  %v3928_v0 = vpop.permute.xlu0 %1164 }
 0x232   : > { %1168 = vrot.lane.b32.xlu1 %v3930_v53, %s2754_s13  ;;  %1098 = vrot.lane.b32.xlu0 %v5109_v41, %s2753_s12 }
 0x234   : > { %v3936_v49 = vpop.permute.xlu1 %959  ;;  %v3938_v7 = vpop.permute.xlu0 %1084 }
 0x236   : > { %1286 = vrot.lane.b32.xlu1 %v3143_v6, %s2755_s14  ;;  %1379 = vrot.lane.b32.xlu0 %v5111_v52, %s2756_s15  ;;  %v5114_v6 = vld [vmem:[#allocation27_spill] sm:$0xff] }
 0x238   : > { %v3944_v51 = vpop.permute.xlu1 %963  ;;  %v3946_v44 = vpop.permute.xlu0 %1365 }
 0x23a   : > { %1088 = vrot.lane.b32.xlu1 %v3471_v10, %s2753_s12  ;;  %1178 = vrot.lane.b32.xlu0 %v3072_v61, %s2754_s13 }
 0x23c   : > { %v3952_v41 = vpop.permute.xlu1 %967  ;;  %v3954_v53 = vpop.permute.xlu0 %1086 }
 0x23d   : > { %5112 = vst [vmem:[#allocation16_spill] sm:$0xff] %v3952_v41  ;;  %5113 = vst [vmem:[#allocation120_spill] sm:$0xff] %v3954_v53  ;;  %v5118_v41 = vld [vmem:[#allocation28_spill] sm:$0xff] }
 0x23e   : > { %1369 = vrot.lane.b32.xlu1 %v3419_v3, %s2756_s15  ;;  %1296 = vrot.lane.b32.xlu0 %v5114_v6, %s2755_s14 }
 0x240   : > { %v3960_v12 = vpop.permute.xlu1 %971  ;;  %v3962_v5 = vpop.permute.xlu0 %1367 }
 0x241   : > { %5115 = vst [vmem:[#allocation27_spill] sm:$0xff] %v3960_v12 }
 0x242   : > { %1072 = vrot.lane.b32.xlu1 %v3419_v3, %s2753_s12  ;;  %1180 = vrot.lane.b32.xlu0 %v3081_v1, %s2754_s13 }
 0x244   : > { %v3968_v61 = vpop.permute.xlu1 %975  ;;  %v3970_v10 = vpop.permute.xlu0 %1166 }
 0x245   : > { %5116 = vst [vmem:[#allocation121_spill] sm:$0xff] %v3968_v61  ;;  %5117 = vst [vmem:[#allocation122_spill] sm:$0xff] %v3970_v10 }
 0x246   : > { %1186 = vrot.lane.b32.xlu1 %v3135_v29, %s2754_s13  ;;  %1298 = vrot.lane.b32.xlu0 %v5118_v41, %s2755_s14 }
 0x248   : > { %v3976_v53 = vpop.permute.xlu1 %979  ;;  %v3978_v12 = vpop.permute.xlu0 %1284 }
 0x249   : > { %5119 = vst [vmem:[#allocation28_spill] sm:$0xff] %v3976_v53 }
 0x24a   : > { %1074 = vrot.lane.b32.xlu1 %v5088_v23, %s2753_s12  ;;  %1001 = vrot.lane.b32.xlu0 %v5118_v41, %s2752_s11  ;;  %v5122_v23 = vld [vmem:[#allocation26_spill] sm:$0xff] }
 0x24c   : > { %v3984_v1 = vpop.permute.xlu1 %983  ;;  %v3986_v3 = vpop.permute.xlu0 %1268 }
 0x24d   : > { %5120 = vst [vmem:[#allocation123_spill] sm:$0xff] %v3986_v3  ;;  %v5125_v3 = vld [vmem:[#allocation29_spill] sm:$0xff] }
 0x24e   : > { %1188 = vrot.lane.b32.xlu1 %v3149_v15, %s2754_s13  ;;  %1282 = vrot.lane.b32.xlu0 %v3109_v19, %s2755_s14 }
 0x250   : > { %v3992_v29 = vpop.permute.xlu1 %987  ;;  %v3994_v53 = vpop.permute.xlu0 %1385 }
 0x251   : > { %5121 = vst [vmem:[#allocation124_spill] sm:$0xff] %v3992_v29  ;;  %v2621_v29 = vld [vmem:[#allocation2] sm:$0xff] }
 0x252   : > { %991 = vrot.lane.b32.xlu1 %v5091_v62, %s2752_s11  ;;  %1399 = vrot.lane.b32.xlu0 %v5122_v23, %s2756_s15  ;;  %v1449_v10 = vsel %vm302_vm0, %v2621_v29, %v5125_v3  ;;  %v2622_v62 = vld [vmem:[#allocation2 + $0x8] sm:$0xff] }
 0x254   : > { %v1053_v41 = vpop.permute.xlu1 %1052  ;;  %v4000_v61 = vpop.permute.xlu0 %1270 }
 0x255   : > { %5123 = vst [vmem:[#allocation125_spill] sm:$0xff] %v4000_v61 }
 0x256   : > { %1272 = vrot.lane.b32.xlu1 %v5074_v46, %s2755_s14  ;;  %1198 = vrot.lane.b32.xlu0 %v3227_v11, %s2754_s13  ;;  %v1482_v46 = vsel %vm1481_vm5, %v1449_v10, %v3605_v26  ;;  %v5126_v11 = vld [vmem:[#allocation33_spill] sm:$0xff]  ;;  %v5127_v10 = vld [vmem:[#allocation31_spill] sm:$0xff] }
 0x257   : > { %v1450_v61 = vsel %vm302_vm0, %v2622_v62, %v5126_v11  ;;  %v1515_v23 = vsel %vm1514_vm6, %v1482_v46, %v3790_v17  ;;  %v5128_v62 = vld [vmem:[#allocation36_spill] sm:$0xff] }
 0x258   : > { %v1151_v15 = vpop.permute.xlu1 %1150  ;;  %v4006_v19 = vpop.permute.xlu0 %1387 }
 0x259   : > { %5124 = vst [vmem:[#allocation126_spill] sm:$0xff] %v4006_v19  ;;  %v1483_v19 = vsel %vm1481_vm5, %v1450_v61, %v3613_v34 }
 0x25a   : > { %1389 = vrot.lane.b32.xlu1 %v3483_v16, %s2756_s15  ;;  %1200 = vrot.lane.b32.xlu0 %v3234_v21, %s2754_s13  ;;  %v1548_v21 = vsel %vm1547_vm7, %v1515_v23, %v3918_v55  ;;  %v1516_v34 = vsel %vm1514_vm6, %v1483_v19, %v3599_v8 }
 0x25b   : > { %v1581_v26 = vsel %vm1580_vm8, %v1548_v21, %v1053_v41  ;;  %v1549_v23 = vsel %vm1547_vm7, %v1516_v34, %v3729_v20 }
 0x25c   : > { %v1253_v3 = vpop.permute.xlu1 %1252  ;;  %v4020_v29 = vpop.permute.xlu0 %1090  ;;  %v1614_v17 = vsel %vm1613_vm9, %v1581_v26, %v1151_v15  ;;  %v1582_v46 = vsel %vm1580_vm8, %v1549_v23, %v3824_v59  ;;  %v5129_v26 = vld [vmem:[#allocation30_spill] sm:$0xff] }
 0x25d   : > { %v1647_v61 = vsel %vm1646_vm11, %v1614_v17, %v1253_v3  ;;  %v1615_v8 = vsel %vm1613_vm9, %v1582_v46, %v3832_v37  ;;  %v2623_v37 = vld [vmem:[#allocation2 + $0x18] sm:$0xff] }
 0x25e   : > { %1092 = vrot.lane.b32.xlu1 %v3483_v16, %s2753_s12  ;;  %1003 = vrot.lane.b32.xlu0 %v5127_v10, %s2752_s11  ;;  %v1648_v20 = vsel %vm1646_vm11, %v1615_v8, %v3840_v18  ;;  %v1451_v11 = vsel %vm302_vm0, %v2623_v37, %v5128_v62  ;;  %v5130_v17 = vld [vmem:[#allocation38_spill] sm:$0xff] }
 0x25f   : > { %v1484_v18 = vsel %vm1481_vm5, %v1451_v11, %v3621_v9  ;;  %v2626_v11 = vld [vmem:[#allocation2 + $0x38] sm:$0xff] }
 0x260   : > { %v1354_v55 = vpop.permute.xlu1 %1353  ;;  %v4037_v41 = vpop.permute.xlu0 %1371  ;;  %v1517_v21 = vsel %vm1514_vm6, %v1484_v18, %v3798_v24 }
 0x261   : > { %v1680_v16 = vsel %vm1679_vm10, %v1647_v61, %v1354_v55 }
 0x262   : > { %1373 = vrot.lane.b32.xlu1 %v3429_v47, %s2756_s15  ;;  %2504 = vmatprep.mubr.msk.f32.mxu0 %vm1717_vm12, %v1680_v16 }
 0x263   : > { %1401 = vrot.lane.b32.xlu0 %v3523_v28, %s2756_s15 }
 0x264   : > { %v1356_v15 = vpop.permute.xlu1 %1355  ;;  %v4055_v59 = vpop.permute.xlu0 %1170 }
 0x265   : > { %v1681_v19 = vsel %vm1679_vm10, %v1648_v20, %v1356_v15 }
 0x266   : > { %1076 = vrot.lane.b32.xlu1 %v3429_v47, %s2753_s12  ;;  %2505 = vmatmul.mubr.msk.f32.vlgmr.msra.gmra.mrb[0].mxu0 %vm1717_vm12, %v1681_v19  ;;  %v1550_v47 = vsel %vm1547_vm7, %v1517_v21, %v3926_v60 }
 0x267   : > { %1104 = vrot.lane.b32.xlu0 %v3523_v28, %s2753_s12  ;;  %v2624_v28 = vld [vmem:[#allocation2 + $0x20] sm:$0xff]  ;;  %v1583_v24 = vsel %vm1580_vm8, %v1550_v47, %v3848_v13 }
 0x268   : > { %v1155_v3 = vpop.permute.xlu1 %1154  ;;  %v1452_v34 = vsel %vm302_vm0, %v2624_v28, %v5130_v17  ;;  %v4075_v55 = vpop.permute.xlu0 %1288  ;;  %v5136_v28 = vld [vmem:[#allocation64_spill] sm:$0xff] }
 0x269   : > { %v1485_v9 = vsel %vm1481_vm5, %v1452_v34, %v3629_v14  ;;  %v5138_v34 = vld [vmem:[#allocation85_spill] sm:$0xff] }
 0x26a   : > { %1190 = vrot.lane.b32.xlu1 %v3168_v42, %s2754_s13  ;;  %v1616_v42 = vsel %vm1613_vm9, %v1583_v24, %v1155_v3  ;;  %v1518_v60 = vsel %vm1514_vm6, %v1485_v9, %v3607_v22  ;;  %v5134_v3 = vld [vmem:[#allocation40_spill] sm:$0xff] }
 0x26b   : > { %1106 = vrot.lane.b32.xlu0 %v5129_v26, %s2753_s12  ;;  %v1551_v14 = vsel %vm1547_vm7, %v1518_v60, %v3737_v54  ;;  %v1454_v18 = vsel %vm302_vm0, %v2626_v11, %v5134_v3  ;;  %v5139_v60 = vld [vmem:[#allocation95_spill] sm:$0xff]  ;;  %v2628_v11 = vld [vmem:[#allocation2 + $0x50] sm:$0xff] }
 0x26c   : > { %v1257_v61 = vpop.permute.xlu1 %1256  ;;  %v1584_v13 = vsel %vm1580_vm8, %v1551_v14, %v3856_v40  ;;  %v4097_v22 = vpop.permute.xlu0 %1172  ;;  %v5132_v40 = vld [vmem:[#allocation39_spill] sm:$0xff]  ;;  %v5145_v3 = vld [vmem:[#allocation44_spill] sm:$0xff] }
 0x26d   : > { %v1649_v23 = vsel %vm1646_vm11, %v1616_v42, %v1257_v61 }
 0x26e   : > { %1078 = vrot.lane.b32.xlu1 %v5100_v50, %s2753_s12  ;;  %v5131_v50 = vld [vmem:[#allocation35_spill] sm:$0xff] }
 0x26f   : > { %1204 = vrot.lane.b32.xlu0 %v3264_v57, %s2754_s13  ;;  %v1617_v57 = vsel %vm1613_vm9, %v1584_v13, %v3864_v32 }
 0x270   : > { %v1358_v16 = vpop.permute.xlu1 %1357  ;;  %v1650_v54 = vsel %vm1646_vm11, %v1617_v57, %v3872_v35  ;;  %v4113_v35 = vpop.permute.xlu0 %1290  ;;  %v2627_v57 = vld [vmem:[#allocation2 + $0x48] sm:$0xff] }
 0x271   : > { %v1682_v46 = vsel %vm1679_vm10, %v1649_v23, %v1358_v16  ;;  %v946_v23 = vrot.slane %v5139_v60, 1 }
 0x272   : > { %1192 = vrot.lane.b32.xlu1 %v3182_v45, %s2754_s13  ;;  %2507 = vmatprep.mubr.msk.f32.mxu0 %vm1717_vm12, %v1682_v46  ;;  %v2625_v45 = vld [vmem:[#allocation2 + $0x30] sm:$0xff]  ;;  %v5140_v46 = vld [vmem:[#allocation42_spill] sm:$0xff] }
 0x273   : > { %1007 = vrot.lane.b32.xlu0 %v5131_v50, %s2752_s11  ;;  %v1453_v32 = vsel %vm302_vm0, %v2625_v45, %v5132_v40  ;;  %v1048_v45 = vrot.slane %v5140_v46, 2  ;;  %v5142_v40 = vld [vmem:[#allocation91_spill] sm:$0xff] }
 0x274   : > { %v1360_v8 = vpop.permute.xlu1 %1359  ;;  %v1486_v19 = vsel %vm1481_vm5, %v1453_v32, %v3637_v36  ;;  %v5135_v36 = vld [vmem:[#allocation89_spill] sm:$0xff]  ;;  %v4131_v17 = vpop.permute.xlu0 %993  ;;  %v1047_v32 = vrot.slane %v5139_v60, 2 }
 0x275   : > { %v1683_v20 = vsel %vm1679_vm10, %v1650_v54, %v1360_v8  ;;  %v1519_v37 = vsel %vm1514_vm6, %v1486_v19, %v3806_v30  ;;  %v1487_v47 = vsel %vm1481_vm5, %v1454_v18, %v5135_v36  ;;  %v5141_v54 = vld [vmem:[#allocation41_spill] sm:$0xff]  ;;  %v1456_v18 = vsel %vm302_vm0, %v2628_v11, %v5145_v3 }
 0x276   : > { %995 = vrot.lane.b32.xlu1 %v5103_v2, %s2752_s11  ;;  %2508 = vmatmul.mubr.msk.f32.gmra.mrb[2].mxu0 %vm1717_vm12, %v1683_v20  ;;  %v5133_v2 = vld [vmem:[#allocation11_spill] sm:$0xff]  ;;  %v1552_v62 = vsel %vm1547_vm7, %v1519_v37, %v3936_v49  ;;  %v1520_v61 = vsel %vm1514_vm6, %v1487_v47, %v5138_v34  ;;  %v1455_v8 = vsel %vm302_vm0, %v2627_v57, %v5141_v54  ;;  %v5149_v57 = vld [vmem:[#allocation56_spill] sm:$0xff] }
 0x277   : > { %1405 = vrot.lane.b32.xlu0 %v3537_v4, %s2756_s15  ;;  %v1585_v30 = vsel %vm1580_vm8, %v1552_v62, %v3880_v39  ;;  %v1553_v42 = vsel %vm1547_vm7, %v1520_v61, %v3751_v27  ;;  %v1049_v47 = vsel %vm670_vm3, %v1047_v32, %v1048_v45 }
 0x278   : > { %v1159_v15 = vpop.permute.xlu1 %1158  ;;  %v1586_v16 = vsel %vm1580_vm8, %v1553_v42, %v3888_v48  ;;  %v4156_v48 = vpop.permute.xlu0 %1274  ;;  %v5148_v42 = vld [vmem:[#allocation43_spill] sm:$0xff] }
 0x279   : > { %v1618_v49 = vsel %vm1613_vm9, %v1585_v30, %v1159_v15  ;;  %v1619_v14 = vsel %vm1613_vm9, %v1586_v16, %v3896_v31  ;;  %v1488_v31 = vsel %vm1481_vm5, %v1455_v8, %v5142_v40  ;;  %v5143_v15 = vld [vmem:[#allocation55_spill] sm:$0xff]  ;;  %v5150_v8 = vld [vmem:[#allocation106_spill] sm:$0xff] }
 0x27a   : > { %1276 = vrot.lane.b32.xlu1 %v5133_v2, %s2755_s14  ;;  %v1652_v27 = vsel %vm1646_vm11, %v1619_v14, %v3904_v43  ;;  %v5144_v43 = vrot.slane %v5140_v46, 1  ;;  %v1521_v37 = vsel %vm1514_vm6, %v1488_v31, %v3814_v56 }
 0x27b   : > { %1108 = vrot.lane.b32.xlu0 %v3537_v4, %s2753_s12  ;;  %v5137_v4 = vld [vmem:[#allocation34_spill] sm:$0xff]  ;;  %v1554_v2 = vsel %vm1547_vm7, %v1521_v37, %v3944_v51 }
 0x27c   : > { %v1261_v21 = vpop.permute.xlu1 %1260  ;;  %v4169_v19 = vsel %vm493_vm2, %v946_v23, %v5144_v43  ;;  %v4184_v56 = vpop.permute.xlu0 %1391  ;;  %v1587_v30 = vsel %vm1580_vm8, %v1554_v2, %v3912_v38 }
 0x27d   : > { %v1651_v9 = vsel %vm1646_vm11, %v1618_v49, %v1261_v21  ;;  %v5146_v21 = vld [vmem:[#allocation93_spill] sm:$0xff]  ;;  %v5147_v49 = vld [vmem:[#allocation86_spill] sm:$0xff] }
 0x27e   : > { %1393 = vrot.lane.b32.xlu1 %v5136_v28, %s2756_s15  ;;  %v1489_v36 = vsel %vm1481_vm5, %v1456_v18, %v5146_v21 }
 0x27f   : > { %1110 = vrot.lane.b32.xlu0 %v5137_v4, %s2753_s12  ;;  %v1522_v34 = vsel %vm1514_vm6, %v1489_v36, %v5147_v49  ;;  %v5152_v36 = vld [vmem:[#allocation54_spill] sm:$0xff] }
 0x280   : > { %v1362_v24 = vpop.permute.xlu1 %1361  ;;  %v4208_v14 = vpop.permute.xlu0 %1094 }
 0x281   : > { %v1684_v39 = vsel %vm1679_vm10, %v1651_v9, %v1362_v24  ;;  %v1555_v9 = vsel %vm1547_vm7, %v1522_v34, %v3765_v63  ;;  %v4195_v24 = vld [vmem:[#allocation2 + $0x138] sm:$0xff]  ;;  %v2633_v34 = vld [vmem:[#allocation2 + $0x68] sm:$0xff] }
 0x282   : > { %1096 = vrot.lane.b32.xlu1 %v5136_v28, %s2753_s12  ;;  %2510 = vmatprep.mubr.msk.f32.mxu0 %vm1717_vm12, %v1684_v39  ;;  %v1050_v39 = vrot.slane %v5148_v42, 2  ;;  %v1588_v23 = vsel %vm1580_vm8, %v1555_v9, %v3920_v58  ;;  %v5155_v9 = vld [vmem:[#allocation94_spill] sm:$0xff] }
 0x283   : > { %1208 = vrot.lane.b32.xlu0 %v5140_v46, %s2754_s13  ;;  %v1621_v63 = vsel %vm1613_vm9, %v1588_v23, %v3928_v0  ;;  %v2634_v42 = vld [vmem:[#allocation2 + $0x60] sm:$0xff] }
 0x284   : > { %v1364_v13 = vpop.permute.xlu1 %1363  ;;  %v4218_v58 = vsel %vm670_vm3, %v1048_v45, %v1050_v39  ;;  %v5156_v39 = vld [vmem:[#allocation46_spill] sm:$0xff] }
 0x285   : > { %v1685_v20 = vsel %vm1679_vm10, %v1652_v27, %v1364_v13  ;;  %v4211_v27 = vld [vmem:[#allocation2 + $0x1a0] sm:$0xff]  ;;  %v1457_v23 = vsel %vm302_vm0, %v2634_v42, %v5156_v39 }
 0x286   : > { %1377 = vrot.lane.b32.xlu1 %v5143_v15, %s2756_s15  ;;  %2511 = vmatmul.mubr.msk.f32.gmra.mrb[4].mxu0 %vm1717_vm12, %v1685_v20  ;;  %v2630_v13 = vld [vmem:[#allocation2 + $0xc0] sm:$0xff]  ;;  %v1349_v37 = vrot.slane %v4211_v27, 2 }
 0x287   : > { %1011 = vrot.lane.b32.xlu0 %v4169_v19, %s2752_s11  ;;  %v1465_v54 = vsel %vm302_vm0, %v2630_v13, %v5149_v57  ;;  %v5159_v13 = vld [vmem:[#allocation96_spill] sm:$0xff]  ;;  %v5170_v42 = vld [vmem:[#allocation123_spill] sm:$0xff] }
 0x288   : > { %v1163_v62 = vpop.permute.xlu1 %1162  ;;  %v1498_v20 = vsel %vm1481_vm5, %v1465_v54, %v5150_v8  ;;  %v1490_v57 = vsel %vm1481_vm5, %v1457_v23, %v5159_v13  ;;  %v5160_v54 = vld [vmem:[#allocation120_spill] sm:$0xff]  ;;  %v5161_v8 = vld [vmem:[#allocation114_spill] sm:$0xff] }
 0x289   : > { %v1620_v51 = vsel %vm1613_vm9, %v1587_v30, %v1163_v62  ;;  %v1531_v40 = vsel %vm1514_vm6, %v1498_v20, %v3854_v33  ;;  %v1523_v20 = vsel %vm1514_vm6, %v1490_v57, %v5161_v8  ;;  %v5173_v8 = vld [vmem:[#allocation61_spill] sm:$0xff] }
 0x28a   : > { %1080 = vrot.lane.b32.xlu1 %v5143_v15, %s2753_s12  ;;  %v1564_v45 = vsel %vm1547_vm7, %v1531_v40, %v3984_v1  ;;  %v4232_v15 = vld [vmem:[#allocation2 + $0x140] sm:$0xff] }
 0x28b   : > { %1409 = vrot.lane.b32.xlu0 %v1049_v47, %s2756_s15  ;;  %v1597_v33 = vsel %vm1580_vm8, %v1564_v45, %v3938_v7  ;;  %v5162_v45 = vld [vmem:[#allocation87_spill] sm:$0xff] }
 0x28c   : > { %v1265_v28 = vpop.permute.xlu1 %1264 }
 0x28d   : > { %v1653_v61 = vsel %vm1646_vm11, %v1620_v51, %v1265_v28  ;;  %v5153_v51 = vld [vmem:[#allocation65_spill] sm:$0xff] }
 0x28e   : > { %1194 = vrot.lane.b32.xlu1 %v4195_v24, %s2754_s13  ;;  %v1686_v38 = vsel %vm1679_vm10, %v1653_v61, %v3946_v44  ;;  %v444_v44 = vld [vmem:[#allocation2 + $0x1a8] sm:$0x3] }
 0x28f   : > { %1112 = vrot.lane.b32.xlu0 %v1049_v47, %s2753_s12  ;;  %2513 = vmatprep.mubr.msk.f32.mxu0 %vm1717_vm12, %v1686_v38  ;;  %v1250_v32 = vrot.slane %v444_v44, 1  ;;  %v1351_v2 = vrot.slane %v444_v44, 2  ;;  %v5154_v61 = vld [vmem:[#allocation47_spill] sm:$0xff] }
 0x290   : > { %v1267_v16 = vpop.permute.xlu1 %1266 }
 0x291   : > { %v1654_v46 = vsel %vm1646_vm11, %v1621_v63, %v1267_v16  ;;  %v1352_v18 = vsel %vm670_vm3, %v1349_v37, %v1351_v2  ;;  %v5157_v63 = vld [vmem:[#allocation98_spill] sm:$0xff] }
 0x292   : > { %1082 = vrot.lane.b32.xlu1 %v5111_v52, %s2753_s12  ;;  %v1687_v0 = vsel %vm1679_vm10, %v1654_v46, %v3962_v5  ;;  %v1248_v52 = vrot.slane %v4211_v27, 1  ;;  %v4236_v5 = vpop.permute.xlu0 %1375  ;;  %v5158_v46 = vld [vmem:[#allocation113_spill] sm:$0xff] }
 0x293   : > { %1114 = vrot.lane.b32.xlu0 %v4218_v58, %s2753_s12  ;;  %2514 = vmatmul.mubr.msk.f32.gmra.mrb[6].mxu0 %vm1717_vm12, %v1687_v0 }
 0x294   : > { %v1069_v31 = vpop.permute.xlu1 %1068  ;;  %v1251_v1 = vsel %vm493_vm2, %v1248_v52, %v1250_v32 }
 0x296   : > { %1196 = vrot.lane.b32.xlu1 %v4232_v15, %s2754_s13  ;;  %v4258_v21 = vpop.permute.xlu0 %1174 }
 0x297   : > { %1212 = vrot.lane.b32.xlu0 %v4211_v27, %s2754_s13 }
 0x298   : > { %v1183_v43 = vpop.permute.xlu1 %1182 }
 0x299   : > { %v1630_v62 = vsel %vm1613_vm9, %v1597_v33, %v1183_v43  ;;  %v5163_v33 = vld [vmem:[#allocation16_spill] sm:$0xff] }
 0x29a   : > { %999 = vrot.lane.b32.xlu1 %v5114_v6, %s2752_s11  ;;  %v1663_v11 = vsel %vm1646_vm11, %v1630_v62, %v3978_v12  ;;  %v5151_v6 = vld [vmem:[#allocation67_spill] sm:$0xff]  ;;  %v4267_v30 = vpop.permute.xlu0 %1292 }
 0x29b   : > { %v1696_v3 = vsel %vm1679_vm10, %v1663_v11, %v3994_v53  ;;  %1314 = vrot.lane.b32.xlu0 %v1251_v1, %s2755_s14  ;;  %v2632_v53 = vld [vmem:[#allocation2 + $0xc8] sm:$0xff]  ;;  %v1556_v1 = vsel %vm1547_vm7, %v1523_v20, %v5163_v33  ;;  %v5164_v11 = vld [vmem:[#allocation110_spill] sm:$0xff] }
 0x29c   : > { %v1071_v7 = vpop.permute.xlu1 %1070  ;;  %2528 = vmatprep.mubr.msk.f32.mxu1 %vm1717_vm12, %v1696_v3  ;;  %v1466_v47 = vsel %vm302_vm0, %v2632_v53, %v5152_v36  ;;  %v2636_v20 = vld [vmem:[#allocation2 + $0xd8] sm:$0xff] }
 0x29d   : > { %v1499_v28 = vsel %vm1481_vm5, %v1466_v47, %v5153_v51 }
 0x29e   : > { %1280 = vrot.lane.b32.xlu1 %v5079_v25, %s2755_s14  ;;  %v1458_v25 = vsel %vm302_vm0, %v2633_v34, %v5154_v61  ;;  %v1532_v38 = vsel %vm1514_vm6, %v1499_v28, %v5155_v9  ;;  %v4294_v2 = vpop.permute.xlu0 %1176  ;;  %v5167_v28 = vld [vmem:[#allocation122_spill] sm:$0xff] }
 0x29f   : > { %1415 = vrot.lane.b32.xlu0 %v1352_v18, %s2756_s15  ;;  %v1491_v16 = vsel %vm1481_vm5, %v1458_v25, %v5157_v63  ;;  %v1565_v44 = vsel %vm1547_vm7, %v1532_v38, %v5158_v46  ;;  %v1589_v18 = vsel %vm1580_vm8, %v1556_v1, %v1069_v31  ;;  %v5168_v61 = vld [vmem:[#allocation26_spill] sm:$0xff]  ;;  %v5169_v25 = vld [vmem:[#allocation125_spill] sm:$0xff] }
 0x2a0   : > { %v1185_v12 = vpop.permute.xlu1 %1184  ;;  %v1598_v0 = vsel %vm1580_vm8, %v1565_v44, %v5160_v54  ;;  %v1524_v43 = vsel %vm1514_vm6, %v1491_v16, %v5162_v45  ;;  %v1622_v34 = vsel %vm1613_vm9, %v1589_v18, %v5167_v28  ;;  %v5172_v44 = vld [vmem:[#allocation32_spill] sm:$0xff]  ;;  %v5175_v45 = vld [vmem:[#allocation69_spill] sm:$0xff] }
 0x2a1   : > { %v1631_v40 = vsel %vm1613_vm9, %v1598_v0, %v1185_v12  ;;  %v1557_v3 = vsel %vm1547_vm7, %v1524_v43, %v5164_v11  ;;  %v5166_v12 = vld [vmem:[#allocation126_spill] sm:$0xff]  ;;  %v5176_v1 = vld [vmem:[#allocation97_spill] sm:$0xff] }
 0x2a2   : > { %1397 = vrot.lane.b32.xlu1 %v5151_v6, %s2756_s15  ;;  %v1590_v36 = vsel %vm1580_vm8, %v1557_v3, %v1071_v7  ;;  %v4311_v31 = vpop.permute.xlu0 %1294  ;;  %v1655_v7 = vsel %vm1646_vm11, %v1622_v34, %v5170_v42  ;;  %v2635_v0 = vld [vmem:[#allocation2 + $0xe0] sm:$0xff]  ;;  %v5177_v11 = vld [vmem:[#allocation9_spill] sm:$0xff] }
 0x2a3   : > { %v5181_v42 = vld [vmem:[#allocation49_spill] sm:$0xff] }
 0x2a4   : > { %v1169_v49 = vpop.permute.xlu1 %1168 }
 0x2a5   : > { %v1623_v47 = vsel %vm1613_vm9, %v1590_v36, %v1169_v49  ;;  %v5171_v49 = vld [vmem:[#allocation18_spill] sm:$0xff]  ;;  %v5180_v36 = vld [vmem:[#allocation124_spill] sm:$0xff] }
 0x2a6   : > { %1100 = vrot.lane.b32.xlu1 %v5151_v6, %s2753_s12  ;;  %v5165_v6 = vld [vmem:[#allocation58_spill] sm:$0xff]  ;;  %v1656_v9 = vsel %vm1646_vm11, %v1623_v47, %v5169_v25  ;;  %v4324_v16 = vpop.permute.xlu0 %997 }
 0x2a7   : > { %v1689_v23 = vsel %vm1679_vm10, %v1656_v9, %v4037_v41 }
 0x2a8   : > { %v1287_v32 = vpop.permute.xlu1 %1286 }
 0x2a9   : > { %v1664_v62 = vsel %vm1646_vm11, %v1631_v40, %v1287_v32  ;;  %v5174_v40 = vld [vmem:[#allocation59_spill] sm:$0xff] }
 0x2aa   : > { %1381 = vrot.lane.b32.xlu1 %v5165_v6, %s2756_s15  ;;  %v1697_v53 = vsel %vm1679_vm10, %v1664_v62, %v5166_v12  ;;  %v4330_v13 = vpop.permute.xlu0 %1278  ;;  %v1467_v32 = vsel %vm302_vm0, %v2636_v20, %v5174_v40  ;;  %v5179_v6 = vld [vmem:[#allocation21_spill] sm:$0xff] }
 0x2ab   : > { %2529 = vmatmul.mubr.msk.f32.vlgmr.msra.gmra.mrb[0].mxu1 %vm1717_vm12, %v1697_v53  ;;  %v1500_v3 = vsel %vm1481_vm5, %v1467_v32, %v5177_v11  ;;  %v4354_v53 = vld [vmem:[#allocation2 + $0x168] sm:$0xff]  ;;  %v5188_v11 = vld [vmem:[#allocation37_spill] sm:$0xff] }
 0x2ac   : > { %v1089_v51 = vpop.permute.xlu1 %1088  ;;  %v1533_v12 = vsel %vm1514_vm6, %v1500_v3, %v5179_v6  ;;  %v5186_v32 = vld [vmem:[#allocation100_spill] sm:$0xff]  ;;  %v5189_v3 = vld [vmem:[#allocation27_spill] sm:$0xff] }
 0x2ad   : > { %v1566_v47 = vsel %vm1547_vm7, %v1533_v12, %v5180_v36 }
 0x2ae   : > { %1102 = vrot.lane.b32.xlu1 %v5168_v61, %s2753_s12  ;;  %v4334_v41 = vpop.permute.xlu0 %1395  ;;  %v1599_v61 = vsel %vm1580_vm8, %v1566_v47, %v1089_v51  ;;  %s2452_s12 = sshll.u32 %s2810_s3, 5 }
 0x2af   : > { %s4798_s17 = scalar_lea.hbm %s4878_s5, %s2452_s12 }
 0x2b0   : > { %v1370_v38 = vpop.permute.xlu1 %1369 }
 0x2b1   : > { %v1688_v39 = vsel %vm1679_vm10, %v1655_v7, %v1370_v38  ;;  %v2638_v38 = vld [vmem:[#allocation2 + $0x80] sm:$0xff] }
 0x2b2   : > { %1383 = vrot.lane.b32.xlu1 %v5171_v49, %s2756_s15  ;;  %2516 = vmatprep.mubr.msk.f32.mxu0 %vm1717_vm12, %v1688_v39  ;;  %v4362_v34 = vpop.permute.xlu0 %1098  ;;  %v1460_v7 = vsel %vm302_vm0, %v2638_v38, %v5181_v42  ;;  %v5182_v49 = vld [vmem:[#allocation57_spill] sm:$0xff] }
 0x2b3   : > { %2517 = vmatmul.mubr.msk.f32.gmra.mrb[8].mxu0 %vm1717_vm12, %v1689_v23  ;;  %v1493_v23 = vsel %vm1481_vm5, %v1460_v7, %v5182_v49  ;;  %v2640_v42 = vld [vmem:[#allocation2 + $0xf8] sm:$0xff]  ;;  %v5192_v49 = vld [vmem:[#allocation63_spill] sm:$0xff] }
 0x2b4   : > { %v1073_v63 = vpop.permute.xlu1 %1072  ;;  %v5191_v7 = vld [vmem:[#allocation66_spill] sm:$0xff] }
 0x2b6   : > { %1300 = vrot.lane.b32.xlu1 %v5127_v10, %s2755_s14  ;;  %v1468_v10 = vsel %vm302_vm0, %v2635_v0, %v5173_v8  ;;  %v5184_v0 = vld [vmem:[#allocation48_spill] sm:$0xff] }
 0x2b7   : > { %v1501_v43 = vsel %vm1481_vm5, %v1468_v10, %v5175_v45  ;;  %v5185_v10 = vld [vmem:[#allocation111_spill] sm:$0xff]  ;;  %v4385_v45 = vpop.permute.xlu0 %1379 }
 0x2b8   : > { %v1187_v46 = vpop.permute.xlu1 %1186  ;;  %v1534_v62 = vsel %vm1514_vm6, %v1501_v43, %v5176_v1  ;;  %v5187_v1 = vld [vmem:[#allocation22_spill] sm:$0xff] }
 0x2b9   : > { %v1632_v39 = vsel %vm1613_vm9, %v1599_v61, %v1187_v46 }
 0x2ba   : > { %1302 = vrot.lane.b32.xlu1 %v5172_v44, %s2755_s14  ;;  %v1665_v40 = vsel %vm1646_vm11, %v1632_v39, %v4075_v55  ;;  %v2641_v39 = vld [vmem:[#allocation2 + $0xf0] sm:$0xff] }
 0x2bb   : > { %v4404_v12 = vpop.permute.xlu0 %1178 }
 0x2bc   : > { %v1075_v57 = vpop.permute.xlu1 %1074 }
 0x2be   : > { %1005 = vrot.lane.b32.xlu1 %v5172_v44, %s2752_s11 }
 0x2c0   : > { %v1189_v54 = vpop.permute.xlu1 %1188 }
 0x2c2   : > { %1403 = vrot.lane.b32.xlu1 %v5129_v26, %s2756_s15  ;;  %v5178_v26 = vld [vmem:[#allocation20_spill] sm:$0xff] }
 0x2c3   : > { %v1567_v18 = vsel %vm1547_vm7, %v1534_v62, %v5178_v26 }
 0x2c4   : > { %v4344_v33 = vpop.permute.xlu1 %991  ;;  %v1600_v28 = vsel %vm1580_vm8, %v1567_v18, %v4020_v29  ;;  %v5183_v29 = vld [vmem:[#allocation88_spill] sm:$0xff] }
 0x2c5   : > { %v1633_v25 = vsel %vm1613_vm9, %v1600_v28, %v1189_v54  ;;  %v1526_v44 = vsel %vm1514_vm6, %v1493_v23, %v5183_v29  ;;  %v2639_v54 = vld [vmem:[#allocation2 + $0x78] sm:$0xff]  ;;  %v5193_v23 = vld [vmem:[#allocation71_spill] sm:$0xff] }
 0x2c6   : > { %1202 = vrot.lane.b32.xlu1 %v4354_v53, %s2754_s13  ;;  %v1666_v51 = vsel %vm1646_vm11, %v1633_v25, %v4113_v35  ;;  %v1459_v8 = vsel %vm302_vm0, %v2639_v54, %v5184_v0  ;;  %v1559_v20 = vsel %vm1547_vm7, %v1526_v44, %v5185_v10  ;;  %v5194_v54 = vld [vmem:[#allocation99_spill] sm:$0xff] }
 0x2c7   : > { %v1592_v43 = vsel %vm1580_vm8, %v1559_v20, %v1075_v57  ;;  %v1699_v55 = vsel %vm1679_vm10, %v1666_v51, %v4184_v56  ;;  %v442_v51 = vld [vmem:[#allocation2 + $0x198] sm:$0xff]  ;;  %v5196_v20 = vld [vmem:[#allocation15_spill] sm:$0xff] }
 0x2c8   : > { %v1273_v9 = vpop.permute.xlu1 %1272  ;;  %v1625_v18 = vsel %vm1613_vm9, %v1592_v43, %v4097_v22 }
 0x2c9   : > { %v1658_v56 = vsel %vm1646_vm11, %v1625_v18, %v4156_v48 }
 0x2ca   : > { %1304 = vrot.lane.b32.xlu1 %v5131_v50, %s2755_s14  ;;  %v1492_v50 = vsel %vm1481_vm5, %v1459_v8, %v5186_v32  ;;  %v1691_v22 = vsel %vm1679_vm10, %v1658_v56, %v4236_v5  ;;  %v5195_v8 = vld [vmem:[#allocation10_spill] sm:$0xff]  ;;  %v2642_v56 = vld [vmem:[#allocation2 + $0x90] sm:$0xff] }
 0x2cb   : > { %v1525_v62 = vsel %vm1514_vm6, %v1492_v50, %v5187_v1 }
 0x2cc   : > { %v1390_v46 = vpop.permute.xlu1 %1389  ;;  %v1558_v26 = vsel %vm1547_vm7, %v1525_v62, %v5189_v3  ;;  %v5198_v3 = vld [vmem:[#allocation23_spill] sm:$0xff] }
 0x2cd   : > { %v1698_v35 = vsel %vm1679_vm10, %v1665_v40, %v1390_v46  ;;  %v1591_v57 = vsel %vm1580_vm8, %v1558_v26, %v1073_v63  ;;  %v5199_v26 = vld [vmem:[#allocation60_spill] sm:$0xff] }
 0x2ce   : > { %1306 = vrot.lane.b32.xlu1 %v5188_v11, %s2755_s14  ;;  %2531 = vmatprep.mubr.msk.f32.mxu1 %vm1717_vm12, %v1698_v35  ;;  %v1624_v36 = vsel %vm1613_vm9, %v1591_v57, %v4055_v59  ;;  %v4418_v59 = vpop.permute.xlu0 %1296  ;;  %v1247_v35 = vrot.slane %v442_v51, 1  ;;  %v5200_v57 = vld [vmem:[#allocation90_spill] sm:$0xff] }
 0x2cf   : > { %2532 = vmatmul.mubr.msk.f32.gmra.mrb[2].mxu1 %vm1717_vm12, %v1699_v55  ;;  %v1657_v47 = vsel %vm1646_vm11, %v1624_v36, %v1273_v9  ;;  %v5190_v9 = vld [vmem:[#allocation45_spill] sm:$0xff]  ;;  %v5197_v55 = vld [vmem:[#allocation51_spill] sm:$0xff] }
 0x2d0   : > { %v1093_v6 = vpop.permute.xlu1 %1092  ;;  %v1249_v36 = vsel %vm493_vm2, %v1247_v35, %v1248_v52 }
 0x2d2   : > { %1009 = vrot.lane.b32.xlu1 %v5188_v11, %s2752_s11  ;;  %v4424_v25 = vpop.permute.xlu0 %1180 }
 0x2d4   : > { %v1374_v28 = vpop.permute.xlu1 %1373 }
 0x2d5   : > { %v1690_v63 = vsel %vm1679_vm10, %v1657_v47, %v1374_v28  ;;  %v5201_v47 = vld [vmem:[#allocation50_spill] sm:$0xff] }
 0x2d6   : > { %1407 = vrot.lane.b32.xlu1 %v5137_v4, %s2756_s15  ;;  %2519 = vmatprep.mubr.msk.f32.mxu0 %vm1717_vm12, %v1690_v63  ;;  %v4428_v5 = vpop.permute.xlu0 %1298  ;;  %v1461_v28 = vsel %vm302_vm0, %v2642_v56, %v5201_v47  ;;  %v5202_v63 = vld [vmem:[#allocation112_spill] sm:$0xff] }
 0x2d7   : > { %2520 = vmatmul.mubr.msk.f32.gmra.mrb[10].mxu0 %vm1717_vm12, %v1691_v22 }
 0x2d8   : > { %v1077_v61 = vpop.permute.xlu1 %1076 }
 0x2da   : > { %1206 = vrot.lane.b32.xlu1 %v5139_v60, %s2754_s13  ;;  %v1470_v60 = vsel %vm302_vm0, %v2640_v42, %v5191_v7  ;;  %v4452_v50 = vpop.permute.xlu0 %1001 }
 0x2db   : > { %v1503_v29 = vsel %vm1481_vm5, %v1470_v60, %v5193_v23  ;;  %v5204_v60 = vld [vmem:[#allocation115_spill] sm:$0xff] }
 0x2dc   : > { %v1191_v48 = vpop.permute.xlu1 %1190  ;;  %v1536_v0 = vsel %vm1514_vm6, %v1503_v29, %v5194_v54 }
 0x2dd   : > { %v1569_v40 = vsel %vm1547_vm7, %v1536_v0, %v4131_v17  ;;  %v1462_v17 = vsel %vm302_vm0, %v5198_v3, %v5197_v55 }
 0x2de   : > { %1308 = vrot.lane.b32.xlu1 %v4169_v19, %s2755_s14  ;;  %v1469_v19 = vsel %vm302_vm0, %v2641_v39, %v5192_v49  ;;  %v1602_v32 = vsel %vm1580_vm8, %v1569_v40, %v4208_v14  ;;  %v1495_v14 = vsel %vm1481_vm5, %v1462_v17, %v5199_v26  ;;  %v2643_v40 = vld [vmem:[#allocation2 + $0x110] sm:$0xff] }
 0x2df   : > { %v1502_v10 = vsel %vm1481_vm5, %v1469_v19, %v5195_v8  ;;  %v5209_v17 = vld [vmem:[#allocation101_spill] sm:$0xff] }
 0x2e0   : > { %v1079_v4 = vpop.permute.xlu1 %1078  ;;  %v1535_v46 = vsel %vm1514_vm6, %v1502_v10, %v5196_v20  ;;  %v5210_v26 = vld [vmem:[#allocation17_spill] sm:$0xff] }
 0x2e1   : > { %v1568_v43 = vsel %vm1547_vm7, %v1535_v46, %v4344_v33  ;;  %v1528_v33 = vsel %vm1514_vm6, %v1495_v14, %v5200_v57  ;;  %v5211_v57 = vld [vmem:[#allocation117_spill] sm:$0xff] }
 0x2e2   : > { %1310 = vrot.lane.b32.xlu1 %v5190_v9, %s2755_s14  ;;  %v1601_v1 = vsel %vm1580_vm8, %v1568_v43, %v1093_v6  ;;  %v1348_v6 = vrot.slane %v442_v51, 2  ;;  %v1561_v22 = vsel %vm1547_vm7, %v1528_v33, %v5202_v63 }
 0x2e3   : > { %v1594_v7 = vsel %vm1580_vm8, %v1561_v22, %v1079_v4 }
 0x2e4   : > { %v1193_v38 = vpop.permute.xlu1 %1192  ;;  %v1350_v4 = vsel %vm670_vm3, %v1348_v6, %v1349_v37  ;;  %v1627_v29 = vsel %vm1613_vm9, %v1594_v7, %v4294_v2  ;;  %v5213_v7 = vld [vmem:[#allocation104_spill] sm:$0xff] }
 0x2e5   : > { %v1635_v62 = vsel %vm1613_vm9, %v1602_v32, %v1193_v38  ;;  %v5203_v38 = vld [vmem:[#allocation102_spill] sm:$0xff]  ;;  %v1660_v0 = vsel %vm1646_vm11, %v1627_v29, %v4330_v13  ;;  %v5216_v29 = vld [vmem:[#allocation53_spill] sm:$0xff] }
 0x2e6   : > { %1013 = vrot.lane.b32.xlu1 %v5190_v9, %s2752_s11  ;;  %v1668_v18 = vsel %vm1646_vm11, %v1635_v62, %v4311_v31  ;;  %v1494_v42 = vsel %vm1481_vm5, %v1461_v28, %v5203_v38  ;;  %v4480_v31 = vpop.permute.xlu0 %1282  ;;  %v1693_v2 = vsel %vm1679_vm10, %v1660_v0, %v4385_v45  ;;  %v5206_v32 = vld [vmem:[#allocation70_spill] sm:$0xff]  ;;  %v5207_v62 = vld [vmem:[#allocation68_spill] sm:$0xff]  ;;  %s2412_s11 = sshll.u32 %s4783_s8, 1 }
 0x2e7   : > { %v1527_v39 = vsel %vm1514_vm6, %v1494_v42, %v5204_v60  ;;  %v1701_v49 = vsel %vm1679_vm10, %v1668_v18, %v4334_v41  ;;  %v1472_v43 = vsel %vm302_vm0, %v2643_v40, %v5206_v32  ;;  %v5212_v38 = vld [vmem:[#allocation52_spill] sm:$0xff] }
 0x2e8   : > { %v4438_v44 = vpop.permute.xlu1 %995 }
 0x2ea   : > { %1411 = vrot.lane.b32.xlu1 %v4218_v58, %s2756_s15  ;;  %v1634_v58 = vsel %vm1613_vm9, %v1601_v1, %v1191_v48  ;;  %v1400_v54 = vpop.permute.xlu0 %1399  ;;  %v2644_v1 = vld [vmem:[#allocation2 + $0x108] sm:$0xff] }
 0x2eb   : > { %v1667_v9 = vsel %vm1646_vm11, %v1634_v58, %v4267_v30  ;;  %v5205_v30 = vld [vmem:[#allocation121_spill] sm:$0xff]  ;;  %v1471_v45 = vsel %vm302_vm0, %v2644_v1, %v5207_v62  ;;  %v2647_v1 = vld [vmem:[#allocation2 + $0x120] sm:$0xff]  ;;  %v5220_v62 = vld [vmem:[#allocation72_spill] sm:$0xff] }
 0x2ec   : > { %v1277_v11 = vpop.permute.xlu1 %1276  ;;  %v1560_v19 = vsel %vm1547_vm7, %v1527_v39, %v5205_v30  ;;  %v1504_v14 = vsel %vm1481_vm5, %v1471_v45, %v5210_v26  ;;  %v5214_v39 = vld [vmem:[#allocation116_spill] sm:$0xff] }
 0x2ed   : > { %v1593_v23 = vsel %vm1580_vm8, %v1560_v19, %v1077_v61  ;;  %v1537_v33 = vsel %vm1514_vm6, %v1504_v14, %v5211_v57  ;;  %v5215_v30 = vld [vmem:[#allocation28_spill] sm:$0xff] }
 0x2ee   : > { %1210 = vrot.lane.b32.xlu1 %v442_v51, %s2754_s13  ;;  %v1626_v41 = vsel %vm1613_vm9, %v1593_v23, %v4258_v21  ;;  %v4510_v10 = vpop.permute.xlu0 %1198  ;;  %v1570_v56 = vsel %vm1547_vm7, %v1537_v33, %v4438_v44  ;;  %v2646_v23 = vld [vmem:[#allocation2 + $0xb0] sm:$0xff]  ;;  %s228_s13 = scalar_lea.vmem [#allocation5], %s2412_s11 }
 0x2ef   : > { %v1659_v8 = vsel %vm1646_vm11, %v1626_v41, %v1277_v11  ;;  %v5208_v11 = vld [vmem:[#allocation74_spill] sm:$0xff] }
 0x2f0   : > { %v1394_v48 = vpop.permute.xlu1 %1393  ;;  %v1505_v55 = vsel %vm1481_vm5, %v1472_v43, %v5208_v11  ;;  %v5217_v41 = vld [vmem:[#allocation62_spill] sm:$0xff] }
 0x2f1   : > { %v1700_v52 = vsel %vm1679_vm10, %v1667_v9, %v1394_v48  ;;  %v1538_v58 = vsel %vm1514_vm6, %v1505_v55, %v5209_v17  ;;  %v2645_v9 = vld [vmem:[#allocation2 + $0xa8] sm:$0xff]  ;;  %v5221_v55 = vld [vmem:[#allocation14_spill] sm:$0xff] }
 0x2f2   : > { %1312 = vrot.lane.b32.xlu1 %v1249_v36, %s2755_s14  ;;  %2534 = vmatprep.mubr.msk.f32.mxu1 %vm1717_vm12, %v1700_v52  ;;  %v4512_v21 = vpop.permute.xlu0 %1200  ;;  %v1571_v18 = vsel %vm1547_vm7, %v1538_v58, %v4324_v16  ;;  %v1463_v16 = vsel %vm302_vm0, %v2645_v9, %v5212_v38  ;;  %v5222_v58 = vld [vmem:[#allocation24_spill] sm:$0xff]  ;;  %s2316_s14 = sshll.u32 %s228_s13, 4  ;;  %s4800_s14 = int_to_ptr.vmem [resolvable:$true] %s2316_s14 }
 0x2f3   : > { %2535 = vmatmul.mubr.msk.f32.gmra.mrb[4].mxu1 %vm1717_vm12, %v1701_v49  ;;  %v1604_v6 = vsel %vm1580_vm8, %v1571_v18, %v4362_v34  ;;  %v1496_v44 = vsel %vm1481_vm5, %v1463_v16, %v5213_v7  ;;  %v5225_v16 = vld [vmem:[#allocation103_spill] sm:$0xff]  ;;  %s2652_s23 = scalar_lea.vmem %s4800_s14, 32  ;;  %p2659_p0 = scmp.lt.s32.totalorder %s4800_s14, %s2657_s28 }
 0x2f4   : > { %v1097_v51 = vpop.permute.xlu1 %1096  ;;  %v1529_v49 = vsel %vm1514_vm6, %v1496_v44, %v5214_v39  ;;  %p2653_p11 = scmp.ne.s32.totalorder %s4800_s14, %s2652_s23  ;;  %p2660_p1 = scmp.lt.s32.totalorder %s2658_s29, %s2652_s23 }
 0x2f5   : > { %v1603_v47 = vsel %vm1580_vm8, %v1570_v56, %v1097_v51  ;;  %v1562_v19 = vsel %vm1547_vm7, %v1529_v49, %v5215_v30  ;;  %v1464_v51 = vsel %vm302_vm0, %v2646_v23, %v5216_v29 }
 0x2f6   : > { %1413 = vrot.lane.b32.xlu1 %v1350_v4, %s2756_s15  ;;  %v4516_v35 = vpop.permute.xlu0 %1003  ;;  %v1497_v0 = vsel %vm1481_vm5, %v1464_v51, %v5217_v41  ;;  %p2654_p12 = pnand %p2653_p11, %p2827_p5  ;;  %p2661_p2 = por %p2660_p1, %p2659_p0 }
 0x2f8   : > { %v1378_v27 = vpop.permute.xlu1 %1377  ;;  %p2655_p13 = pneg %p2654_p12 }
 0x2f9   : > { %v1692_v37 = vsel %vm1679_vm10, %v1659_v8, %v1378_v27  ;;  %v5218_v27 = vld [vmem:[#allocation92_spill] sm:$0xff] }
 0x2fa   : > { %2522 = vmatprep.mubr.msk.f32.mxu0 %vm1717_vm12, %v1692_v37  ;;  %v1402_v36 = vpop.permute.xlu0 %1401  ;;  %v1530_v37 = vsel %vm1514_vm6, %v1497_v0, %v5218_v27  ;;  %p2662_p3 = pnand %p2661_p2, %p2655_p13 }
 0x2fb   : > { %2523 = vmatmul.mubr.msk.f32.gmra.mrb[12].mxu0 %vm1717_vm12, %v1693_v2 }
 0x2fc   : > { %v1081_v61 = vpop.permute.xlu1 %1080 }
 0x2fe   : > { %v4545_v52 = vpop.permute.xlu0 %1104 }
 0x300   : > { %v1195_v20 = vpop.permute.xlu1 %1194 }
 0x301   : > { %v1636_v22 = vsel %vm1613_vm9, %v1603_v47, %v1195_v20 }
 0x302   : > { %v1669_v34 = vsel %vm1646_vm11, %v1636_v22, %v4418_v59  ;;  %v1595_v59 = vsel %vm1580_vm8, %v1562_v19, %v1081_v61  ;;  %v4560_v8 = vpop.permute.xlu0 %1106  ;;  %v5219_v61 = vld [vmem:[#allocation13_spill] sm:$0xff] }
 0x304   : > { %v1083_v46 = vpop.permute.xlu1 %1082 }
 0x306   : > { %v4574_v45 = vpop.permute.xlu0 %1204 }
 0x308   : > { %v1197_v13 = vpop.permute.xlu1 %1196 }
 0x309   : > { %v1637_v28 = vsel %vm1613_vm9, %v1604_v6, %v1197_v13  ;;  %v1563_v13 = vsel %vm1547_vm7, %v1530_v37, %v5219_v61 }
 0x30a   : > { %v1670_v48 = vsel %vm1646_vm11, %v1637_v28, %v4428_v5  ;;  %v1596_v32 = vsel %vm1580_vm8, %v1563_v13, %v1083_v46  ;;  %v4588_v6 = vpop.permute.xlu0 %1007  ;;  %v2648_v28 = vld [vmem:[#allocation2 + $0x128] sm:$0xff] }
 0x30b   : > { %v1703_v5 = vsel %vm1679_vm10, %v1670_v48, %v1400_v54  ;;  %v1628_v54 = vsel %vm1613_vm9, %v1595_v59, %v4404_v12  ;;  %v1473_v12 = vsel %vm302_vm0, %v2647_v1, %v5220_v62  ;;  %v1629_v11 = vsel %vm1613_vm9, %v1596_v32, %v4424_v25  ;;  %v5224_v48 = vld [vmem:[#allocation76_spill] sm:$0xff]  ;;  %v5230_v62 = vld [vmem:[#allocation78_spill] sm:$0xff] }
 0x30c   : > { %v1000_v3 = vpop.permute.xlu1 %999  ;;  %v1506_v17 = vsel %vm1481_vm5, %v1473_v12, %v5221_v55  ;;  %v1662_v57 = vsel %vm1646_vm11, %v1629_v11, %v4480_v31 }
 0x30d   : > { %v1539_v26 = vsel %vm1514_vm6, %v1506_v17, %v5222_v58 }
 0x30e   : > { %v1572_v46 = vsel %vm1547_vm7, %v1539_v26, %v1000_v3  ;;  %v5223_v3 = vld [vmem:[#allocation73_spill] sm:$0xff]  ;;  %v1406_v38 = vpop.permute.xlu0 %1405 }
 0x310   : > { %v1281_v63 = vpop.permute.xlu1 %1280 }
 0x311   : > { %v1661_v2 = vsel %vm1646_vm11, %v1628_v54, %v1281_v63  ;;  %v1474_v63 = vsel %vm302_vm0, %v2648_v28, %v5223_v3  ;;  %v2649_v28 = vld [vmem:[#allocation2 + $0x150] sm:$0xff]  ;;  %v5232_v3 = vld [vmem:[#allocation79_spill] sm:$0xff] }
 0x312   : > { %v1507_v9 = vsel %vm1481_vm5, %v1474_v63, %v5224_v48  ;;  %v4604_v44 = vpop.permute.xlu0 %1108  ;;  %v1477_v63 = vsel %vm302_vm0, %v2649_v28, %v5232_v3 }
 0x314   : > { %v1398_v42 = vpop.permute.xlu1 %1397 }
 0x315   : > { %v1702_v60 = vsel %vm1679_vm10, %v1669_v34, %v1398_v42  ;;  %v1540_v42 = vsel %vm1514_vm6, %v1507_v9, %v5225_v16 }
 0x316   : > { %2537 = vmatprep.mubr.msk.f32.mxu1 %vm1717_vm12, %v1702_v60  ;;  %v4618_v29 = vpop.permute.xlu0 %1110 }
 0x317   : > { %2538 = vmatmul.mubr.msk.f32.gmra.mrb[6].mxu1 %vm1717_vm12, %v1703_v5  ;;  %v5226_v5 = vld [vmem:[#allocation75_spill] sm:$0xff] }
 0x318   : > { %v1101_v4 = vpop.permute.xlu1 %1100  ;;  %v1475_v30 = vsel %vm302_vm0, %v4195_v24, %v5226_v5 }
 0x319   : > { %v1605_v33 = vsel %vm1580_vm8, %v1572_v46, %v1101_v4  ;;  %v5228_v4 = vld [vmem:[#allocation118_spill] sm:$0xff] }
 0x31a   : > { %v1638_v56 = vsel %vm1613_vm9, %v1605_v33, %v4510_v10  ;;  %v1573_v10 = vsel %vm1547_vm7, %v1540_v42, %v4452_v50  ;;  %v5227_v50 = vld [vmem:[#allocation108_spill] sm:$0xff]  ;;  %v1209_v11 = vpop.permute.xlu0 %1208  ;;  %v5234_v42 = vld [vmem:[#allocation25_spill] sm:$0xff] }
 0x31b   : > { %v1508_v19 = vsel %vm1481_vm5, %v1475_v30, %v5227_v50  ;;  %v2650_v30 = vld [vmem:[#allocation2 + $0x158] sm:$0xff] }
 0x31c   : > { %v1382_v20 = vpop.permute.xlu1 %1381  ;;  %v1541_v23 = vsel %vm1514_vm6, %v1508_v19, %v5228_v4  ;;  %v5235_v50 = vld [vmem:[#allocation81_spill] sm:$0xff] }
 0x31d   : > { %v1694_v40 = vsel %vm1679_vm10, %v1661_v2, %v1382_v20  ;;  %v1574_v51 = vsel %vm1547_vm7, %v1541_v23, %v4516_v35  ;;  %v5229_v2 = vld [vmem:[#allocation77_spill] sm:$0xff]  ;;  %v1478_v19 = vsel %vm302_vm0, %v2650_v30, %v5235_v50 }
 0x31e   : > { %2525 = vmatprep.mubr.msk.f32.mxu0 %vm1717_vm12, %v1694_v40  ;;  %v1607_v24 = vsel %vm1580_vm8, %v1574_v51, %v4545_v52  ;;  %v1476_v20 = vsel %vm302_vm0, %v4232_v15, %v5229_v2  ;;  %v5231_v15 = vld [vmem:[#allocation105_spill] sm:$0xff] }
 0x31f   : > { %v1509_v12 = vsel %vm1481_vm5, %v1476_v20, %v5230_v62 }
 0x320   : > { %v1103_v43 = vpop.permute.xlu1 %1102  ;;  %v1542_v55 = vsel %vm1514_vm6, %v1509_v12, %v5231_v15  ;;  %v5239_v15 = vld [vmem:[#allocation83_spill] sm:$0xff] }
 0x321   : > { %v1606_v34 = vsel %vm1580_vm8, %v1573_v10, %v1103_v43 }
 0x324   : > { %v1384_v14 = vpop.permute.xlu1 %1383 }
 0x325   : > { %v1695_v18 = vsel %vm1679_vm10, %v1662_v57, %v1384_v14  ;;  %v4642_v14 = vpop.permute.xlu0 %1011 }
 0x326   : > { %2526 = vmatmul.mubr.msk.f32.gmra.mrb[14].mxu0 %vm1717_vm12, %v1695_v18 }
 0x328   : > { %v1301_v25 = vpop.permute.xlu1 %1300 }
 0x329   : > { %v1671_v47 = vsel %vm1646_vm11, %v1638_v56, %v1301_v25 }
 0x32a   : > { %v1704_v31 = vsel %vm1679_vm10, %v1671_v47, %v1402_v36  ;;  %v1639_v36 = vsel %vm1613_vm9, %v1606_v34, %v4512_v21 }
 0x32b   : > { %2540 = vmatprep.mubr.msk.f32.mxu1 %vm1717_vm12, %v1704_v31 }
 0x32c   : > { %v1303_v22 = vpop.permute.xlu1 %1302 }
 0x32d   : > { %v1672_v60 = vsel %vm1646_vm11, %v1639_v36, %v1303_v22 }
 0x330   : > { %v1006_v7 = vpop.permute.xlu1 %1005 }
 0x331   : > { %v1575_v58 = vsel %vm1547_vm7, %v1542_v55, %v1006_v7 }
 0x332   : > { %v1608_v26 = vsel %vm1580_vm8, %v1575_v58, %v4560_v8  ;;  %v1410_v8 = vpop.permute.xlu0 %1409 }
 0x333   : > { %v1641_v57 = vsel %vm1613_vm9, %v1608_v26, %v4574_v45  ;;  %v5233_v45 = vld [vmem:[#allocation109_spill] sm:$0xff]  ;;  %v5240_v26 = vld [vmem:[#allocation12_spill] sm:$0xff] }
 0x334   : > { %v1404_v39 = vpop.permute.xlu1 %1403  ;;  %v1510_v9 = vsel %vm1481_vm5, %v1477_v63, %v5233_v45 }
 0x335   : > { %v1705_v49 = vsel %vm1679_vm10, %v1672_v60, %v1404_v39  ;;  %v1543_v10 = vsel %vm1514_vm6, %v1510_v9, %v5234_v42  ;;  %v5243_v9 = vld [vmem:[#allocation119_spill] sm:$0xff] }
 0x336   : > { %2541 = vmatmul.mubr.msk.f32.gmra.mrb[8].mxu1 %vm1717_vm12, %v1705_v49  ;;  %v1576_v36 = vsel %vm1547_vm7, %v1543_v10, %v4588_v6 }
 0x337   : > { %v1609_v49 = vsel %vm1580_vm8, %v1576_v36, %v4604_v44  ;;  %v5237_v44 = vld [vmem:[#allocation107_spill] sm:$0xff] }
 0x338   : > { %v1203_v59 = vpop.permute.xlu1 %1202 }
 0x339   : > { %v2506_v21 = vpop.f32.mrb[0].mxu0  ;;  %v1640_v61 = vsel %vm1613_vm9, %v1607_v24, %v1203_v59 }
 0x33a   : > { %v2044_v41 = vsel %vm1481_vm5, %v2506_v21, 0.0  ;;  %v2113_v0 = vmul.f32 %v2506_v21, %v2506_v21  ;;  %v1884_v54 = vpop.f32.mrb[1].mxu0 }
 0x33b   : > { %v2043_v27 = vsel %vm1481_vm5, %v1884_v54, 0.0  ;;  %v2112_v37 = vmul.f32 %v1884_v54, %v1884_v54  ;;  %2217 = vxpose.xlu1.b32.start [1/16] (narrow) %v1884_v54, 8 }
 0x33c   : > { %v2145_v13 = vsel %vm1481_vm5, %v2113_v0, 0.0  ;;  %v2045_v35 = vadd.f32 %v2044_v41, %v2043_v27  ;;  %v1305_v40 = vpop.permute.xlu1 %1304  ;;  %v5236_v41 = vld [vmem:[#allocation80_spill] sm:$0xff] }
 0x33d   : > { %v2144_v32 = vsel %vm1481_vm5, %v2112_v37, 0.0  ;;  %v1673_v43 = vsel %vm1646_vm11, %v1640_v61, %v1305_v40  ;;  %v1511_v0 = vsel %vm1481_vm5, %v1478_v19, %v5236_v41  ;;  %v2651_v61 = vld [vmem:[#allocation2 + $0x170] sm:$0xff] }
 0x33e   : > { %v2146_v1 = vadd.f32 %v2145_v13, %v2144_v32  ;;  %v1706_v52 = vsel %vm1679_vm10, %v1673_v43, %v1406_v38  ;;  %v1544_v54 = vsel %vm1514_vm6, %v1511_v0, %v5237_v44  ;;  %v5238_v13 = vld [vmem:[#allocation84_spill] sm:$0xff] }
 0x33f   : > { %2218 = vxpose.xlu1.b32.cont [2/16] (narrow) %v2506_v21, 8  ;;  %2543 = vmatprep.mubr.msk.f32.mxu1 %vm1717_vm12, %v1706_v52  ;;  %v1113_v21 = vpop.permute.xlu0 %1112 }
 0x340   : > { %v1307_v17 = vpop.permute.xlu1 %1306 }
 0x341   : > { %v1674_v33 = vsel %vm1646_vm11, %v1641_v57, %v1307_v17 }
 0x343   : > { %v1115_v37 = vpop.permute.xlu0 %1114 }
 0x344   : > { %v1010_v46 = vpop.permute.xlu1 %1009 }
 0x345   : > { %v1577_v27 = vsel %vm1547_vm7, %v1544_v54, %v1010_v46 }
 0x346   : > { %v1610_v2 = vsel %vm1580_vm8, %v1577_v27, %v4618_v29 }
 0x347   : > { %v1643_v43 = vsel %vm1613_vm9, %v1610_v2, %v1209_v11 }
 0x348   : > { %v1408_v18 = vpop.permute.xlu1 %1407 }
 0x349   : > { %v1707_v25 = vsel %vm1679_vm10, %v1674_v33, %v1408_v18  ;;  %v2509_v56 = vpop.f32.mrb[2].mxu0 }
 0x34a   : > { %v1894_v47 = vpop.f32.mrb[3].mxu0  ;;  %2544 = vmatmul.mubr.msk.f32.gmra.mrb[10].mxu1 %vm1717_vm12, %v1707_v25  ;;  %v2115_v31 = vmul.f32 %v2509_v56, %v2509_v56  ;;  %v2048_v34 = vsel %vm1481_vm5, %v2509_v56, 0.0 }
 0x34b   : > { %v2046_v22 = vsel %vm1481_vm5, %v1894_v47, 0.0  ;;  %v2114_v48 = vmul.f32 %v1894_v47, %v1894_v47  ;;  %2219 = vxpose.xlu1.b32.cont [3/16] (narrow) %v1894_v47, 8 }
 0x34c   : > { %v2047_v38 = vadd.f32 %v2046_v22, %v2045_v35  ;;  %v1207_v16 = vpop.permute.xlu1 %1206  ;;  %v2149_v5 = vsel %vm1481_vm5, %v2115_v31, 0.0  ;;  %v1480_v35 = vsel %vm302_vm0, %v2651_v61, %v5238_v13  ;;  %v5241_v31 = vld [vmem:[#allocation82_spill] sm:$0xff] }
 0x34d   : > { %v2147_v7 = vsel %vm1481_vm5, %v2114_v48, 0.0  ;;  %v1642_v59 = vsel %vm1613_vm9, %v1609_v49, %v1207_v16  ;;  %v1513_v55 = vsel %vm1481_vm5, %v1480_v35, %v5239_v15  ;;  %v1479_v22 = vsel %vm302_vm0, %v4354_v53, %v5241_v31  ;;  %v5242_v48 = vld [vmem:[#allocation19_spill] sm:$0xff] }
 0x34e   : > { %v2148_v60 = vadd.f32 %v2147_v7, %v2146_v1  ;;  %v2049_v39 = vadd.f32 %v2048_v34, %v2047_v38  ;;  %v1213_v1 = vpop.permute.xlu0 %1212  ;;  %v1546_v46 = vsel %vm1514_vm6, %v1513_v55, %v5240_v26  ;;  %v1512_v45 = vsel %vm1481_vm5, %v1479_v22, %v5242_v48 }
 0x34f   : > { %2220 = vxpose.xlu1.b32.cont [4/16] (narrow) %v2509_v56, 8  ;;  %v1545_v38 = vsel %vm1514_vm6, %v1512_v45, %v5243_v9 }
 0x350   : > { %v1309_v4 = vpop.permute.xlu1 %1308  ;;  %v2150_v23 = vadd.f32 %v2149_v5, %v2148_v60  ;;  %v1578_v10 = vsel %vm1547_vm7, %v1545_v38, %v4642_v14 }
 0x351   : > { %v1675_v51 = vsel %vm1646_vm11, %v1642_v59, %v1309_v4  ;;  %v1611_v34 = vsel %vm1580_vm8, %v1578_v10, %v1113_v21 }
 0x352   : > { %v1708_v6 = vsel %vm1679_vm10, %v1675_v51, %v1410_v8  ;;  %v1315_v8 = vpop.permute.xlu0 %1314 }
 0x353   : > { %2546 = vmatprep.mubr.msk.f32.mxu1 %vm1717_vm12, %v1708_v6 }
 0x354   : > { %v1311_v24 = vpop.permute.xlu1 %1310 }
 0x355   : > { %v1676_v29 = vsel %vm1646_vm11, %v1643_v43, %v1311_v24 }
 0x356   : > { %v1416_v60 = vpop.permute.xlu0 %1415 }
 0x358   : > { %v1014_v20 = vpop.permute.xlu1 %1013 }
 0x359   : > { %v2512_v40 = vpop.f32.mrb[4].mxu0  ;;  %v1579_v18 = vsel %vm1547_vm7, %v1546_v46, %v1014_v20 }
 0x35a   : > { %v1904_v32 = vpop.f32.mrb[5].mxu0  ;;  %v2117_v52 = vmul.f32 %v2512_v40, %v2512_v40  ;;  %v2052_v57 = vsel %vm1481_vm5, %v2512_v40, 0.0  ;;  %v1612_v63 = vsel %vm1580_vm8, %v1579_v18, %v1115_v37 }
 0x35b   : > { %v2050_v62 = vsel %vm1481_vm5, %v1904_v32, 0.0  ;;  %v2116_v12 = vmul.f32 %v1904_v32, %v1904_v32  ;;  %2221 = vxpose.xlu1.b32.cont [5/16] (narrow) %v1904_v32, 8  ;;  %v1645_v16 = vsel %vm1613_vm9, %v1612_v63, %v1213_v1 }
 0x35c   : > { %v2051_v17 = vadd.f32 %v2050_v62, %v2049_v39  ;;  %v1412_v58 = vpop.permute.xlu1 %1411  ;;  %v2153_v47 = vsel %vm1481_vm5, %v2117_v52, 0.0  ;;  %v1678_v36 = vsel %vm1646_vm11, %v1645_v16, %v1315_v8 }
 0x35d   : > { %v2151_v11 = vsel %vm1481_vm5, %v2116_v12, 0.0  ;;  %v1709_v33 = vsel %vm1679_vm10, %v1676_v29, %v1412_v58  ;;  %v1711_v4 = vsel %vm1679_vm10, %v1678_v36, %v1416_v60 }
 0x35e   : > { %v2152_v25 = vadd.f32 %v2151_v11, %v2150_v23  ;;  %2547 = vmatmul.mubr.msk.f32.gmra.mrb[12].mxu1 %vm1717_vm12, %v1709_v33  ;;  %v2053_v56 = vadd.f32 %v2052_v57, %v2051_v17 }
 0x35f   : > { %2222 = vxpose.xlu1.b32.cont [6/16] (narrow) %v2512_v40, 8 }
 0x360   : > { %v1211_v28 = vpop.permute.xlu1 %1210  ;;  %v2154_v3 = vadd.f32 %v2153_v47, %v2152_v25 }
 0x361   : > { %v1644_v53 = vsel %vm1613_vm9, %v1611_v34, %v1211_v28 }
 0x364   : > { %v1313_v42 = vpop.permute.xlu1 %1312 }
 0x365   : > { %v1677_v49 = vsel %vm1646_vm11, %v1644_v53, %v1313_v42 }
 0x366   : > { %v2515_v7 = vpop.f32.mrb[6].mxu0 }
 0x367   : > { %v1914_v39 = vpop.f32.mrb[7].mxu0  ;;  %v2119_v5 = vmul.f32 %v2515_v7, %v2515_v7  ;;  %v2056_v23 = vsel %vm1481_vm5, %v2515_v7, 0.0 }
 0x368   : > { %v2054_v30 = vsel %vm1481_vm5, %v1914_v39, 0.0  ;;  %v2118_v50 = vmul.f32 %v1914_v39, %v1914_v39  ;;  %v1414_v19 = vpop.permute.xlu1 %1413  ;;  %2223 = vxpose.xlu1.b32.cont [7/16] (narrow) %v1914_v39, 8 }
 0x369   : > { %v2055_v59 = vadd.f32 %v2054_v30, %v2053_v56  ;;  %v1710_v14 = vsel %vm1679_vm10, %v1677_v49, %v1414_v19  ;;  %v2157_v41 = vsel %vm1481_vm5, %v2119_v5, 0.0 }
 0x36a   : > { %v2155_v21 = vsel %vm1481_vm5, %v2118_v50, 0.0  ;;  %2549 = vmatprep.mubr.msk.f32.mxu1 %vm1717_vm12, %v1710_v14 }
 0x36b   : > { %v2156_v51 = vadd.f32 %v2155_v21, %v2154_v3  ;;  %2550 = vmatmul.mubr.msk.f32.gmra.mrb[14].mxu1 %vm1717_vm12, %v1711_v4  ;;  %v2057_v6 = vadd.f32 %v2056_v23, %v2055_v59 }
 0x36c   : > { %2224 = vxpose.xlu1.b32.cont [8/16] (narrow) %v2515_v7, 8 }
 0x36d   : > { %v2158_v0 = vadd.f32 %v2157_v41, %v2156_v51 }
 0x37e   : > { %v4714_v44 = vpop.f32.mrb[0].mxu1 }
 0x37f   : > { %v4716_v54 = vpop.f32.mrb[1].mxu1  ;;  %v2129_v59 = vmul.f32 %v4714_v44, %v4714_v44  ;;  %v2076_v51 = vsel %vm1481_vm5, %v4714_v44, 0.0 }
 0x380   : > { %2249 = vxpose.xlu0.b32.start [1/16] (narrow) %v4716_v54, 8  ;;  %v2128_v49 = vmul.f32 %v4716_v54, %v4716_v54  ;;  %v2074_v14 = vsel %vm1481_vm5, %v4716_v54, 0.0 }
 0x384   : > { %2250 = vxpose.xlu0.b32.cont [2/16] (narrow) %v4714_v44, 8 }
 0x386   : > { %v2518_v24 = vpop.f32.mrb[8].mxu0 }
 0x387   : > { %v1924_v27 = vpop.f32.mrb[9].mxu0  ;;  %v2121_v37 = vmul.f32 %v2518_v24, %v2518_v24  ;;  %v2060_v13 = vsel %vm1481_vm5, %v2518_v24, 0.0 }
 0x388   : > { %v2058_v2 = vsel %vm1481_vm5, %v1924_v27, 0.0  ;;  %v2120_v20 = vmul.f32 %v1924_v27, %v1924_v27  ;;  %2225 = vxpose.xlu1.b32.cont [9/16] (narrow) %v1924_v27, 8  ;;  %v2177_v27 = vsel %vm1481_vm5, %v2129_v59, 0.0 }
 0x389   : > { %v2059_v61 = vadd.f32 %v2058_v2, %v2057_v6  ;;  %v2161_v43 = vsel %vm1481_vm5, %v2121_v37, 0.0  ;;  %v2175_v6 = vsel %vm1481_vm5, %v2128_v49, 0.0 }
 0x38a   : > { %v2159_v35 = vsel %vm1481_vm5, %v2120_v20, 0.0 }
 0x38b   : > { %v2160_v40 = vadd.f32 %v2159_v35, %v2158_v0  ;;  %v2061_v32 = vadd.f32 %v2060_v13, %v2059_v61 }
 0x38c   : > { %2226 = vxpose.xlu1.b32.cont [10/16] (narrow) %v2518_v24, 8 }
 0x38d   : > { %v2162_v1 = vadd.f32 %v2161_v43, %v2160_v40 }
 0x3a2   : > { %v4724_v52 = vpop.f32.mrb[2].mxu1 }
 0x3a3   : > { %v4726_v62 = vpop.f32.mrb[3].mxu1  ;;  %v2131_v54 = vmul.f32 %v4724_v52, %v4724_v52  ;;  %v2080_v44 = vsel %vm1481_vm5, %v4724_v52, 0.0 }
 0x3a4   : > { %2251 = vxpose.xlu0.b32.cont [3/16] (narrow) %v4726_v62, 8  ;;  %v2130_v41 = vmul.f32 %v4726_v62, %v4726_v62  ;;  %v2078_v37 = vsel %vm1481_vm5, %v4726_v62, 0.0 }
 0x3a6   : > { %v2179_v61 = vsel %vm1481_vm5, %v2130_v41, 0.0 }
 0x3a8   : > { %2252 = vxpose.xlu0.b32.cont [4/16] (narrow) %v4724_v52, 8 }
 0x3aa   : > { %v2521_v12 = vpop.f32.mrb[10].mxu0 }
 0x3ab   : > { %v1934_v15 = vpop.f32.mrb[11].mxu0  ;;  %v2123_v55 = vmul.f32 %v2521_v12, %v2521_v12  ;;  %v2064_v26 = vsel %vm1481_vm5, %v2521_v12, 0.0 }
 0x3ac   : > { %v2062_v29 = vsel %vm1481_vm5, %v1934_v15, 0.0  ;;  %v2122_v17 = vmul.f32 %v1934_v15, %v1934_v15  ;;  %2227 = vxpose.xlu1.b32.cont [11/16] (narrow) %v1934_v15, 8 }
 0x3ad   : > { %v2063_v58 = vadd.f32 %v2062_v29, %v2061_v32  ;;  %v2165_v33 = vsel %vm1481_vm5, %v2123_v55, 0.0  ;;  %v2181_v32 = vsel %vm1481_vm5, %v2131_v54, 0.0 }
 0x3ae   : > { %v2163_v46 = vsel %vm1481_vm5, %v2122_v17, 0.0 }
 0x3af   : > { %v2164_v57 = vadd.f32 %v2163_v46, %v2162_v1  ;;  %v2065_v11 = vadd.f32 %v2064_v26, %v2063_v58 }
 0x3b0   : > { %2228 = vxpose.xlu1.b32.cont [12/16] (narrow) %v2521_v12, 8 }
 0x3b1   : > { %v2166_v18 = vadd.f32 %v2165_v33, %v2164_v57 }
 0x3c6   : > { %v2536_v25 = vpop.f32.mrb[4].mxu1 }
 0x3c7   : > { %v1984_v56 = vpop.f32.mrb[5].mxu1  ;;  %v2133_v43 = vmul.f32 %v2536_v25, %v2536_v25  ;;  %v2084_v55 = vsel %vm1481_vm5, %v2536_v25, 0.0 }
 0x3c8   : > { %2253 = vxpose.xlu0.b32.cont [5/16] (narrow) %v1984_v56, 8  ;;  %v2132_v13 = vmul.f32 %v1984_v56, %v1984_v56  ;;  %v2082_v1 = vsel %vm1481_vm5, %v1984_v56, 0.0 }
 0x3c9   : > { %v2185_v46 = vsel %vm1481_vm5, %v2133_v43, 0.0 }
 0x3ca   : > { %v2183_v62 = vsel %vm1481_vm5, %v2132_v13, 0.0 }
 0x3cc   : > { %2254 = vxpose.xlu0.b32.cont [6/16] (narrow) %v2536_v25, 8 }
 0x3ce   : > { %v2524_v47 = vpop.f32.mrb[12].mxu0 }
 0x3cf   : > { %v1944_v28 = vpop.f32.mrb[13].mxu0  ;;  %v2125_v3 = vmul.f32 %v2524_v47, %v2524_v47  ;;  %v2068_v22 = vsel %vm1481_vm5, %v2524_v47, 0.0 }
 0x3d0   : > { %v2066_v63 = vsel %vm1481_vm5, %v1944_v28, 0.0  ;;  %v2124_v8 = vmul.f32 %v1944_v28, %v1944_v28  ;;  %2229 = vxpose.xlu1.b32.cont [13/16] (narrow) %v1944_v28, 8 }
 0x3d1   : > { %v2067_v31 = vadd.f32 %v2066_v63, %v2065_v11  ;;  %v2169_v38 = vsel %vm1481_vm5, %v2125_v3, 0.0 }
 0x3d2   : > { %v2167_v48 = vsel %vm1481_vm5, %v2124_v8, 0.0 }
 0x3d3   : > { %v2168_v45 = vadd.f32 %v2167_v48, %v2166_v18  ;;  %v2069_v9 = vadd.f32 %v2068_v22, %v2067_v31 }
 0x3d4   : > { %2230 = vxpose.xlu1.b32.cont [14/16] (narrow) %v2524_v47, 8 }
 0x3d5   : > { %v2170_v16 = vadd.f32 %v2169_v38, %v2168_v45 }
 0x3ea   : > { %v2539_v42 = vpop.f32.mrb[6].mxu1 }
 0x3eb   : > { %v1994_v10 = vpop.f32.mrb[7].mxu1  ;;  %v2135_v57 = vmul.f32 %v2539_v42, %v2539_v42  ;;  %v2088_v56 = vsel %vm1481_vm5, %v2539_v42, 0.0 }
 0x3ec   : > { %2255 = vxpose.xlu0.b32.cont [7/16] (narrow) %v1994_v10, 8  ;;  %v2134_v29 = vmul.f32 %v1994_v10, %v1994_v10  ;;  %v2086_v11 = vsel %vm1481_vm5, %v1994_v10, 0.0 }
 0x3ed   : > { %v2189_v63 = vsel %vm1481_vm5, %v2135_v57, 0.0 }
 0x3ee   : > { %v2187_v47 = vsel %vm1481_vm5, %v2134_v29, 0.0 }
 0x3f0   : > { %2256 = vxpose.xlu0.b32.cont [8/16] (narrow) %v2539_v42, 8 }
 0x3f9   : > { %v2527_v34 = vpop.f32.mrb[14].mxu0 }
 0x3fa   : > { %v1954_v7 = vpop.f32.mrb[15].mxu0  ;;  %v2127_v36 = vmul.f32 %v2527_v34, %v2527_v34  ;;  %v2072_v5 = vsel %vm1481_vm5, %v2527_v34, 0.0 }
 0x3fb   : > { %v2070_v60 = vsel %vm1481_vm5, %v1954_v7, 0.0  ;;  %v2126_v53 = vmul.f32 %v1954_v7, %v1954_v7  ;;  %2231 = vxpose.xlu1.b32.cont [15/16] (narrow) %v1954_v7, 8 }
 0x3fc   : > { %v2071_v39 = vadd.f32 %v2070_v60, %v2069_v9  ;;  %v2173_v4 = vsel %vm1481_vm5, %v2127_v36, 0.0 }
 0x3fd   : > { %v2171_v30 = vsel %vm1481_vm5, %v2126_v53, 0.0 }
 0x3fe   : > { %v2073_v50 = vadd.f32 %v2072_v5, %v2071_v39  ;;  %v2172_v19 = vadd.f32 %v2171_v30, %v2170_v16 }
 0x3ff   : > { %2232 = vxpose.xlu1.b32.end [16/16] (narrow) %v2527_v34, 8 }
 0x400   : > { %v2075_v23 = vadd.f32 %v2074_v14, %v2073_v50  ;;  %v2174_v21 = vadd.f32 %v2173_v4, %v2172_v19 }
 0x402   : > { %v2077_v0 = vadd.f32 %v2076_v51, %v2075_v23  ;;  %v2176_v24 = vadd.f32 %v2175_v6, %v2174_v21 }
 0x404   : > { %v2079_v2 = vadd.f32 %v2078_v37, %v2077_v0  ;;  %v2178_v20 = vadd.f32 %v2177_v27, %v2176_v24 }
 0x406   : > { %v2081_v35 = vadd.f32 %v2080_v44, %v2079_v2  ;;  %v2180_v40 = vadd.f32 %v2179_v61, %v2178_v20 }
 0x408   : > { %v2182_v12 = vadd.f32 %v2181_v32, %v2180_v40  ;;  %v2083_v15 = vadd.f32 %v2082_v1, %v2081_v35 }
 0x409   : > { %v2542_v17 = vpop.f32.mrb[8].mxu1 }
 0x40a   : > { %v2004_v58 = vpop.f32.mrb[9].mxu1  ;;  %v2085_v52 = vadd.f32 %v2084_v55, %v2083_v15  ;;  %v2184_v26 = vadd.f32 %v2183_v62, %v2182_v12  ;;  %v2137_v8 = vmul.f32 %v2542_v17, %v2542_v17  ;;  %v2092_v45 = vsel %vm1481_vm5, %v2542_v17, 0.0 }
 0x40b   : > { %2257 = vxpose.xlu0.b32.cont [9/16] (narrow) %v2004_v58, 8  ;;  %v2136_v25 = vmul.f32 %v2004_v58, %v2004_v58  ;;  %v2090_v31 = vsel %vm1481_vm5, %v2004_v58, 0.0 }
 0x40c   : > { %v2087_v33 = vadd.f32 %v2086_v11, %v2085_v52  ;;  %v2186_v18 = vadd.f32 %v2185_v46, %v2184_v26  ;;  %v2193_v42 = vsel %vm1481_vm5, %v2137_v8, 0.0 }
 0x40d   : > { %v2191_v9 = vsel %vm1481_vm5, %v2136_v25, 0.0 }
 0x40e   : > { %v2089_v28 = vadd.f32 %v2088_v56, %v2087_v33  ;;  %v2188_v3 = vadd.f32 %v2187_v47, %v2186_v18 }
 0x40f   : > { %2258 = vxpose.xlu0.b32.cont [10/16] (narrow) %v2542_v17, 8 }
 0x410   : > { %v2091_v22 = vadd.f32 %v2090_v31, %v2089_v28  ;;  %v2190_v48 = vadd.f32 %v2189_v63, %v2188_v3 }
 0x412   : > { %v2192_v38 = vadd.f32 %v2191_v9, %v2190_v48  ;;  %v2093_v16 = vadd.f32 %v2092_v45, %v2091_v22 }
 0x414   : > { %v2194_v10 = vadd.f32 %v2193_v42, %v2192_v38 }
 0x41d   : > { %v2545_v34 = vpop.f32.mrb[10].mxu1 }
 0x41e   : > { %v2014_v7 = vpop.f32.mrb[11].mxu1  ;;  %v2139_v36 = vmul.f32 %v2545_v34, %v2545_v34  ;;  %v2096_v49 = vsel %vm1481_vm5, %v2545_v34, 0.0 }
 0x41f   : > { %v2094_v60 = vsel %vm1481_vm5, %v2014_v7, 0.0  ;;  %v2138_v53 = vmul.f32 %v2014_v7, %v2014_v7  ;;  %2259 = vxpose.xlu0.b32.cont [11/16] (narrow) %v2014_v7, 8 }
 0x420   : > { %v2095_v39 = vadd.f32 %v2094_v60, %v2093_v16  ;;  %v2197_v19 = vsel %vm1481_vm5, %v2139_v36, 0.0 }
 0x421   : > { %v2195_v5 = vsel %vm1481_vm5, %v2138_v53, 0.0 }
 0x422   : > { %v2196_v30 = vadd.f32 %v2195_v5, %v2194_v10  ;;  %v2097_v50 = vadd.f32 %v2096_v49, %v2095_v39 }
 0x423   : > { %2260 = vxpose.xlu0.b32.cont [12/16] (narrow) %v2545_v34, 8 }
 0x424   : > { %v2198_v59 = vadd.f32 %v2197_v19, %v2196_v30 }
 0x431   : > { %v2548_v14 = vpop.f32.mrb[12].mxu1 }
 0x432   : > { %v2024_v4 = vpop.f32.mrb[13].mxu1  ;;  %v2141_v23 = vmul.f32 %v2548_v14, %v2548_v14  ;;  %v2100_v41 = vsel %vm1481_vm5, %v2548_v14, 0.0 }
 0x433   : > { %v2098_v21 = vsel %vm1481_vm5, %v2024_v4, 0.0  ;;  %v2140_v51 = vmul.f32 %v2024_v4, %v2024_v4  ;;  %2261 = vxpose.xlu0.b32.cont [13/16] (narrow) %v2024_v4, 8 }
 0x434   : > { %v2099_v6 = vadd.f32 %v2098_v21, %v2097_v50  ;;  %v2201_v54 = vsel %vm1481_vm5, %v2141_v23, 0.0 }
 0x435   : > { %v2199_v0 = vsel %vm1481_vm5, %v2140_v51, 0.0 }
 0x436   : > { %v2200_v24 = vadd.f32 %v2199_v0, %v2198_v59  ;;  %v2101_v27 = vadd.f32 %v2100_v41, %v2099_v6 }
 0x437   : > { %2262 = vxpose.xlu0.b32.cont [14/16] (narrow) %v2548_v14, 8 }
 0x438   : > { %v2202_v37 = vadd.f32 %v2201_v54, %v2200_v24 }
 0x43e   : > { %v2551_v2 = vpop.f32.mrb[14].mxu1 }
 0x43f   : > { %v2034_v20 = vpop.f32.mrb[15].mxu1  ;;  %v2143_v44 = vmul.f32 %v2551_v2, %v2551_v2  ;;  %v2104_v40 = vsel %vm1481_vm5, %v2551_v2, 0.0 }
 0x440   : > { %v2102_v61 = vsel %vm1481_vm5, %v2034_v20, 0.0  ;;  %v2142_v13 = vmul.f32 %v2034_v20, %v2034_v20  ;;  %2263 = vxpose.xlu0.b32.cont [15/16] (narrow) %v2034_v20, 8 }
 0x441   : > { %v2103_v35 = vadd.f32 %v2102_v61, %v2101_v27  ;;  %v2205_v15 = vsel %vm1481_vm5, %v2143_v44, 0.0 }
 0x442   : > { %v2203_v32 = vsel %vm1481_vm5, %v2142_v13, 0.0 }
 0x443   : > { %v2105_v43 = vadd.f32 %v2104_v40, %v2103_v35  ;;  %v2204_v1 = vadd.f32 %v2203_v32, %v2202_v37  ;;  %v2233_v12 = vpop.trf.xlu1 }
 0x444   : > { %2264 = vxpose.xlu0.b32.end [16/16] (narrow) %v2551_v2, 8  ;;  %2281 = vst [vmem:[%s4790_s10] sm:$0xff] %v2233_v12 }
 0x445   : > { %v2106_v55 = vrot.slane %v2105_v43, 4  ;;  %v2206_v62 = vadd.f32 %v2205_v15, %v2204_v1 }
 0x447   : > { %v2107_v29 = vadd.f32 %v2106_v55, %v2105_v43  ;;  %v2207_v17 = vrot.slane %v2206_v62, 4 }
 0x449   : > { %v2108_v58 = vrot.slane %v2107_v29, 2  ;;  %v2208_v52 = vadd.f32 %v2207_v17, %v2206_v62 }
 0x44b   : > { %v2109_v26 = vadd.f32 %v2108_v58, %v2107_v29  ;;  %v2209_v46 = vrot.slane %v2208_v52, 2 }
 0x44d   : > { %v2110_v57 = vrot.slane %v2109_v26, 1  ;;  %v2210_v11 = vadd.f32 %v2209_v46, %v2208_v52 }
 0x44f   : > { %v2211_v33 = vrot.slane %v2210_v11, 1  ;;  %v2111_v18 = vadd.f32 %v2110_v57, %v2109_v26 }
 0x451   : > { %v2212_v56 = vadd.f32 %v2211_v33, %v2210_v11 }
 0x453   : > { %v2214_v47 = vsel %vm2213_vm13, %v2111_v18, %v2212_v56 }
 0x454   : > { %2216 = vst.msk [vmem:[%s228_s13] sm:$0x3] %vm2215_vm14, %v2214_v47 }
 0x455   : > { %2665 = shalt.err (!%p2662_p3)
}
 0x456   : > { %s2666_s30 = scalar_lea.hbm %s4798_s17, 32  ;;  %s2670_s9 = scalar_lea.hbm %s4878_s5, 64 }
 0x457   : > { %p2667_p4 = scmp.ne.s32.totalorder %s4798_s17, %s2666_s30  ;;  %p2671_p9 = scmp.lt.u32.totalorder %s4798_s17, %s4878_s5 }
 0x458   : > { %p2672_p10 = scmp.lt.u32.totalorder %s2670_s9, %s2666_s30  ;;  %p2674_p12 = scmp.lt.u32.totalorder %s2666_s30, %s4798_s17 }
 0x459   : > { %p2668_p7 = pnand %p2667_p4, %p2827_p5 }
 0x45a   : > { %p2673_p11 = por %p2672_p10, %p2671_p9 }
 0x45b   : > { %p2669_p8 = pneg %p2668_p7 }
 0x45c   : > { %p2675_p13 = por %p2674_p12, %p2673_p11 }
 0x45e   : > { %p2676_p0 = pnand %p2675_p13, %p2669_p8 }
 0x460   : > { %2679 = shalt.err (!%p2676_p0)
}
 0x461   : > { %2567 = dma.vmem_to_hbm [thread:$0]  (%p2827_p5), %s4800_s14, 32, %s4798_s17, %s2289_s21  }
 0x462   : > { %s2303_s13 = sshll.u32 %s4790_s10, 4  ;;  %s2456_s15 = sshll.u32 %s2810_s3, 8  ;;  %s4826_s13 = int_to_ptr.vmem [resolvable:$true] %s2303_s13 }
 0x463   : > { %s4831_s24 = scalar_lea.hbm %s4877_s4, %s2456_s15  ;;  %s2284_s28 = scalar_lea.sflag [#allocation4], %s4783_s8 }
 0x464   : > { %s2680_s29 = scalar_lea.vmem %s4826_s13, 256  ;;  %s2758_s14 = smov [#allocation3]  }
 0x465   : > { %p2681_p1 = scmp.ne.s32.totalorder %s4826_s13, %s2680_s29  ;;  %s2684_s3 = sshll.u32 %s2758_s14, 4  ;;  %s2685_s3 = int_to_ptr.vmem [resolvable:$false] %s2684_s3 }
 0x466   : > { %s2686_s17 = scalar_lea.vmem %s2685_s3, 512  ;;  %p2687_p4 = scmp.lt.s32.totalorder %s4826_s13, %s2685_s3 }
 0x467   : > { %p2682_p2 = pnand %p2681_p1, %p2827_p5  ;;  %p2688_p7 = scmp.lt.s32.totalorder %s2686_s17, %s2680_s29 }
 0x469   : > { %p2683_p3 = pneg %p2682_p2  ;;  %p2689_p8 = por %p2688_p7, %p2687_p4 }
 0x46b   : > { %p2690_p9 = pnand %p2689_p8, %p2683_p3 }
 0x488   : > { %v2265_v25 = vpop.trf.xlu0 }
 0x489   : > { %2282 = vst [vmem:[%s4790_s10 + $0x8] sm:$0xff] %v2265_v25 }
 0x48a   : > { %2693 = shalt.err (!%p2690_p9)
}
 0x48b   : > { %s2694_s8 = scalar_lea.hbm %s4831_s24, 256  ;;  %s2698_s30 = scalar_lea.hbm %s4877_s4, 512 }
 0x48c   : > { %p2695_p10 = scmp.ne.s32.totalorder %s4831_s24, %s2694_s8  ;;  %p2699_p13 = scmp.lt.u32.totalorder %s4831_s24, %s4877_s4 }
 0x48d   : > { %p2700_p0 = scmp.lt.u32.totalorder %s2698_s30, %s2694_s8  ;;  %p2702_p2 = scmp.lt.u32.totalorder %s2694_s8, %s4831_s24 }
 0x48e   : > { %p2696_p11 = pnand %p2695_p10, %p2827_p5 }
 0x48f   : > { %p2701_p1 = por %p2700_p0, %p2699_p13 }
 0x490   : > { %p2697_p12 = pneg %p2696_p11 }
 0x491   : > { %p2703_p3 = por %p2702_p2, %p2701_p1 }
 0x493   : > { %p2704_p4 = pnand %p2703_p3, %p2697_p12 }
 0x495   : > { %2707 = shalt.err (!%p2704_p4)
}
 0x496   : > { %2566 = dma.vmem_to_hbm [thread:$0]  (%p2827_p5), %s4826_s13, 256, %s4831_s24, %s2284_s28  }
 0x497 PF: > { %p2577_p7 = scmp.ge.s32.totalorder %s2746_s2, 2  ;;  %s2328_s9 = sand.u32 1, %s2734_s18  }
 0x498   : > { %s2329_s11 = scalar_lea.sflag [#allocation4], %s2328_s9 }
 0x499   : > { %p2571_p8 = pnand %p2577_p7, %p2831_p6 }
 0x49b   : > { %2725 = dma.done.wait (!%p2571_p8), %s2329_s11, 256  }
 0x49c   : > { %2727 = vsyncadd (!%p2571_p8), %s2329_s11, 4294967040  ;;  %s2338_s12 = scalar_lea.sflag [#allocation6], %s2328_s9 }
 0x49d   : > { %2729 = dma.done.wait (!%p2571_p8), %s2338_s12, 32  }
 0x49e   : > { %2731 = vsyncadd (!%p2571_p8), %s2338_s12, 4294967264  ;;  %p19_p5 = scmp.ge.s32.totalorder %s2814_s22, 4   ;;  %s5244_s18 = smov %s2738_s19 }
 0x49f   : > { %s5245_s19 = smov %s2742_s20  ;;  %s5246_s20 = smov %s2825_s25 }
 0x4a0   : > { %s5247_s2 = smov %s2814_s22  ;;  %21 = sbr.rel (!%p19_p5) target bundleno = 5 (0x5), region = 89 }
 0x4a7   :  { %2343 = vsyncpa [#allocation4], 1 }
 0x4a8   :  { %2345 = vsyncpa [#allocation4 + $0x1], 1 }
 0x4a9   :  { %2346 = vsyncpa [#allocation6], 1 }
 0x4aa   :  { %2348 = vsyncpa [#allocation6 + $0x1], 1 }

</bundles_post_ra>
